<compile_context>
chip_gen: v6e
topology: v6e:2x2x1
jax: 0.10.0
libtpu: 0.0.40
codegen_flags: <defaults>
</compile_context>

<pallas_src>
import functools
import math

import jax
import jax.numpy as jnp
from jax.experimental import pallas as pl
from jax.experimental.pallas import tpu as pltpu

CFG = dict(vocab=100, hidden=128, layers=2, heads=4, intermediate=256,
           max_pos=32, type_vocab=2, eps=1e-12, num_labels=2, label_pad=128)

_COMPUTE_DT = jnp.bfloat16   # MXU input dtype; all accumulation stays float32


# ----------------------------------------------------------------------------- kernel helpers

def _layer_norm(x, g, b, eps):
    mu = jnp.mean(x, axis=-1, keepdims=True)
    var = jnp.maximum(jnp.mean(x * x, axis=-1, keepdims=True) - mu * mu, 0.0)
    return (x - mu) * jax.lax.rsqrt(var + eps) * g + b


def _gelu(y):
    # TODO(synk): HF BERT uses exact (erf) GELU; tanh approximation used here.
    c = 0.7978845608028654  # sqrt(2/pi)
    return 0.5 * y * (1.0 + jnp.tanh(c * (y + 0.044715 * y * y * y)))


# ----------------------------------------------------------------------------- fused kernel

def _bert_kernel(ids_ref, tt_ref, mask_ref,
                 wemb_ref, pemb_ref, temb_ref, eg_ref, eb_ref,
                 wqkv_ref, bqkv_ref, wao_ref, bao_ref, ln1g_ref, ln1b_ref,
                 wf1_ref, bf1_ref, wf2_ref, bf2_ref, ln2g_ref, ln2b_ref,
                 fcw_ref, fcb_ref, out_ref,
                 *, B, S, H, nh, dh, n_layers, vocab, eps):
    R = B * S
    scale = 1.0 / math.sqrt(dh)

    # ---- embeddings ----
    # word lookup as one-hot matmul: exact row selection, MXU-friendly, no gather op
    ids = ids_ref[...]                                                    # (R, 1) int32
    vocab_iota = jax.lax.broadcasted_iota(jnp.int32, (R, vocab), 1)
    word_oh = (ids == vocab_iota).astype(jnp.float32)                     # (R, V)
    word = jnp.dot(word_oh, wemb_ref[...], preferred_element_type=jnp.float32)

    pe = pemb_ref[...]                                                    # (P, H)
    pos = jnp.concatenate([pe[0:S, :]] * B, axis=0)                       # (R, H)

    te = temb_ref[...]                                                    # (2, H)
    tt = tt_ref[...].astype(jnp.float32)                                  # (R, 1)
    typ = te[0:1, :] + tt * (te[1:2, :] - te[0:1, :])                     # (R, H) exact 2-way select

    x = _layer_norm(word + pos + typ, eg_ref[...], eb_ref[...], eps)      # (R, H)
    # embedding dropout: eval mode -> identity

    add_mask = mask_ref[...]                                              # (B*nh, S, S) additive

    # ---- encoder layers (weights VMEM-resident; statically unrolled, L=2) ----
    for l in range(n_layers):
        # fused QKV projection: (R, H) @ (H, 3H), bf16 in / f32 accumulate
        qkv = jnp.dot(x.astype(_COMPUTE_DT), wqkv_ref[l],
                      preferred_element_type=jnp.float32) + bqkv_ref[l]   # (R, 3H)
        q = qkv[:, :H].astype(_COMPUTE_DT)
        k = qkv[:, H:2 * H].astype(_COMPUTE_DT)
        v = qkv[:, 2 * H:].astype(_COMPUTE_DT)

        def split_heads(t):                                               # (R, H) -> (B*nh, S, dh)
            parts = []
            for b in range(B):
                rows = t[b * S:(b + 1) * S, :]
                for h in range(nh):
                    parts.append(rows[:, h * dh:(h + 1) * dh])
            return jnp.stack(parts, axis=0)

        qh, kh, vh = split_heads(q), split_heads(k), split_heads(v)

        s = jnp.einsum("bqd,bkd->bqk", qh, kh,
                       preferred_element_type=jnp.float32) * scale        # (B*nh, S, S)
        s = s + add_mask
        m = jnp.max(s, axis=-1, keepdims=True)
        p = jnp.exp(s - m)
        p = p * pl.reciprocal(jnp.sum(p, axis=-1, keepdims=True), approx=True)
        ctx = jnp.einsum("bqk,bkd->bqd", p.astype(_COMPUTE_DT), vh,
                         preferred_element_type=jnp.float32)              # (B*nh, S, dh)

        # merge heads back to the lane-dense (R, H) layout
        rows = []
        for b in range(B):
            rows.append(jnp.concatenate([ctx[b * nh + h] for h in range(nh)], axis=-1))
        ctx2 = jnp.concatenate(rows, axis=0)                              # (R, H)

        attn_out = jnp.dot(ctx2.astype(_COMPUTE_DT), wao_ref[l],
                           preferred_element_type=jnp.float32) + bao_ref[l]
        # attention-output dropout: eval -> identity; residual + LN fused here
        x = _layer_norm(attn_out + x, ln1g_ref[l], ln1b_ref[l], eps)

        hmid = jnp.dot(x.astype(_COMPUTE_DT), wf1_ref[l],
                       preferred_element_type=jnp.float32) + bf1_ref[l]   # (R, I)
        hmid = _gelu(hmid)
        ffn = jnp.dot(hmid.astype(_COMPUTE_DT), wf2_ref[l],
                      preferred_element_type=jnp.float32) + bf2_ref[l]    # (R, H)
        x = _layer_norm(ffn + x, ln2g_ref[l], ln2b_ref[l], eps)

    # ---- classifier on [CLS]; self.dr (Dropout p=0.5) is identity in eval mode ----
    cls = jnp.concatenate([x[b * S:b * S + 1, :] for b in range(B)], axis=0)   # (B, H)
    logits = jnp.dot(cls.astype(_COMPUTE_DT), fcw_ref[...],
                     preferred_element_type=jnp.float32) + fcb_ref[...]        # (B, 128) lane-dense
    out_ref[...] = logits


# ----------------------------------------------------------------------------- model wrapper

def init_params(key, cfg):
    H, I, L = cfg["hidden"], cfg["intermediate"], cfg["layers"]
    V, P = cfg["vocab"], cfg["max_pos"]
    pad, nl = cfg["label_pad"], cfg["num_labels"]
    wdt = _COMPUTE_DT   # matmul-weight storage dtype (MXU inputs)

    def nrm(k, shape, scale=0.02):
        return scale * jax.random.normal(k, shape, dtype=jnp.float32)

    keys = iter(jax.random.split(key, 4 + L * 6))

    p = {
        "word_emb": nrm(next(keys), (V, H)),
        "pos_emb": nrm(next(keys), (P, H)),
        "type_emb": nrm(next(keys), (cfg["type_vocab"], H)),
        "emb_ln_g": jnp.ones((1, H), jnp.float32),
        "emb_ln_b": jnp.zeros((1, H), jnp.float32),
        # classifier nn.Linear(H, 2); padded to 128 output lanes (real cols = first 2)
        "fc_w": jnp.pad(nrm(next(keys), (H, nl)), ((0, 0), (0, pad - nl))).astype(wdt),
        "fc_b": jnp.zeros((1, pad), jnp.float32),
    }

    wqkv, wao, wf1, wf2 = [], [], [], []
    for _ in range(L):
        wq, wk, wv = (nrm(next(keys), (H, H)) for _ in range(3))
        wqkv.append(jnp.concatenate([wq, wk, wv], axis=1))   # fused QKV (H, 3H)
        wao.append(nrm(next(keys), (H, H)))
        wf1.append(nrm(next(keys), (H, I)))
        wf2.append(nrm(next(keys), (I, H)))

    p.update({
        "wqkv": jnp.stack(wqkv).astype(wdt),                 # (L, H, 3H)
        "bqkv": jnp.zeros((L, 1, 3 * H), jnp.float32),
        "w_att_out": jnp.stack(wao).astype(wdt),             # (L, H, H)
        "b_att_out": jnp.zeros((L, 1, H), jnp.float32),
        "ln1_g": jnp.ones((L, 1, H), jnp.float32),
        "ln1_b": jnp.zeros((L, 1, H), jnp.float32),
        "w_ffn1": jnp.stack(wf1).astype(wdt),                # (L, H, I)
        "b_ffn1": jnp.zeros((L, 1, I), jnp.float32),
        "w_ffn2": jnp.stack(wf2).astype(wdt),                # (L, I, H)
        "b_ffn2": jnp.zeros((L, 1, H), jnp.float32),
        "ln2_g": jnp.ones((L, 1, H), jnp.float32),
        "ln2_b": jnp.zeros((L, 1, H), jnp.float32),
    })
    return p


def custom_bert_forward(params, input_ids, attention_mask, token_type_ids, cfg=CFG):
    B, S = input_ids.shape
    H, nh, L = cfg["hidden"], cfg["heads"], cfg["layers"]
    dh = H // nh
    R = B * S

    # tiny host-side glue: flatten token tensors, build HF-style additive mask per (batch, head)
    ids = input_ids.reshape(R, 1).astype(jnp.int32)
    tt = token_type_ids.reshape(R, 1).astype(jnp.int32)
    add_mask = (1.0 - attention_mask.astype(jnp.float32)) * -10000.0           # (B, S)
    add_mask = jnp.broadcast_to(add_mask[:, None, None, :], (B, nh, S, S))
    add_mask = add_mask.reshape(B * nh, S, S)

    kernel = functools.partial(
        _bert_kernel, B=B, S=S, H=H, nh=nh, dh=dh,
        n_layers=L, vocab=cfg["vocab"], eps=cfg["eps"])

    operands = (
        ids, tt, add_mask,
        params["word_emb"], params["pos_emb"], params["type_emb"],
        params["emb_ln_g"], params["emb_ln_b"],
        params["wqkv"], params["bqkv"], params["w_att_out"], params["b_att_out"],
        params["ln1_g"], params["ln1_b"],
        params["w_ffn1"], params["b_ffn1"], params["w_ffn2"], params["b_ffn2"],
        params["ln2_g"], params["ln2_b"],
        params["fc_w"], params["fc_b"],
    )

    vmem = pl.BlockSpec(memory_space=pltpu.MemorySpace.VMEM)
    logits_pad = pl.pallas_call(
        kernel,
        out_shape=jax.ShapeDtypeStruct((B, cfg["label_pad"]), jnp.float32),
        in_specs=[vmem] * len(operands),
        out_specs=vmem,
    )(*operands)

    return logits_pad[:, :cfg["num_labels"]]                                    # (B, 2)


# ----------------------------------------------------------------------------- main

if __name__ == "__main__":
    key = jax.random.PRNGKey(0)
    k_param, k_ids, k_type = jax.random.split(key, 3)

    B, S = 2, 8
    params = init_params(k_param, CFG)

    input_ids = jax.random.randint(k_ids, (B, S), 0, CFG["vocab"], dtype=jnp.int32)
    # second sequence has its last 3 tokens padded out
    attention_mask = jnp.array(
        [[1, 1, 1, 1, 1, 1, 1, 1],
         [1, 1, 1, 1, 1, 0, 0, 0]], dtype=jnp.int32)
    token_type_ids = jax.random.randint(k_type, (B, S), 0, CFG["type_vocab"],
                                        dtype=jnp.int32)

    logits = custom_bert_forward(params, input_ids, attention_mask, token_type_ids)
    jax.block_until_ready(logits)
    assert logits.shape == (B, 2) and logits.dtype == jnp.float32
    assert bool(jnp.all(jnp.isfinite(logits)))
    print("KERNEL_OK")
</pallas_src>

<mosaic_0001>
module attributes {stable_mosaic.version = 11 : i64} {
  func.func @_bert_kernel(%arg0: memref<16x1xi32, #tpu.memory_space<vmem>>, %arg1: memref<16x1xi32, #tpu.memory_space<vmem>>, %arg2: memref<8x8x8xf32, #tpu.memory_space<vmem>>, %arg3: memref<100x128xf32, #tpu.memory_space<vmem>>, %arg4: memref<32x128xf32, #tpu.memory_space<vmem>>, %arg5: memref<2x128xf32, #tpu.memory_space<vmem>>, %arg6: memref<1x128xf32, #tpu.memory_space<vmem>>, %arg7: memref<1x128xf32, #tpu.memory_space<vmem>>, %arg8: memref<2x128x384xbf16, #tpu.memory_space<vmem>>, %arg9: memref<2x1x384xf32, #tpu.memory_space<vmem>>, %arg10: memref<2x128x128xbf16, #tpu.memory_space<vmem>>, %arg11: memref<2x1x128xf32, #tpu.memory_space<vmem>>, %arg12: memref<2x1x128xf32, #tpu.memory_space<vmem>>, %arg13: memref<2x1x128xf32, #tpu.memory_space<vmem>>, %arg14: memref<2x128x256xbf16, #tpu.memory_space<vmem>>, %arg15: memref<2x1x256xf32, #tpu.memory_space<vmem>>, %arg16: memref<2x256x128xbf16, #tpu.memory_space<vmem>>, %arg17: memref<2x1x128xf32, #tpu.memory_space<vmem>>, %arg18: memref<2x1x128xf32, #tpu.memory_space<vmem>>, %arg19: memref<2x1x128xf32, #tpu.memory_space<vmem>>, %arg20: memref<128x128xbf16, #tpu.memory_space<vmem>>, %arg21: memref<1x128xf32, #tpu.memory_space<vmem>>, %arg22: memref<2x128xf32, #tpu.memory_space<vmem>>) attributes {dimension_semantics = [], scalar_prefetch = 0 : i64, scratch_operands = 0 : i64, tpu.core_type = #tpu.core_type<tc>} {
    %c0 = arith.constant 0 : index
    %c0_0 = arith.constant 0 : index
    %0 = vector.load %arg0[%c0, %c0_0] : memref<16x1xi32, #tpu.memory_space<vmem>>, vector<16x1xi32>
    %1 = tpu.iota {dimensions = array<i32: 1>} : vector<16x100xi32>
    %2 = vector.broadcast %0 : vector<16x1xi32> to vector<16x100xi32>
    %3 = arith.cmpi eq, %2, %1 : vector<16x100xi32>
    %4 = arith.extui %3 : vector<16x100xi1> to vector<16x100xi32>
    %5 = arith.sitofp %4 : vector<16x100xi32> to vector<16x100xf32>
    %c0_1 = arith.constant 0 : index
    %c0_2 = arith.constant 0 : index
    %6 = vector.load %arg3[%c0_1, %c0_2] : memref<100x128xf32, #tpu.memory_space<vmem>>, vector<100x128xf32>
    %cst = arith.constant dense<0.000000e+00> : vector<16x128xf32>
    %7 = tpu.matmul %5, %6, %cst {dimension_numbers = #tpu.dot_dimension_numbers<[1], [0], [0], [1], [0, 0, 1, 1], [], []>} : vector<16x100xf32>, vector<100x128xf32>, vector<16x128xf32> -> vector<16x128xf32>
    %c0_3 = arith.constant 0 : index
    %c0_4 = arith.constant 0 : index
    %8 = vector.load %arg4[%c0_3, %c0_4] : memref<32x128xf32, #tpu.memory_space<vmem>>, vector<32x128xf32>
    %9 = vector.extract_strided_slice %8 {offsets = [0, 0], sizes = [8, 128], strides = [1, 1]} : vector<32x128xf32> to vector<8x128xf32>
    %10 = tpu.concatenate %9, %9 in 0 : vector<8x128xf32>, vector<8x128xf32> -> vector<16x128xf32>
    %c0_5 = arith.constant 0 : index
    %c0_6 = arith.constant 0 : index
    %11 = vector.load %arg5[%c0_5, %c0_6] : memref<2x128xf32, #tpu.memory_space<vmem>>, vector<2x128xf32>
    %c0_7 = arith.constant 0 : index
    %c0_8 = arith.constant 0 : index
    %12 = vector.load %arg1[%c0_7, %c0_8] : memref<16x1xi32, #tpu.memory_space<vmem>>, vector<16x1xi32>
    %13 = arith.sitofp %12 : vector<16x1xi32> to vector<16x1xf32>
    %14 = vector.extract_strided_slice %11 {offsets = [0, 0], sizes = [1, 128], strides = [1, 1]} : vector<2x128xf32> to vector<1x128xf32>
    %15 = vector.extract_strided_slice %11 {offsets = [1, 0], sizes = [1, 128], strides = [1, 1]} : vector<2x128xf32> to vector<1x128xf32>
    %16 = vector.extract_strided_slice %11 {offsets = [0, 0], sizes = [1, 128], strides = [1, 1]} : vector<2x128xf32> to vector<1x128xf32>
    %17 = arith.subf %15, %16 : vector<1x128xf32>
    %18 = vector.broadcast %13 : vector<16x1xf32> to vector<16x128xf32>
    %19 = vector.broadcast %17 : vector<1x128xf32> to vector<16x128xf32>
    %20 = arith.mulf %18, %19 : vector<16x128xf32>
    %21 = vector.broadcast %14 : vector<1x128xf32> to vector<16x128xf32>
    %22 = arith.addf %21, %20 : vector<16x128xf32>
    %23 = arith.addf %7, %10 : vector<16x128xf32>
    %24 = arith.addf %23, %22 : vector<16x128xf32>
    %c0_9 = arith.constant 0 : index
    %c0_10 = arith.constant 0 : index
    %25 = vector.load %arg6[%c0_9, %c0_10] : memref<1x128xf32, #tpu.memory_space<vmem>>, vector<1x128xf32>
    %c0_11 = arith.constant 0 : index
    %c0_12 = arith.constant 0 : index
    %26 = vector.load %arg7[%c0_11, %c0_12] : memref<1x128xf32, #tpu.memory_space<vmem>>, vector<1x128xf32>
    %cst_13 = arith.constant dense<0.000000e+00> : vector<16xf32>
    %27 = vector.multi_reduction <add>, %24, %cst_13 [1] : vector<16x128xf32> to vector<16xf32>
    %28 = vector.shape_cast %27 : vector<16xf32> to vector<16x1xf32>
    %cst_14 = arith.constant 1.280000e+02 : f32
    %29 = vector.broadcast %cst_14 : f32 to vector<16x1xf32>
    %30 = arith.divf %28, %29 : vector<16x1xf32>
    %31 = arith.mulf %24, %24 : vector<16x128xf32>
    %cst_15 = arith.constant dense<0.000000e+00> : vector<16xf32>
    %32 = vector.multi_reduction <add>, %31, %cst_15 [1] : vector<16x128xf32> to vector<16xf32>
    %33 = vector.shape_cast %32 : vector<16xf32> to vector<16x1xf32>
    %cst_16 = arith.constant 1.280000e+02 : f32
    %34 = vector.broadcast %cst_16 : f32 to vector<16x1xf32>
    %35 = arith.divf %33, %34 : vector<16x1xf32>
    %36 = arith.mulf %30, %30 : vector<16x1xf32>
    %37 = arith.subf %35, %36 : vector<16x1xf32>
    %cst_17 = arith.constant 0.000000e+00 : f32
    %38 = vector.broadcast %cst_17 : f32 to vector<16x1xf32>
    %39 = arith.maximumf %37, %38 : vector<16x1xf32>
    %40 = vector.broadcast %30 : vector<16x1xf32> to vector<16x128xf32>
    %41 = arith.subf %24, %40 : vector<16x128xf32>
    %cst_18 = arith.constant 9.99999996E-13 : f32
    %42 = vector.broadcast %cst_18 : f32 to vector<16x1xf32>
    %43 = arith.addf %39, %42 : vector<16x1xf32>
    %44 = math.rsqrt %43 : vector<16x1xf32>
    %45 = vector.broadcast %44 : vector<16x1xf32> to vector<16x128xf32>
    %46 = arith.mulf %41, %45 : vector<16x128xf32>
    %47 = vector.broadcast %25 : vector<1x128xf32> to vector<16x128xf32>
    %48 = arith.mulf %46, %47 : vector<16x128xf32>
    %49 = vector.broadcast %26 : vector<1x128xf32> to vector<16x128xf32>
    %50 = arith.addf %48, %49 : vector<16x128xf32>
    %c0_19 = arith.constant 0 : index
    %c0_20 = arith.constant 0 : index
    %c0_21 = arith.constant 0 : index
    %51 = vector.load %arg2[%c0_19, %c0_20, %c0_21] : memref<8x8x8xf32, #tpu.memory_space<vmem>>, vector<8x8x8xf32>
    %52 = arith.truncf %50 : vector<16x128xf32> to vector<16x128xbf16>
    %c0_22 = arith.constant 0 : index
    %c0_23 = arith.constant 0 : index
    %c0_24 = arith.constant 0 : index
    %53 = vector.load %arg8[%c0_22, %c0_23, %c0_24] : memref<2x128x384xbf16, #tpu.memory_space<vmem>>, vector<1x128x384xbf16>
    %54 = vector.shape_cast %53 : vector<1x128x384xbf16> to vector<128x384xbf16>
    %cst_25 = arith.constant dense<0.000000e+00> : vector<16x384xf32>
    %55 = tpu.matmul %52, %54, %cst_25 {dimension_numbers = #tpu.dot_dimension_numbers<[1], [0], [0], [1], [0, 0, 1, 1], [], []>} : vector<16x128xbf16>, vector<128x384xbf16>, vector<16x384xf32> -> vector<16x384xf32>
    %c0_26 = arith.constant 0 : index
    %c0_27 = arith.constant 0 : index
    %c0_28 = arith.constant 0 : index
    %56 = vector.load %arg9[%c0_26, %c0_27, %c0_28] : memref<2x1x384xf32, #tpu.memory_space<vmem>>, vector<1x1x384xf32>
    %57 = vector.shape_cast %56 : vector<1x1x384xf32> to vector<1x384xf32>
    %58 = vector.broadcast %57 : vector<1x384xf32> to vector<16x384xf32>
    %59 = arith.addf %55, %58 : vector<16x384xf32>
    %60 = vector.extract_strided_slice %59 {offsets = [0, 0], sizes = [16, 128], strides = [1, 1]} : vector<16x384xf32> to vector<16x128xf32>
    %61 = arith.truncf %60 : vector<16x128xf32> to vector<16x128xbf16>
    %62 = vector.extract_strided_slice %59 {offsets = [0, 128], sizes = [16, 128], strides = [1, 1]} : vector<16x384xf32> to vector<16x128xf32>
    %63 = arith.truncf %62 : vector<16x128xf32> to vector<16x128xbf16>
    %64 = vector.extract_strided_slice %59 {offsets = [0, 256], sizes = [16, 128], strides = [1, 1]} : vector<16x384xf32> to vector<16x128xf32>
    %65 = arith.truncf %64 : vector<16x128xf32> to vector<16x128xbf16>
    %66 = vector.extract_strided_slice %61 {offsets = [0, 0], sizes = [8, 128], strides = [1, 1]} : vector<16x128xbf16> to vector<8x128xbf16>
    %67 = vector.extract_strided_slice %66 {offsets = [0, 0], sizes = [8, 32], strides = [1, 1]} : vector<8x128xbf16> to vector<8x32xbf16>
    %68 = vector.extract_strided_slice %66 {offsets = [0, 32], sizes = [8, 32], strides = [1, 1]} : vector<8x128xbf16> to vector<8x32xbf16>
    %69 = vector.extract_strided_slice %66 {offsets = [0, 64], sizes = [8, 32], strides = [1, 1]} : vector<8x128xbf16> to vector<8x32xbf16>
    %70 = vector.extract_strided_slice %66 {offsets = [0, 96], sizes = [8, 32], strides = [1, 1]} : vector<8x128xbf16> to vector<8x32xbf16>
    %71 = vector.extract_strided_slice %61 {offsets = [8, 0], sizes = [8, 128], strides = [1, 1]} : vector<16x128xbf16> to vector<8x128xbf16>
    %72 = vector.extract_strided_slice %71 {offsets = [0, 0], sizes = [8, 32], strides = [1, 1]} : vector<8x128xbf16> to vector<8x32xbf16>
    %73 = vector.extract_strided_slice %71 {offsets = [0, 32], sizes = [8, 32], strides = [1, 1]} : vector<8x128xbf16> to vector<8x32xbf16>
    %74 = vector.extract_strided_slice %71 {offsets = [0, 64], sizes = [8, 32], strides = [1, 1]} : vector<8x128xbf16> to vector<8x32xbf16>
    %75 = vector.extract_strided_slice %71 {offsets = [0, 96], sizes = [8, 32], strides = [1, 1]} : vector<8x128xbf16> to vector<8x32xbf16>
    %76 = vector.shape_cast %67 : vector<8x32xbf16> to vector<1x8x32xbf16>
    %77 = vector.shape_cast %68 : vector<8x32xbf16> to vector<1x8x32xbf16>
    %78 = vector.shape_cast %69 : vector<8x32xbf16> to vector<1x8x32xbf16>
    %79 = vector.shape_cast %70 : vector<8x32xbf16> to vector<1x8x32xbf16>
    %80 = vector.shape_cast %72 : vector<8x32xbf16> to vector<1x8x32xbf16>
    %81 = vector.shape_cast %73 : vector<8x32xbf16> to vector<1x8x32xbf16>
    %82 = vector.shape_cast %74 : vector<8x32xbf16> to vector<1x8x32xbf16>
    %83 = vector.shape_cast %75 : vector<8x32xbf16> to vector<1x8x32xbf16>
    %84 = tpu.concatenate %76, %77, %78, %79, %80, %81, %82, %83 in 0 : vector<1x8x32xbf16>, vector<1x8x32xbf16>, vector<1x8x32xbf16>, vector<1x8x32xbf16>, vector<1x8x32xbf16>, vector<1x8x32xbf16>, vector<1x8x32xbf16>, vector<1x8x32xbf16> -> vector<8x8x32xbf16>
    %85 = vector.extract_strided_slice %63 {offsets = [0, 0], sizes = [8, 128], strides = [1, 1]} : vector<16x128xbf16> to vector<8x128xbf16>
    %86 = vector.extract_strided_slice %85 {offsets = [0, 0], sizes = [8, 32], strides = [1, 1]} : vector<8x128xbf16> to vector<8x32xbf16>
    %87 = vector.extract_strided_slice %85 {offsets = [0, 32], sizes = [8, 32], strides = [1, 1]} : vector<8x128xbf16> to vector<8x32xbf16>
    %88 = vector.extract_strided_slice %85 {offsets = [0, 64], sizes = [8, 32], strides = [1, 1]} : vector<8x128xbf16> to vector<8x32xbf16>
    %89 = vector.extract_strided_slice %85 {offsets = [0, 96], sizes = [8, 32], strides = [1, 1]} : vector<8x128xbf16> to vector<8x32xbf16>
    %90 = vector.extract_strided_slice %63 {offsets = [8, 0], sizes = [8, 128], strides = [1, 1]} : vector<16x128xbf16> to vector<8x128xbf16>
    %91 = vector.extract_strided_slice %90 {offsets = [0, 0], sizes = [8, 32], strides = [1, 1]} : vector<8x128xbf16> to vector<8x32xbf16>
    %92 = vector.extract_strided_slice %90 {offsets = [0, 32], sizes = [8, 32], strides = [1, 1]} : vector<8x128xbf16> to vector<8x32xbf16>
    %93 = vector.extract_strided_slice %90 {offsets = [0, 64], sizes = [8, 32], strides = [1, 1]} : vector<8x128xbf16> to vector<8x32xbf16>
    %94 = vector.extract_strided_slice %90 {offsets = [0, 96], sizes = [8, 32], strides = [1, 1]} : vector<8x128xbf16> to vector<8x32xbf16>
    %95 = vector.shape_cast %86 : vector<8x32xbf16> to vector<1x8x32xbf16>
    %96 = vector.shape_cast %87 : vector<8x32xbf16> to vector<1x8x32xbf16>
    %97 = vector.shape_cast %88 : vector<8x32xbf16> to vector<1x8x32xbf16>
    %98 = vector.shape_cast %89 : vector<8x32xbf16> to vector<1x8x32xbf16>
    %99 = vector.shape_cast %91 : vector<8x32xbf16> to vector<1x8x32xbf16>
    %100 = vector.shape_cast %92 : vector<8x32xbf16> to vector<1x8x32xbf16>
    %101 = vector.shape_cast %93 : vector<8x32xbf16> to vector<1x8x32xbf16>
    %102 = vector.shape_cast %94 : vector<8x32xbf16> to vector<1x8x32xbf16>
    %103 = tpu.concatenate %95, %96, %97, %98, %99, %100, %101, %102 in 0 : vector<1x8x32xbf16>, vector<1x8x32xbf16>, vector<1x8x32xbf16>, vector<1x8x32xbf16>, vector<1x8x32xbf16>, vector<1x8x32xbf16>, vector<1x8x32xbf16>, vector<1x8x32xbf16> -> vector<8x8x32xbf16>
    %104 = vector.extract_strided_slice %65 {offsets = [0, 0], sizes = [8, 128], strides = [1, 1]} : vector<16x128xbf16> to vector<8x128xbf16>
    %105 = vector.extract_strided_slice %104 {offsets = [0, 0], sizes = [8, 32], strides = [1, 1]} : vector<8x128xbf16> to vector<8x32xbf16>
    %106 = vector.extract_strided_slice %104 {offsets = [0, 32], sizes = [8, 32], strides = [1, 1]} : vector<8x128xbf16> to vector<8x32xbf16>
    %107 = vector.extract_strided_slice %104 {offsets = [0, 64], sizes = [8, 32], strides = [1, 1]} : vector<8x128xbf16> to vector<8x32xbf16>
    %108 = vector.extract_strided_slice %104 {offsets = [0, 96], sizes = [8, 32], strides = [1, 1]} : vector<8x128xbf16> to vector<8x32xbf16>
    %109 = vector.extract_strided_slice %65 {offsets = [8, 0], sizes = [8, 128], strides = [1, 1]} : vector<16x128xbf16> to vector<8x128xbf16>
    %110 = vector.extract_strided_slice %109 {offsets = [0, 0], sizes = [8, 32], strides = [1, 1]} : vector<8x128xbf16> to vector<8x32xbf16>
    %111 = vector.extract_strided_slice %109 {offsets = [0, 32], sizes = [8, 32], strides = [1, 1]} : vector<8x128xbf16> to vector<8x32xbf16>
    %112 = vector.extract_strided_slice %109 {offsets = [0, 64], sizes = [8, 32], strides = [1, 1]} : vector<8x128xbf16> to vector<8x32xbf16>
    %113 = vector.extract_strided_slice %109 {offsets = [0, 96], sizes = [8, 32], strides = [1, 1]} : vector<8x128xbf16> to vector<8x32xbf16>
    %114 = vector.shape_cast %105 : vector<8x32xbf16> to vector<1x8x32xbf16>
    %115 = vector.shape_cast %106 : vector<8x32xbf16> to vector<1x8x32xbf16>
    %116 = vector.shape_cast %107 : vector<8x32xbf16> to vector<1x8x32xbf16>
    %117 = vector.shape_cast %108 : vector<8x32xbf16> to vector<1x8x32xbf16>
    %118 = vector.shape_cast %110 : vector<8x32xbf16> to vector<1x8x32xbf16>
    %119 = vector.shape_cast %111 : vector<8x32xbf16> to vector<1x8x32xbf16>
    %120 = vector.shape_cast %112 : vector<8x32xbf16> to vector<1x8x32xbf16>
    %121 = vector.shape_cast %113 : vector<8x32xbf16> to vector<1x8x32xbf16>
    %122 = tpu.concatenate %114, %115, %116, %117, %118, %119, %120, %121 in 0 : vector<1x8x32xbf16>, vector<1x8x32xbf16>, vector<1x8x32xbf16>, vector<1x8x32xbf16>, vector<1x8x32xbf16>, vector<1x8x32xbf16>, vector<1x8x32xbf16>, vector<1x8x32xbf16> -> vector<8x8x32xbf16>
    "tpu.trace_start"() <{level = 10 : i32, message = "bqd,bkd->bqk"}> : () -> ()
    %cst_29 = arith.constant dense<0.000000e+00> : vector<8x8x8xf32>
    %123 = tpu.matmul %84, %103, %cst_29 {dimension_numbers = #tpu.dot_dimension_numbers<[2], [2], [1], [1], [0, 0, 0, 1, 1, 1], [0], [0]>} : vector<8x8x32xbf16>, vector<8x8x32xbf16>, vector<8x8x8xf32> -> vector<8x8x8xf32>
    "tpu.trace_stop"() : () -> ()
    %cst_30 = arith.constant 0.176776692 : f32
    %124 = vector.broadcast %cst_30 : f32 to vector<8x8x8xf32>
    %125 = arith.mulf %123, %124 : vector<8x8x8xf32>
    %126 = arith.addf %125, %51 : vector<8x8x8xf32>
    %cst_31 = arith.constant dense<0xFF800000> : vector<8x8xf32>
    %127 = vector.multi_reduction <maximumf>, %126, %cst_31 [2] : vector<8x8x8xf32> to vector<8x8xf32>
    %128 = vector.shape_cast %127 : vector<8x8xf32> to vector<8x8x1xf32>
    %129 = vector.broadcast %128 : vector<8x8x1xf32> to vector<8x8x8xf32>
    %130 = arith.subf %126, %129 : vector<8x8x8xf32>
    %131 = math.exp %130 : vector<8x8x8xf32>
    %cst_32 = arith.constant dense<0.000000e+00> : vector<8x8xf32>
    %132 = vector.multi_reduction <add>, %131, %cst_32 [2] : vector<8x8x8xf32> to vector<8x8xf32>
    %133 = vector.shape_cast %132 : vector<8x8xf32> to vector<8x8x1xf32>
    %134 = tpu.reciprocal %133 {approx = true} : vector<8x8x1xf32> -> vector<8x8x1xf32>
    %135 = vector.broadcast %134 : vector<8x8x1xf32> to vector<8x8x8xf32>
    %136 = arith.mulf %131, %135 : vector<8x8x8xf32>
    %137 = arith.truncf %136 : vector<8x8x8xf32> to vector<8x8x8xbf16>
    "tpu.trace_start"() <{level = 10 : i32, message = "bqk,bkd->bqd"}> : () -> ()
    %cst_33 = arith.constant dense<0.000000e+00> : vector<8x8x32xf32>
    %138 = tpu.matmul %137, %122, %cst_33 {dimension_numbers = #tpu.dot_dimension_numbers<[2], [1], [1], [2], [0, 0, 0, 1, 1, 2], [0], [0]>} : vector<8x8x8xbf16>, vector<8x8x32xbf16>, vector<8x8x32xf32> -> vector<8x8x32xf32>
    "tpu.trace_stop"() : () -> ()
    %139 = vector.extract_strided_slice %138 {offsets = [0, 0, 0], sizes = [1, 8, 32], strides = [1, 1, 1]} : vector<8x8x32xf32> to vector<1x8x32xf32>
    %140 = vector.shape_cast %139 : vector<1x8x32xf32> to vector<8x32xf32>
    %141 = vector.extract_strided_slice %138 {offsets = [1, 0, 0], sizes = [1, 8, 32], strides = [1, 1, 1]} : vector<8x8x32xf32> to vector<1x8x32xf32>
    %142 = vector.shape_cast %141 : vector<1x8x32xf32> to vector<8x32xf32>
    %143 = vector.extract_strided_slice %138 {offsets = [2, 0, 0], sizes = [1, 8, 32], strides = [1, 1, 1]} : vector<8x8x32xf32> to vector<1x8x32xf32>
    %144 = vector.shape_cast %143 : vector<1x8x32xf32> to vector<8x32xf32>
    %145 = vector.extract_strided_slice %138 {offsets = [3, 0, 0], sizes = [1, 8, 32], strides = [1, 1, 1]} : vector<8x8x32xf32> to vector<1x8x32xf32>
    %146 = vector.shape_cast %145 : vector<1x8x32xf32> to vector<8x32xf32>
    %147 = tpu.concatenate %140, %142, %144, %146 in 1 : vector<8x32xf32>, vector<8x32xf32>, vector<8x32xf32>, vector<8x32xf32> -> vector<8x128xf32>
    %148 = vector.extract_strided_slice %138 {offsets = [4, 0, 0], sizes = [1, 8, 32], strides = [1, 1, 1]} : vector<8x8x32xf32> to vector<1x8x32xf32>
    %149 = vector.shape_cast %148 : vector<1x8x32xf32> to vector<8x32xf32>
    %150 = vector.extract_strided_slice %138 {offsets = [5, 0, 0], sizes = [1, 8, 32], strides = [1, 1, 1]} : vector<8x8x32xf32> to vector<1x8x32xf32>
    %151 = vector.shape_cast %150 : vector<1x8x32xf32> to vector<8x32xf32>
    %152 = vector.extract_strided_slice %138 {offsets = [6, 0, 0], sizes = [1, 8, 32], strides = [1, 1, 1]} : vector<8x8x32xf32> to vector<1x8x32xf32>
    %153 = vector.shape_cast %152 : vector<1x8x32xf32> to vector<8x32xf32>
    %154 = vector.extract_strided_slice %138 {offsets = [7, 0, 0], sizes = [1, 8, 32], strides = [1, 1, 1]} : vector<8x8x32xf32> to vector<1x8x32xf32>
    %155 = vector.shape_cast %154 : vector<1x8x32xf32> to vector<8x32xf32>
    %156 = tpu.concatenate %149, %151, %153, %155 in 1 : vector<8x32xf32>, vector<8x32xf32>, vector<8x32xf32>, vector<8x32xf32> -> vector<8x128xf32>
    %157 = tpu.concatenate %147, %156 in 0 : vector<8x128xf32>, vector<8x128xf32> -> vector<16x128xf32>
    %158 = arith.truncf %157 : vector<16x128xf32> to vector<16x128xbf16>
    %c0_34 = arith.constant 0 : index
    %c0_35 = arith.constant 0 : index
    %c0_36 = arith.constant 0 : index
    %159 = vector.load %arg10[%c0_34, %c0_35, %c0_36] : memref<2x128x128xbf16, #tpu.memory_space<vmem>>, vector<1x128x128xbf16>
    %160 = vector.shape_cast %159 : vector<1x128x128xbf16> to vector<128x128xbf16>
    %cst_37 = arith.constant dense<0.000000e+00> : vector<16x128xf32>
    %161 = tpu.matmul %158, %160, %cst_37 {dimension_numbers = #tpu.dot_dimension_numbers<[1], [0], [0], [1], [0, 0, 1, 1], [], []>} : vector<16x128xbf16>, vector<128x128xbf16>, vector<16x128xf32> -> vector<16x128xf32>
    %c0_38 = arith.constant 0 : index
    %c0_39 = arith.constant 0 : index
    %c0_40 = arith.constant 0 : index
    %162 = vector.load %arg11[%c0_38, %c0_39, %c0_40] : memref<2x1x128xf32, #tpu.memory_space<vmem>>, vector<1x1x128xf32>
    %163 = vector.shape_cast %162 : vector<1x1x128xf32> to vector<1x128xf32>
    %164 = vector.broadcast %163 : vector<1x128xf32> to vector<16x128xf32>
    %165 = arith.addf %161, %164 : vector<16x128xf32>
    %166 = arith.addf %165, %50 : vector<16x128xf32>
    %c0_41 = arith.constant 0 : index
    %c0_42 = arith.constant 0 : index
    %c0_43 = arith.constant 0 : index
    %167 = vector.load %arg12[%c0_41, %c0_42, %c0_43] : memref<2x1x128xf32, #tpu.memory_space<vmem>>, vector<1x1x128xf32>
    %168 = vector.shape_cast %167 : vector<1x1x128xf32> to vector<1x128xf32>
    %c0_44 = arith.constant 0 : index
    %c0_45 = arith.constant 0 : index
    %c0_46 = arith.constant 0 : index
    %169 = vector.load %arg13[%c0_44, %c0_45, %c0_46] : memref<2x1x128xf32, #tpu.memory_space<vmem>>, vector<1x1x128xf32>
    %170 = vector.shape_cast %169 : vector<1x1x128xf32> to vector<1x128xf32>
    %cst_47 = arith.constant dense<0.000000e+00> : vector<16xf32>
    %171 = vector.multi_reduction <add>, %166, %cst_47 [1] : vector<16x128xf32> to vector<16xf32>
    %172 = vector.shape_cast %171 : vector<16xf32> to vector<16x1xf32>
    %cst_48 = arith.constant 1.280000e+02 : f32
    %173 = vector.broadcast %cst_48 : f32 to vector<16x1xf32>
    %174 = arith.divf %172, %173 : vector<16x1xf32>
    %175 = arith.mulf %166, %166 : vector<16x128xf32>
    %cst_49 = arith.constant dense<0.000000e+00> : vector<16xf32>
    %176 = vector.multi_reduction <add>, %175, %cst_49 [1] : vector<16x128xf32> to vector<16xf32>
    %177 = vector.shape_cast %176 : vector<16xf32> to vector<16x1xf32>
    %cst_50 = arith.constant 1.280000e+02 : f32
    %178 = vector.broadcast %cst_50 : f32 to vector<16x1xf32>
    %179 = arith.divf %177, %178 : vector<16x1xf32>
    %180 = arith.mulf %174, %174 : vector<16x1xf32>
    %181 = arith.subf %179, %180 : vector<16x1xf32>
    %cst_51 = arith.constant 0.000000e+00 : f32
    %182 = vector.broadcast %cst_51 : f32 to vector<16x1xf32>
    %183 = arith.maximumf %181, %182 : vector<16x1xf32>
    %184 = vector.broadcast %174 : vector<16x1xf32> to vector<16x128xf32>
    %185 = arith.subf %166, %184 : vector<16x128xf32>
    %cst_52 = arith.constant 9.99999996E-13 : f32
    %186 = vector.broadcast %cst_52 : f32 to vector<16x1xf32>
    %187 = arith.addf %183, %186 : vector<16x1xf32>
    %188 = math.rsqrt %187 : vector<16x1xf32>
    %189 = vector.broadcast %188 : vector<16x1xf32> to vector<16x128xf32>
    %190 = arith.mulf %185, %189 : vector<16x128xf32>
    %191 = vector.broadcast %168 : vector<1x128xf32> to vector<16x128xf32>
    %192 = arith.mulf %190, %191 : vector<16x128xf32>
    %193 = vector.broadcast %170 : vector<1x128xf32> to vector<16x128xf32>
    %194 = arith.addf %192, %193 : vector<16x128xf32>
    %195 = arith.truncf %194 : vector<16x128xf32> to vector<16x128xbf16>
    %c0_53 = arith.constant 0 : index
    %c0_54 = arith.constant 0 : index
    %c0_55 = arith.constant 0 : index
    %196 = vector.load %arg14[%c0_53, %c0_54, %c0_55] : memref<2x128x256xbf16, #tpu.memory_space<vmem>>, vector<1x128x256xbf16>
    %197 = vector.shape_cast %196 : vector<1x128x256xbf16> to vector<128x256xbf16>
    %cst_56 = arith.constant dense<0.000000e+00> : vector<16x256xf32>
    %198 = tpu.matmul %195, %197, %cst_56 {dimension_numbers = #tpu.dot_dimension_numbers<[1], [0], [0], [1], [0, 0, 1, 1], [], []>} : vector<16x128xbf16>, vector<128x256xbf16>, vector<16x256xf32> -> vector<16x256xf32>
    %c0_57 = arith.constant 0 : index
    %c0_58 = arith.constant 0 : index
    %c0_59 = arith.constant 0 : index
    %199 = vector.load %arg15[%c0_57, %c0_58, %c0_59] : memref<2x1x256xf32, #tpu.memory_space<vmem>>, vector<1x1x256xf32>
    %200 = vector.shape_cast %199 : vector<1x1x256xf32> to vector<1x256xf32>
    %201 = vector.broadcast %200 : vector<1x256xf32> to vector<16x256xf32>
    %202 = arith.addf %198, %201 : vector<16x256xf32>
    %cst_60 = arith.constant 5.000000e-01 : f32
    %203 = vector.broadcast %cst_60 : f32 to vector<16x256xf32>
    %204 = arith.mulf %203, %202 : vector<16x256xf32>
    %cst_61 = arith.constant 4.471500e-02 : f32
    %205 = vector.broadcast %cst_61 : f32 to vector<16x256xf32>
    %206 = arith.mulf %205, %202 : vector<16x256xf32>
    %207 = arith.mulf %206, %202 : vector<16x256xf32>
    %208 = arith.mulf %207, %202 : vector<16x256xf32>
    %209 = arith.addf %202, %208 : vector<16x256xf32>
    %cst_62 = arith.constant 0.797884583 : f32
    %210 = vector.broadcast %cst_62 : f32 to vector<16x256xf32>
    %211 = arith.mulf %210, %209 : vector<16x256xf32>
    %212 = math.tanh %211 : vector<16x256xf32>
    %cst_63 = arith.constant 1.000000e+00 : f32
    %213 = vector.broadcast %cst_63 : f32 to vector<16x256xf32>
    %214 = arith.addf %213, %212 : vector<16x256xf32>
    %215 = arith.mulf %204, %214 : vector<16x256xf32>
    %216 = arith.truncf %215 : vector<16x256xf32> to vector<16x256xbf16>
    %c0_64 = arith.constant 0 : index
    %c0_65 = arith.constant 0 : index
    %c0_66 = arith.constant 0 : index
    %217 = vector.load %arg16[%c0_64, %c0_65, %c0_66] : memref<2x256x128xbf16, #tpu.memory_space<vmem>>, vector<1x256x128xbf16>
    %218 = vector.shape_cast %217 : vector<1x256x128xbf16> to vector<256x128xbf16>
    %cst_67 = arith.constant dense<0.000000e+00> : vector<16x128xf32>
    %219 = tpu.matmul %216, %218, %cst_67 {dimension_numbers = #tpu.dot_dimension_numbers<[1], [0], [0], [1], [0, 0, 1, 1], [], []>} : vector<16x256xbf16>, vector<256x128xbf16>, vector<16x128xf32> -> vector<16x128xf32>
    %c0_68 = arith.constant 0 : index
    %c0_69 = arith.constant 0 : index
    %c0_70 = arith.constant 0 : index
    %220 = vector.load %arg17[%c0_68, %c0_69, %c0_70] : memref<2x1x128xf32, #tpu.memory_space<vmem>>, vector<1x1x128xf32>
    %221 = vector.shape_cast %220 : vector<1x1x128xf32> to vector<1x128xf32>
    %222 = vector.broadcast %221 : vector<1x128xf32> to vector<16x128xf32>
    %223 = arith.addf %219, %222 : vector<16x128xf32>
    %224 = arith.addf %223, %194 : vector<16x128xf32>
    %c0_71 = arith.constant 0 : index
    %c0_72 = arith.constant 0 : index
    %c0_73 = arith.constant 0 : index
    %225 = vector.load %arg18[%c0_71, %c0_72, %c0_73] : memref<2x1x128xf32, #tpu.memory_space<vmem>>, vector<1x1x128xf32>
    %226 = vector.shape_cast %225 : vector<1x1x128xf32> to vector<1x128xf32>
    %c0_74 = arith.constant 0 : index
    %c0_75 = arith.constant 0 : index
    %c0_76 = arith.constant 0 : index
    %227 = vector.load %arg19[%c0_74, %c0_75, %c0_76] : memref<2x1x128xf32, #tpu.memory_space<vmem>>, vector<1x1x128xf32>
    %228 = vector.shape_cast %227 : vector<1x1x128xf32> to vector<1x128xf32>
    %cst_77 = arith.constant dense<0.000000e+00> : vector<16xf32>
    %229 = vector.multi_reduction <add>, %224, %cst_77 [1] : vector<16x128xf32> to vector<16xf32>
    %230 = vector.shape_cast %229 : vector<16xf32> to vector<16x1xf32>
    %cst_78 = arith.constant 1.280000e+02 : f32
    %231 = vector.broadcast %cst_78 : f32 to vector<16x1xf32>
    %232 = arith.divf %230, %231 : vector<16x1xf32>
    %233 = arith.mulf %224, %224 : vector<16x128xf32>
    %cst_79 = arith.constant dense<0.000000e+00> : vector<16xf32>
    %234 = vector.multi_reduction <add>, %233, %cst_79 [1] : vector<16x128xf32> to vector<16xf32>
    %235 = vector.shape_cast %234 : vector<16xf32> to vector<16x1xf32>
    %cst_80 = arith.constant 1.280000e+02 : f32
    %236 = vector.broadcast %cst_80 : f32 to vector<16x1xf32>
    %237 = arith.divf %235, %236 : vector<16x1xf32>
    %238 = arith.mulf %232, %232 : vector<16x1xf32>
    %239 = arith.subf %237, %238 : vector<16x1xf32>
    %cst_81 = arith.constant 0.000000e+00 : f32
    %240 = vector.broadcast %cst_81 : f32 to vector<16x1xf32>
    %241 = arith.maximumf %239, %240 : vector<16x1xf32>
    %242 = vector.broadcast %232 : vector<16x1xf32> to vector<16x128xf32>
    %243 = arith.subf %224, %242 : vector<16x128xf32>
    %cst_82 = arith.constant 9.99999996E-13 : f32
    %244 = vector.broadcast %cst_82 : f32 to vector<16x1xf32>
    %245 = arith.addf %241, %244 : vector<16x1xf32>
    %246 = math.rsqrt %245 : vector<16x1xf32>
    %247 = vector.broadcast %246 : vector<16x1xf32> to vector<16x128xf32>
    %248 = arith.mulf %243, %247 : vector<16x128xf32>
    %249 = vector.broadcast %226 : vector<1x128xf32> to vector<16x128xf32>
    %250 = arith.mulf %248, %249 : vector<16x128xf32>
    %251 = vector.broadcast %228 : vector<1x128xf32> to vector<16x128xf32>
    %252 = arith.addf %250, %251 : vector<16x128xf32>
    %253 = arith.truncf %252 : vector<16x128xf32> to vector<16x128xbf16>
    %c1 = arith.constant 1 : index
    %c0_83 = arith.constant 0 : index
    %c0_84 = arith.constant 0 : index
    %254 = vector.load %arg8[%c1, %c0_83, %c0_84] : memref<2x128x384xbf16, #tpu.memory_space<vmem>>, vector<1x128x384xbf16>
    %255 = vector.shape_cast %254 : vector<1x128x384xbf16> to vector<128x384xbf16>
    %cst_85 = arith.constant dense<0.000000e+00> : vector<16x384xf32>
    %256 = tpu.matmul %253, %255, %cst_85 {dimension_numbers = #tpu.dot_dimension_numbers<[1], [0], [0], [1], [0, 0, 1, 1], [], []>} : vector<16x128xbf16>, vector<128x384xbf16>, vector<16x384xf32> -> vector<16x384xf32>
    %c1_86 = arith.constant 1 : index
    %c0_87 = arith.constant 0 : index
    %c0_88 = arith.constant 0 : index
    %257 = vector.load %arg9[%c1_86, %c0_87, %c0_88] : memref<2x1x384xf32, #tpu.memory_space<vmem>>, vector<1x1x384xf32>
    %258 = vector.shape_cast %257 : vector<1x1x384xf32> to vector<1x384xf32>
    %259 = vector.broadcast %258 : vector<1x384xf32> to vector<16x384xf32>
    %260 = arith.addf %256, %259 : vector<16x384xf32>
    %261 = vector.extract_strided_slice %260 {offsets = [0, 0], sizes = [16, 128], strides = [1, 1]} : vector<16x384xf32> to vector<16x128xf32>
    %262 = arith.truncf %261 : vector<16x128xf32> to vector<16x128xbf16>
    %263 = vector.extract_strided_slice %260 {offsets = [0, 128], sizes = [16, 128], strides = [1, 1]} : vector<16x384xf32> to vector<16x128xf32>
    %264 = arith.truncf %263 : vector<16x128xf32> to vector<16x128xbf16>
    %265 = vector.extract_strided_slice %260 {offsets = [0, 256], sizes = [16, 128], strides = [1, 1]} : vector<16x384xf32> to vector<16x128xf32>
    %266 = arith.truncf %265 : vector<16x128xf32> to vector<16x128xbf16>
    %267 = vector.extract_strided_slice %262 {offsets = [0, 0], sizes = [8, 128], strides = [1, 1]} : vector<16x128xbf16> to vector<8x128xbf16>
    %268 = vector.extract_strided_slice %267 {offsets = [0, 0], sizes = [8, 32], strides = [1, 1]} : vector<8x128xbf16> to vector<8x32xbf16>
    %269 = vector.extract_strided_slice %267 {offsets = [0, 32], sizes = [8, 32], strides = [1, 1]} : vector<8x128xbf16> to vector<8x32xbf16>
    %270 = vector.extract_strided_slice %267 {offsets = [0, 64], sizes = [8, 32], strides = [1, 1]} : vector<8x128xbf16> to vector<8x32xbf16>
    %271 = vector.extract_strided_slice %267 {offsets = [0, 96], sizes = [8, 32], strides = [1, 1]} : vector<8x128xbf16> to vector<8x32xbf16>
    %272 = vector.extract_strided_slice %262 {offsets = [8, 0], sizes = [8, 128], strides = [1, 1]} : vector<16x128xbf16> to vector<8x128xbf16>
    %273 = vector.extract_strided_slice %272 {offsets = [0, 0], sizes = [8, 32], strides = [1, 1]} : vector<8x128xbf16> to vector<8x32xbf16>
    %274 = vector.extract_strided_slice %272 {offsets = [0, 32], sizes = [8, 32], strides = [1, 1]} : vector<8x128xbf16> to vector<8x32xbf16>
    %275 = vector.extract_strided_slice %272 {offsets = [0, 64], sizes = [8, 32], strides = [1, 1]} : vector<8x128xbf16> to vector<8x32xbf16>
    %276 = vector.extract_strided_slice %272 {offsets = [0, 96], sizes = [8, 32], strides = [1, 1]} : vector<8x128xbf16> to vector<8x32xbf16>
    %277 = vector.shape_cast %268 : vector<8x32xbf16> to vector<1x8x32xbf16>
    %278 = vector.shape_cast %269 : vector<8x32xbf16> to vector<1x8x32xbf16>
    %279 = vector.shape_cast %270 : vector<8x32xbf16> to vector<1x8x32xbf16>
    %280 = vector.shape_cast %271 : vector<8x32xbf16> to vector<1x8x32xbf16>
    %281 = vector.shape_cast %273 : vector<8x32xbf16> to vector<1x8x32xbf16>
    %282 = vector.shape_cast %274 : vector<8x32xbf16> to vector<1x8x32xbf16>
    %283 = vector.shape_cast %275 : vector<8x32xbf16> to vector<1x8x32xbf16>
    %284 = vector.shape_cast %276 : vector<8x32xbf16> to vector<1x8x32xbf16>
    %285 = tpu.concatenate %277, %278, %279, %280, %281, %282, %283, %284 in 0 : vector<1x8x32xbf16>, vector<1x8x32xbf16>, vector<1x8x32xbf16>, vector<1x8x32xbf16>, vector<1x8x32xbf16>, vector<1x8x32xbf16>, vector<1x8x32xbf16>, vector<1x8x32xbf16> -> vector<8x8x32xbf16>
    %286 = vector.extract_strided_slice %264 {offsets = [0, 0], sizes = [8, 128], strides = [1, 1]} : vector<16x128xbf16> to vector<8x128xbf16>
    %287 = vector.extract_strided_slice %286 {offsets = [0, 0], sizes = [8, 32], strides = [1, 1]} : vector<8x128xbf16> to vector<8x32xbf16>
    %288 = vector.extract_strided_slice %286 {offsets = [0, 32], sizes = [8, 32], strides = [1, 1]} : vector<8x128xbf16> to vector<8x32xbf16>
    %289 = vector.extract_strided_slice %286 {offsets = [0, 64], sizes = [8, 32], strides = [1, 1]} : vector<8x128xbf16> to vector<8x32xbf16>
    %290 = vector.extract_strided_slice %286 {offsets = [0, 96], sizes = [8, 32], strides = [1, 1]} : vector<8x128xbf16> to vector<8x32xbf16>
    %291 = vector.extract_strided_slice %264 {offsets = [8, 0], sizes = [8, 128], strides = [1, 1]} : vector<16x128xbf16> to vector<8x128xbf16>
    %292 = vector.extract_strided_slice %291 {offsets = [0, 0], sizes = [8, 32], strides = [1, 1]} : vector<8x128xbf16> to vector<8x32xbf16>
    %293 = vector.extract_strided_slice %291 {offsets = [0, 32], sizes = [8, 32], strides = [1, 1]} : vector<8x128xbf16> to vector<8x32xbf16>
    %294 = vector.extract_strided_slice %291 {offsets = [0, 64], sizes = [8, 32], strides = [1, 1]} : vector<8x128xbf16> to vector<8x32xbf16>
    %295 = vector.extract_strided_slice %291 {offsets = [0, 96], sizes = [8, 32], strides = [1, 1]} : vector<8x128xbf16> to vector<8x32xbf16>
    %296 = vector.shape_cast %287 : vector<8x32xbf16> to vector<1x8x32xbf16>
    %297 = vector.shape_cast %288 : vector<8x32xbf16> to vector<1x8x32xbf16>
    %298 = vector.shape_cast %289 : vector<8x32xbf16> to vector<1x8x32xbf16>
    %299 = vector.shape_cast %290 : vector<8x32xbf16> to vector<1x8x32xbf16>
    %300 = vector.shape_cast %292 : vector<8x32xbf16> to vector<1x8x32xbf16>
    %301 = vector.shape_cast %293 : vector<8x32xbf16> to vector<1x8x32xbf16>
    %302 = vector.shape_cast %294 : vector<8x32xbf16> to vector<1x8x32xbf16>
    %303 = vector.shape_cast %295 : vector<8x32xbf16> to vector<1x8x32xbf16>
    %304 = tpu.concatenate %296, %297, %298, %299, %300, %301, %302, %303 in 0 : vector<1x8x32xbf16>, vector<1x8x32xbf16>, vector<1x8x32xbf16>, vector<1x8x32xbf16>, vector<1x8x32xbf16>, vector<1x8x32xbf16>, vector<1x8x32xbf16>, vector<1x8x32xbf16> -> vector<8x8x32xbf16>
    %305 = vector.extract_strided_slice %266 {offsets = [0, 0], sizes = [8, 128], strides = [1, 1]} : vector<16x128xbf16> to vector<8x128xbf16>
    %306 = vector.extract_strided_slice %305 {offsets = [0, 0], sizes = [8, 32], strides = [1, 1]} : vector<8x128xbf16> to vector<8x32xbf16>
    %307 = vector.extract_strided_slice %305 {offsets = [0, 32], sizes = [8, 32], strides = [1, 1]} : vector<8x128xbf16> to vector<8x32xbf16>
    %308 = vector.extract_strided_slice %305 {offsets = [0, 64], sizes = [8, 32], strides = [1, 1]} : vector<8x128xbf16> to vector<8x32xbf16>
    %309 = vector.extract_strided_slice %305 {offsets = [0, 96], sizes = [8, 32], strides = [1, 1]} : vector<8x128xbf16> to vector<8x32xbf16>
    %310 = vector.extract_strided_slice %266 {offsets = [8, 0], sizes = [8, 128], strides = [1, 1]} : vector<16x128xbf16> to vector<8x128xbf16>
    %311 = vector.extract_strided_slice %310 {offsets = [0, 0], sizes = [8, 32], strides = [1, 1]} : vector<8x128xbf16> to vector<8x32xbf16>
    %312 = vector.extract_strided_slice %310 {offsets = [0, 32], sizes = [8, 32], strides = [1, 1]} : vector<8x128xbf16> to vector<8x32xbf16>
    %313 = vector.extract_strided_slice %310 {offsets = [0, 64], sizes = [8, 32], strides = [1, 1]} : vector<8x128xbf16> to vector<8x32xbf16>
    %314 = vector.extract_strided_slice %310 {offsets = [0, 96], sizes = [8, 32], strides = [1, 1]} : vector<8x128xbf16> to vector<8x32xbf16>
    %315 = vector.shape_cast %306 : vector<8x32xbf16> to vector<1x8x32xbf16>
    %316 = vector.shape_cast %307 : vector<8x32xbf16> to vector<1x8x32xbf16>
    %317 = vector.shape_cast %308 : vector<8x32xbf16> to vector<1x8x32xbf16>
    %318 = vector.shape_cast %309 : vector<8x32xbf16> to vector<1x8x32xbf16>
    %319 = vector.shape_cast %311 : vector<8x32xbf16> to vector<1x8x32xbf16>
    %320 = vector.shape_cast %312 : vector<8x32xbf16> to vector<1x8x32xbf16>
    %321 = vector.shape_cast %313 : vector<8x32xbf16> to vector<1x8x32xbf16>
    %322 = vector.shape_cast %314 : vector<8x32xbf16> to vector<1x8x32xbf16>
    %323 = tpu.concatenate %315, %316, %317, %318, %319, %320, %321, %322 in 0 : vector<1x8x32xbf16>, vector<1x8x32xbf16>, vector<1x8x32xbf16>, vector<1x8x32xbf16>, vector<1x8x32xbf16>, vector<1x8x32xbf16>, vector<1x8x32xbf16>, vector<1x8x32xbf16> -> vector<8x8x32xbf16>
    "tpu.trace_start"() <{level = 10 : i32, message = "bqd,bkd->bqk"}> : () -> ()
    %cst_89 = arith.constant dense<0.000000e+00> : vector<8x8x8xf32>
    %324 = tpu.matmul %285, %304, %cst_89 {dimension_numbers = #tpu.dot_dimension_numbers<[2], [2], [1], [1], [0, 0, 0, 1, 1, 1], [0], [0]>} : vector<8x8x32xbf16>, vector<8x8x32xbf16>, vector<8x8x8xf32> -> vector<8x8x8xf32>
    "tpu.trace_stop"() : () -> ()
    %cst_90 = arith.constant 0.176776692 : f32
    %325 = vector.broadcast %cst_90 : f32 to vector<8x8x8xf32>
    %326 = arith.mulf %324, %325 : vector<8x8x8xf32>
    %327 = arith.addf %326, %51 : vector<8x8x8xf32>
    %cst_91 = arith.constant dense<0xFF800000> : vector<8x8xf32>
    %328 = vector.multi_reduction <maximumf>, %327, %cst_91 [2] : vector<8x8x8xf32> to vector<8x8xf32>
    %329 = vector.shape_cast %328 : vector<8x8xf32> to vector<8x8x1xf32>
    %330 = vector.broadcast %329 : vector<8x8x1xf32> to vector<8x8x8xf32>
    %331 = arith.subf %327, %330 : vector<8x8x8xf32>
    %332 = math.exp %331 : vector<8x8x8xf32>
    %cst_92 = arith.constant dense<0.000000e+00> : vector<8x8xf32>
    %333 = vector.multi_reduction <add>, %332, %cst_92 [2] : vector<8x8x8xf32> to vector<8x8xf32>
    %334 = vector.shape_cast %333 : vector<8x8xf32> to vector<8x8x1xf32>
    %335 = tpu.reciprocal %334 {approx = true} : vector<8x8x1xf32> -> vector<8x8x1xf32>
    %336 = vector.broadcast %335 : vector<8x8x1xf32> to vector<8x8x8xf32>
    %337 = arith.mulf %332, %336 : vector<8x8x8xf32>
    %338 = arith.truncf %337 : vector<8x8x8xf32> to vector<8x8x8xbf16>
    "tpu.trace_start"() <{level = 10 : i32, message = "bqk,bkd->bqd"}> : () -> ()
    %cst_93 = arith.constant dense<0.000000e+00> : vector<8x8x32xf32>
    %339 = tpu.matmul %338, %323, %cst_93 {dimension_numbers = #tpu.dot_dimension_numbers<[2], [1], [1], [2], [0, 0, 0, 1, 1, 2], [0], [0]>} : vector<8x8x8xbf16>, vector<8x8x32xbf16>, vector<8x8x32xf32> -> vector<8x8x32xf32>
    "tpu.trace_stop"() : () -> ()
    %340 = vector.extract_strided_slice %339 {offsets = [0, 0, 0], sizes = [1, 8, 32], strides = [1, 1, 1]} : vector<8x8x32xf32> to vector<1x8x32xf32>
    %341 = vector.shape_cast %340 : vector<1x8x32xf32> to vector<8x32xf32>
    %342 = vector.extract_strided_slice %339 {offsets = [1, 0, 0], sizes = [1, 8, 32], strides = [1, 1, 1]} : vector<8x8x32xf32> to vector<1x8x32xf32>
    %343 = vector.shape_cast %342 : vector<1x8x32xf32> to vector<8x32xf32>
    %344 = vector.extract_strided_slice %339 {offsets = [2, 0, 0], sizes = [1, 8, 32], strides = [1, 1, 1]} : vector<8x8x32xf32> to vector<1x8x32xf32>
    %345 = vector.shape_cast %344 : vector<1x8x32xf32> to vector<8x32xf32>
    %346 = vector.extract_strided_slice %339 {offsets = [3, 0, 0], sizes = [1, 8, 32], strides = [1, 1, 1]} : vector<8x8x32xf32> to vector<1x8x32xf32>
    %347 = vector.shape_cast %346 : vector<1x8x32xf32> to vector<8x32xf32>
    %348 = tpu.concatenate %341, %343, %345, %347 in 1 : vector<8x32xf32>, vector<8x32xf32>, vector<8x32xf32>, vector<8x32xf32> -> vector<8x128xf32>
    %349 = vector.extract_strided_slice %339 {offsets = [4, 0, 0], sizes = [1, 8, 32], strides = [1, 1, 1]} : vector<8x8x32xf32> to vector<1x8x32xf32>
    %350 = vector.shape_cast %349 : vector<1x8x32xf32> to vector<8x32xf32>
    %351 = vector.extract_strided_slice %339 {offsets = [5, 0, 0], sizes = [1, 8, 32], strides = [1, 1, 1]} : vector<8x8x32xf32> to vector<1x8x32xf32>
    %352 = vector.shape_cast %351 : vector<1x8x32xf32> to vector<8x32xf32>
    %353 = vector.extract_strided_slice %339 {offsets = [6, 0, 0], sizes = [1, 8, 32], strides = [1, 1, 1]} : vector<8x8x32xf32> to vector<1x8x32xf32>
    %354 = vector.shape_cast %353 : vector<1x8x32xf32> to vector<8x32xf32>
    %355 = vector.extract_strided_slice %339 {offsets = [7, 0, 0], sizes = [1, 8, 32], strides = [1, 1, 1]} : vector<8x8x32xf32> to vector<1x8x32xf32>
    %356 = vector.shape_cast %355 : vector<1x8x32xf32> to vector<8x32xf32>
    %357 = tpu.concatenate %350, %352, %354, %356 in 1 : vector<8x32xf32>, vector<8x32xf32>, vector<8x32xf32>, vector<8x32xf32> -> vector<8x128xf32>
    %358 = tpu.concatenate %348, %357 in 0 : vector<8x128xf32>, vector<8x128xf32> -> vector<16x128xf32>
    %359 = arith.truncf %358 : vector<16x128xf32> to vector<16x128xbf16>
    %c1_94 = arith.constant 1 : index
    %c0_95 = arith.constant 0 : index
    %c0_96 = arith.constant 0 : index
    %360 = vector.load %arg10[%c1_94, %c0_95, %c0_96] : memref<2x128x128xbf16, #tpu.memory_space<vmem>>, vector<1x128x128xbf16>
    %361 = vector.shape_cast %360 : vector<1x128x128xbf16> to vector<128x128xbf16>
    %cst_97 = arith.constant dense<0.000000e+00> : vector<16x128xf32>
    %362 = tpu.matmul %359, %361, %cst_97 {dimension_numbers = #tpu.dot_dimension_numbers<[1], [0], [0], [1], [0, 0, 1, 1], [], []>} : vector<16x128xbf16>, vector<128x128xbf16>, vector<16x128xf32> -> vector<16x128xf32>
    %c1_98 = arith.constant 1 : index
    %c0_99 = arith.constant 0 : index
    %c0_100 = arith.constant 0 : index
    %363 = vector.load %arg11[%c1_98, %c0_99, %c0_100] : memref<2x1x128xf32, #tpu.memory_space<vmem>>, vector<1x1x128xf32>
    %364 = vector.shape_cast %363 : vector<1x1x128xf32> to vector<1x128xf32>
    %365 = vector.broadcast %364 : vector<1x128xf32> to vector<16x128xf32>
    %366 = arith.addf %362, %365 : vector<16x128xf32>
    %367 = arith.addf %366, %252 : vector<16x128xf32>
    %c1_101 = arith.constant 1 : index
    %c0_102 = arith.constant 0 : index
    %c0_103 = arith.constant 0 : index
    %368 = vector.load %arg12[%c1_101, %c0_102, %c0_103] : memref<2x1x128xf32, #tpu.memory_space<vmem>>, vector<1x1x128xf32>
    %369 = vector.shape_cast %368 : vector<1x1x128xf32> to vector<1x128xf32>
    %c1_104 = arith.constant 1 : index
    %c0_105 = arith.constant 0 : index
    %c0_106 = arith.constant 0 : index
    %370 = vector.load %arg13[%c1_104, %c0_105, %c0_106] : memref<2x1x128xf32, #tpu.memory_space<vmem>>, vector<1x1x128xf32>
    %371 = vector.shape_cast %370 : vector<1x1x128xf32> to vector<1x128xf32>
    %cst_107 = arith.constant dense<0.000000e+00> : vector<16xf32>
    %372 = vector.multi_reduction <add>, %367, %cst_107 [1] : vector<16x128xf32> to vector<16xf32>
    %373 = vector.shape_cast %372 : vector<16xf32> to vector<16x1xf32>
    %cst_108 = arith.constant 1.280000e+02 : f32
    %374 = vector.broadcast %cst_108 : f32 to vector<16x1xf32>
    %375 = arith.divf %373, %374 : vector<16x1xf32>
    %376 = arith.mulf %367, %367 : vector<16x128xf32>
    %cst_109 = arith.constant dense<0.000000e+00> : vector<16xf32>
    %377 = vector.multi_reduction <add>, %376, %cst_109 [1] : vector<16x128xf32> to vector<16xf32>
    %378 = vector.shape_cast %377 : vector<16xf32> to vector<16x1xf32>
    %cst_110 = arith.constant 1.280000e+02 : f32
    %379 = vector.broadcast %cst_110 : f32 to vector<16x1xf32>
    %380 = arith.divf %378, %379 : vector<16x1xf32>
    %381 = arith.mulf %375, %375 : vector<16x1xf32>
    %382 = arith.subf %380, %381 : vector<16x1xf32>
    %cst_111 = arith.constant 0.000000e+00 : f32
    %383 = vector.broadcast %cst_111 : f32 to vector<16x1xf32>
    %384 = arith.maximumf %382, %383 : vector<16x1xf32>
    %385 = vector.broadcast %375 : vector<16x1xf32> to vector<16x128xf32>
    %386 = arith.subf %367, %385 : vector<16x128xf32>
    %cst_112 = arith.constant 9.99999996E-13 : f32
    %387 = vector.broadcast %cst_112 : f32 to vector<16x1xf32>
    %388 = arith.addf %384, %387 : vector<16x1xf32>
    %389 = math.rsqrt %388 : vector<16x1xf32>
    %390 = vector.broadcast %389 : vector<16x1xf32> to vector<16x128xf32>
    %391 = arith.mulf %386, %390 : vector<16x128xf32>
    %392 = vector.broadcast %369 : vector<1x128xf32> to vector<16x128xf32>
    %393 = arith.mulf %391, %392 : vector<16x128xf32>
    %394 = vector.broadcast %371 : vector<1x128xf32> to vector<16x128xf32>
    %395 = arith.addf %393, %394 : vector<16x128xf32>
    %396 = arith.truncf %395 : vector<16x128xf32> to vector<16x128xbf16>
    %c1_113 = arith.constant 1 : index
    %c0_114 = arith.constant 0 : index
    %c0_115 = arith.constant 0 : index
    %397 = vector.load %arg14[%c1_113, %c0_114, %c0_115] : memref<2x128x256xbf16, #tpu.memory_space<vmem>>, vector<1x128x256xbf16>
    %398 = vector.shape_cast %397 : vector<1x128x256xbf16> to vector<128x256xbf16>
    %cst_116 = arith.constant dense<0.000000e+00> : vector<16x256xf32>
    %399 = tpu.matmul %396, %398, %cst_116 {dimension_numbers = #tpu.dot_dimension_numbers<[1], [0], [0], [1], [0, 0, 1, 1], [], []>} : vector<16x128xbf16>, vector<128x256xbf16>, vector<16x256xf32> -> vector<16x256xf32>
    %c1_117 = arith.constant 1 : index
    %c0_118 = arith.constant 0 : index
    %c0_119 = arith.constant 0 : index
    %400 = vector.load %arg15[%c1_117, %c0_118, %c0_119] : memref<2x1x256xf32, #tpu.memory_space<vmem>>, vector<1x1x256xf32>
    %401 = vector.shape_cast %400 : vector<1x1x256xf32> to vector<1x256xf32>
    %402 = vector.broadcast %401 : vector<1x256xf32> to vector<16x256xf32>
    %403 = arith.addf %399, %402 : vector<16x256xf32>
    %cst_120 = arith.constant 5.000000e-01 : f32
    %404 = vector.broadcast %cst_120 : f32 to vector<16x256xf32>
    %405 = arith.mulf %404, %403 : vector<16x256xf32>
    %cst_121 = arith.constant 4.471500e-02 : f32
    %406 = vector.broadcast %cst_121 : f32 to vector<16x256xf32>
    %407 = arith.mulf %406, %403 : vector<16x256xf32>
    %408 = arith.mulf %407, %403 : vector<16x256xf32>
    %409 = arith.mulf %408, %403 : vector<16x256xf32>
    %410 = arith.addf %403, %409 : vector<16x256xf32>
    %cst_122 = arith.constant 0.797884583 : f32
    %411 = vector.broadcast %cst_122 : f32 to vector<16x256xf32>
    %412 = arith.mulf %411, %410 : vector<16x256xf32>
    %413 = math.tanh %412 : vector<16x256xf32>
    %cst_123 = arith.constant 1.000000e+00 : f32
    %414 = vector.broadcast %cst_123 : f32 to vector<16x256xf32>
    %415 = arith.addf %414, %413 : vector<16x256xf32>
    %416 = arith.mulf %405, %415 : vector<16x256xf32>
    %417 = arith.truncf %416 : vector<16x256xf32> to vector<16x256xbf16>
    %c1_124 = arith.constant 1 : index
    %c0_125 = arith.constant 0 : index
    %c0_126 = arith.constant 0 : index
    %418 = vector.load %arg16[%c1_124, %c0_125, %c0_126] : memref<2x256x128xbf16, #tpu.memory_space<vmem>>, vector<1x256x128xbf16>
    %419 = vector.shape_cast %418 : vector<1x256x128xbf16> to vector<256x128xbf16>
    %cst_127 = arith.constant dense<0.000000e+00> : vector<16x128xf32>
    %420 = tpu.matmul %417, %419, %cst_127 {dimension_numbers = #tpu.dot_dimension_numbers<[1], [0], [0], [1], [0, 0, 1, 1], [], []>} : vector<16x256xbf16>, vector<256x128xbf16>, vector<16x128xf32> -> vector<16x128xf32>
    %c1_128 = arith.constant 1 : index
    %c0_129 = arith.constant 0 : index
    %c0_130 = arith.constant 0 : index
    %421 = vector.load %arg17[%c1_128, %c0_129, %c0_130] : memref<2x1x128xf32, #tpu.memory_space<vmem>>, vector<1x1x128xf32>
    %422 = vector.shape_cast %421 : vector<1x1x128xf32> to vector<1x128xf32>
    %423 = vector.broadcast %422 : vector<1x128xf32> to vector<16x128xf32>
    %424 = arith.addf %420, %423 : vector<16x128xf32>
    %425 = arith.addf %424, %395 : vector<16x128xf32>
    %c1_131 = arith.constant 1 : index
    %c0_132 = arith.constant 0 : index
    %c0_133 = arith.constant 0 : index
    %426 = vector.load %arg18[%c1_131, %c0_132, %c0_133] : memref<2x1x128xf32, #tpu.memory_space<vmem>>, vector<1x1x128xf32>
    %427 = vector.shape_cast %426 : vector<1x1x128xf32> to vector<1x128xf32>
    %c1_134 = arith.constant 1 : index
    %c0_135 = arith.constant 0 : index
    %c0_136 = arith.constant 0 : index
    %428 = vector.load %arg19[%c1_134, %c0_135, %c0_136] : memref<2x1x128xf32, #tpu.memory_space<vmem>>, vector<1x1x128xf32>
    %429 = vector.shape_cast %428 : vector<1x1x128xf32> to vector<1x128xf32>
    %cst_137 = arith.constant dense<0.000000e+00> : vector<16xf32>
    %430 = vector.multi_reduction <add>, %425, %cst_137 [1] : vector<16x128xf32> to vector<16xf32>
    %431 = vector.shape_cast %430 : vector<16xf32> to vector<16x1xf32>
    %cst_138 = arith.constant 1.280000e+02 : f32
    %432 = vector.broadcast %cst_138 : f32 to vector<16x1xf32>
    %433 = arith.divf %431, %432 : vector<16x1xf32>
    %434 = arith.mulf %425, %425 : vector<16x128xf32>
    %cst_139 = arith.constant dense<0.000000e+00> : vector<16xf32>
    %435 = vector.multi_reduction <add>, %434, %cst_139 [1] : vector<16x128xf32> to vector<16xf32>
    %436 = vector.shape_cast %435 : vector<16xf32> to vector<16x1xf32>
    %cst_140 = arith.constant 1.280000e+02 : f32
    %437 = vector.broadcast %cst_140 : f32 to vector<16x1xf32>
    %438 = arith.divf %436, %437 : vector<16x1xf32>
    %439 = arith.mulf %433, %433 : vector<16x1xf32>
    %440 = arith.subf %438, %439 : vector<16x1xf32>
    %cst_141 = arith.constant 0.000000e+00 : f32
    %441 = vector.broadcast %cst_141 : f32 to vector<16x1xf32>
    %442 = arith.maximumf %440, %441 : vector<16x1xf32>
    %443 = vector.broadcast %433 : vector<16x1xf32> to vector<16x128xf32>
    %444 = arith.subf %425, %443 : vector<16x128xf32>
    %cst_142 = arith.constant 9.99999996E-13 : f32
    %445 = vector.broadcast %cst_142 : f32 to vector<16x1xf32>
    %446 = arith.addf %442, %445 : vector<16x1xf32>
    %447 = math.rsqrt %446 : vector<16x1xf32>
    %448 = vector.broadcast %447 : vector<16x1xf32> to vector<16x128xf32>
    %449 = arith.mulf %444, %448 : vector<16x128xf32>
    %450 = vector.broadcast %427 : vector<1x128xf32> to vector<16x128xf32>
    %451 = arith.mulf %449, %450 : vector<16x128xf32>
    %452 = vector.broadcast %429 : vector<1x128xf32> to vector<16x128xf32>
    %453 = arith.addf %451, %452 : vector<16x128xf32>
    %454 = vector.extract_strided_slice %453 {offsets = [0, 0], sizes = [1, 128], strides = [1, 1]} : vector<16x128xf32> to vector<1x128xf32>
    %455 = vector.extract_strided_slice %453 {offsets = [8, 0], sizes = [1, 128], strides = [1, 1]} : vector<16x128xf32> to vector<1x128xf32>
    %456 = tpu.concatenate %454, %455 in 0 : vector<1x128xf32>, vector<1x128xf32> -> vector<2x128xf32>
    %457 = arith.truncf %456 : vector<2x128xf32> to vector<2x128xbf16>
    %c0_143 = arith.constant 0 : index
    %c0_144 = arith.constant 0 : index
    %458 = vector.load %arg20[%c0_143, %c0_144] : memref<128x128xbf16, #tpu.memory_space<vmem>>, vector<128x128xbf16>
    %cst_145 = arith.constant dense<0.000000e+00> : vector<2x128xf32>
    %459 = tpu.matmul %457, %458, %cst_145 {dimension_numbers = #tpu.dot_dimension_numbers<[1], [0], [0], [1], [0, 0, 1, 1], [], []>} : vector<2x128xbf16>, vector<128x128xbf16>, vector<2x128xf32> -> vector<2x128xf32>
    %c0_146 = arith.constant 0 : index
    %c0_147 = arith.constant 0 : index
    %460 = vector.load %arg21[%c0_146, %c0_147] : memref<1x128xf32, #tpu.memory_space<vmem>>, vector<1x128xf32>
    %461 = vector.broadcast %460 : vector<1x128xf32> to vector<2x128xf32>
    %462 = arith.addf %459, %461 : vector<2x128xf32>
    %c0_148 = arith.constant 0 : index
    %c0_149 = arith.constant 0 : index
    %463 = vector.load %arg22[%c0_148, %c0_149] : memref<2x128xf32, #tpu.memory_space<vmem>>, vector<2x128xf32>
    tpu.vector_store %arg22[%c0_148, %c0_149], %462 {strides = array<i32>} : memref<2x128xf32, #tpu.memory_space<vmem>>, vector<2x128xf32>,
    return
  }
}

</mosaic_0001>

<bundles_post_ra>
// kernel: tpu_custom_call.1
= control target key start
LH: loop header
LB: loop body
LE: loop exit
PB: predicated region body
PF: predicated region fallthrough
CT: control target
= control target key end

     0   :  { %s6359_s0 = inlined_call_operand.vmem [shape: s32[16,1], index: 0, kind: input, shape index: {}]   ;;  %s6360_s1 = inlined_call_operand.vmem [shape: s32[16,1], index: 1, kind: input, shape index: {}]   ;;  %s6361_s2 = inlined_call_operand.hbm [shape: f32[8,8,8], index: 2, kind: input, shape index: {}]   ;;  %s6362_s3 = inlined_call_operand.hbm [shape: f32[100,128], index: 3, kind: input, shape index: {}]   ;;  %s6363_s4 = inlined_call_operand.hbm [shape: f32[32,128], index: 4, kind: input, shape index: {}]   ;;  %s6364_s5 = inlined_call_operand.hbm [shape: f32[2,128], index: 5, kind: input, shape index: {}]   ;;  %s6365_s6 = inlined_call_operand.hbm [shape: f32[1,128], index: 6, kind: input, shape index: {}]   ;;  %s6366_s7 = inlined_call_operand.hbm [shape: f32[1,128], index: 7, kind: input, shape index: {}]   ;;  %s6367_s8 = inlined_call_operand.hbm [shape: bf16[2,128,384], index: 8, kind: input, shape index: {}]   ;;  %s6368_s9 = inlined_call_operand.vmem [shape: f32[2,1,384], index: 9, kind: input, shape index: {}]   ;;  %s6369_s10 = inlined_call_operand.hbm [shape: bf16[2,128,128], index: 10, kind: input, shape index: {}]   ;;  %s6370_s11 = inlined_call_operand.hbm [shape: f32[2,1,128], index: 11, kind: input, shape index: {}]   ;;  %s6371_s12 = inlined_call_operand.hbm [shape: f32[2,1,128], index: 12, kind: input, shape index: {}]   ;;  %s6372_s13 = inlined_call_operand.hbm [shape: f32[2,1,128], index: 13, kind: input, shape index: {}]   ;;  %s6373_s14 = inlined_call_operand.hbm [shape: bf16[2,128,256], index: 14, kind: input, shape index: {}]   ;;  %s6374_s15 = inlined_call_operand.hbm [shape: f32[2,1,256], index: 15, kind: input, shape index: {}]   ;;  %s6375_s16 = inlined_call_operand.hbm [shape: bf16[2,256,128], index: 16, kind: input, shape index: {}]   ;;  %s6376_s17 = inlined_call_operand.hbm [shape: f32[2,1,128], index: 17, kind: input, shape index: {}]   ;;  %s6377_s18 = inlined_call_operand.hbm [shape: f32[2,1,128], index: 18, kind: input, shape index: {}]   ;;  %s6378_s19 = inlined_call_operand.hbm [shape: f32[2,1,128], index: 19, kind: input, shape index: {}]   ;;  %s6379_s20 = inlined_call_operand.vmem [shape: bf16[128,128], index: 20, kind: input, shape index: {}]   ;;  %s6380_s21 = inlined_call_operand.vmem [shape: f32[1,128], index: 21, kind: input, shape index: {}]   ;;  %s6381_s22 = inlined_call_operand.hbm [shape: f32[2,128], index: 22, kind: output, shape index: {}]  }
   0x1   :  { %6384 = sst [smem:[#allocation40_spill]] %s6359_s0 }
   0x2   :  { %6385 = sst [smem:[#allocation41_spill]] %s6360_s1 }
   0x3   :  { %6386 = sst [smem:[#allocation42_spill]] %s6361_s2 }
   0x4   :  { %6387 = sst [smem:[#allocation43_spill]] %s6362_s3 }
   0x5   :  { %6388 = sst [smem:[#allocation44_spill]] %s6363_s4 }
   0x6   :  { %6389 = sst [smem:[#allocation45_spill]] %s6364_s5 }
   0x7   :  { %6390 = sst [smem:[#allocation46_spill]] %s6365_s6 }
   0x8   :  { %6391 = sst [smem:[#allocation47_spill]] %s6381_s22 }
   0x9   :  { %27 = vsyncpa [#allocation3], 0 }
   0xa   :  { %28 = vsyncpa [#allocation6], 0 }
   0xb   :  { %29 = vsyncpa [#allocation9], 0 }
   0xc   :  { %30 = vsyncpa [#allocation12], 0 }
   0xd   :  { %31 = vsyncpa [#allocation15], 0 }
   0xe   :  { %32 = vsyncpa [#allocation18], 0 }
   0xf   :  { %33 = vsyncpa [#allocation21], 0 }
  0x10   :  { %34 = vsyncpa [#allocation24], 0 }
  0x11   :  { %35 = vsyncpa [#allocation27], 0 }
  0x12   :  { %36 = vsyncpa [#allocation4], 0  ;;  %s5576_s3 = smov [#allocation5]   ;;  %s5577_s29 = smov [#allocation8]  }
  0x13   :  { %s58_s28 = sshll.u32 %s5576_s3, 4  ;;  %s83_s30 = sshll.u32 %s5577_s29, 4  ;;  %s59_s28 = int_to_ptr.vmem [resolvable:$true] %s58_s28  ;;  %s84_s30 = int_to_ptr.vmem [resolvable:$true] %s83_s30 }
  0x14   :  { %s5204_s4 = scalar_lea.vmem %s59_s28, 1664  ;;  %p5209_p1 = scmp.lt.s32.totalorder %s59_s28, %s59_s28 }
  0x15   :  { %p5205_p0 = scmp.ne.s32.totalorder %s59_s28, %s5204_s4  ;;  %p5210_p2 = scmp.lt.s32.totalorder %s5204_s4, %s5204_s4 }
  0x17   :  { %p5211_p3 = por %p5210_p2, %p5209_p1 }
  0x19   :  { %p5212_p4 = pnand %p5211_p3, %p5205_p0 }
  0x1b   :  { %5215 = shalt.err (!%p5212_p4)
}
  0x1c   :  { %s5578_s0 = smov 128   ;;  %s5579_s23 = smov 8  }
  0x1d   :  { %s6392_s24 = sld [smem:[#allocation43_spill]]  ;;  %s5224_s6 = scalar_lea.vmem %s84_s30, 32 }
  0x1e   :  { %p5225_p5 = scmp.ne.s32.totalorder %s84_s30, %s5224_s6  ;;  %p5229_p6 = scmp.lt.s32.totalorder %s84_s30, %s84_s30 }
  0x1f   :  { %p5230_p7 = scmp.lt.s32.totalorder %s5224_s6, %s5224_s6 }
  0x21   :  { %p5231_p8 = por %p5230_p7, %p5229_p6 }
  0x23   :  { %64 = dma.hbm_to_vmem [thread:$0]  %s6392_s24, 1664, %s59_s28, [#allocation6], %s5578_s0, %s5578_s0, %s5579_s23  }
  0x24   :  { %p5232_p9 = pnand %p5231_p8, %p5225_p5 }
  0x26   :  { %5235 = shalt.err (!%p5232_p9)
}
  0x27   :  { %s6393_s2 = sld [smem:[#allocation45_spill]]  ;;  %s5580_s27 = smov [#allocation11]  }
  0x28   :  { %s103_s3 = sshll.u32 %s5580_s27, 4  ;;  %s5581_s29 = smov [#allocation14]   ;;  %s104_s3 = int_to_ptr.vmem [resolvable:$true] %s103_s3 }
  0x29   :  { %s126_s4 = sshll.u32 %s5581_s29, 4  ;;  %s5244_s22 = scalar_lea.vmem %s104_s3, 16  ;;  %s127_s4 = int_to_ptr.vmem [resolvable:$true] %s126_s4 }
  0x2a   :  { %p5245_p10 = scmp.ne.s32.totalorder %s104_s3, %s5244_s22  ;;  %s5248_s28 = scalar_lea.vmem %s104_s3, 32 }
  0x2b   :  { %p5249_p11 = scmp.lt.s32.totalorder %s104_s3, %s104_s3  ;;  %p5250_p12 = scmp.lt.s32.totalorder %s5248_s28, %s5244_s22 }
  0x2d   :  { %86 = dma.hbm_to_vmem [thread:$0]  %s6393_s2, 32, %s84_s30, [#allocation9]  }
  0x2e   :  { %p5251_p13 = por %p5250_p12, %p5249_p11 }
  0x30   :  { %p5252_p0 = pnand %p5251_p13, %p5245_p10 }
  0x32   :  { %5255 = shalt.err (!%p5252_p0)
}
  0x33   :  { %106 = dma.hbm_to_vmem [thread:$0]  %s6366_s7, 16, %s104_s3, [#allocation12]  }
  0x34   :  { %s5264_s24 = scalar_lea.vmem %s127_s4, 2048  ;;  %p5269_p2 = scmp.lt.s32.totalorder %s127_s4, %s127_s4 }
  0x35   :  { %p5265_p1 = scmp.ne.s32.totalorder %s127_s4, %s5264_s24  ;;  %p5270_p3 = scmp.lt.s32.totalorder %s5264_s24, %s5264_s24 }
  0x37   :  { %p5271_p4 = por %p5270_p3, %p5269_p2 }
  0x39   :  { %p5272_p5 = pnand %p5271_p4, %p5265_p1 }
  0x3b   :  { %5275 = shalt.err (!%p5272_p5)
}
  0x3c   :  { %s5582_s30 = smov 64   ;;  %s5583_s6 = smov 4  }
  0x3d   :  { %132 = dma.hbm_to_vmem [thread:$0]  %s6369_s10, 2048, %s127_s4, [#allocation15], %s5582_s30, %s5582_s30, %s5583_s6  }
  0x3e   :  { %s5584_s26 = smov [#allocation17]   ;;  %s5585_s27 = smov [#allocation20]  }
  0x3f   :  { %s150_s2 = sshll.u32 %s5584_s26, 4  ;;  %s174_s7 = sshll.u32 %s5585_s27, 4  ;;  %s151_s2 = int_to_ptr.vmem [resolvable:$true] %s150_s2  ;;  %s175_s7 = int_to_ptr.vmem [resolvable:$true] %s174_s7 }
  0x40   :  { %s5284_s3 = scalar_lea.vmem %s151_s2, 32  ;;  %p5289_p7 = scmp.lt.s32.totalorder %s151_s2, %s151_s2 }
  0x41   :  { %p5285_p6 = scmp.ne.s32.totalorder %s151_s2, %s5284_s3  ;;  %p5290_p8 = scmp.lt.s32.totalorder %s5284_s3, %s5284_s3 }
  0x43   :  { %p5291_p9 = por %p5290_p8, %p5289_p7 }
  0x45   :  { %p5292_p10 = pnand %p5291_p9, %p5285_p6 }
  0x47   :  { %5295 = shalt.err (!%p5292_p10)
}
  0x48   :  { %s5586_s29 = smov 16   ;;  %s5587_s28 = smov 1  }
  0x49   :  { %156 = dma.hbm_to_vmem [thread:$0]  %s6371_s12, 32, %s151_s2, [#allocation18], %s5586_s29, %s5586_s29, %s5587_s28  }
  0x4a   :  { %s5304_s4 = scalar_lea.vmem %s175_s7, 4096  ;;  %p5309_p12 = scmp.lt.s32.totalorder %s175_s7, %s175_s7 }
  0x4b   :  { %p5305_p11 = scmp.ne.s32.totalorder %s175_s7, %s5304_s4  ;;  %p5310_p13 = scmp.lt.s32.totalorder %s5304_s4, %s5304_s4 }
  0x4d   :  { %p5311_p0 = por %p5310_p13, %p5309_p12 }
  0x4f   :  { %p5312_p1 = pnand %p5311_p0, %p5305_p11 }
  0x51   :  { %5315 = shalt.err (!%p5312_p1)
}
  0x52   :  { %180 = dma.hbm_to_vmem [thread:$0]  %s6373_s14, 4096, %s175_s7, [#allocation21], %s5578_s0, %s5578_s0, %s5579_s23  }
  0x53   :  { %s5588_s22 = smov [#allocation23]   ;;  %s5589_s26 = smov [#allocation26]  }
  0x54   :  { %s198_s25 = sshll.u32 %s5588_s22, 4  ;;  %s222_s27 = sshll.u32 %s5589_s26, 4  ;;  %s199_s25 = int_to_ptr.vmem [resolvable:$true] %s198_s25  ;;  %s223_s27 = int_to_ptr.vmem [resolvable:$true] %s222_s27 }
  0x55   :  { %s5324_s12 = scalar_lea.vmem %s199_s25, 4096  ;;  %p5329_p3 = scmp.lt.s32.totalorder %s199_s25, %s199_s25 }
  0x56   :  { %p5325_p2 = scmp.ne.s32.totalorder %s199_s25, %s5324_s12  ;;  %p5330_p4 = scmp.lt.s32.totalorder %s5324_s12, %s5324_s12 }
  0x58   :  { %p5331_p5 = por %p5330_p4, %p5329_p3 }
  0x5a   :  { %p5332_p6 = pnand %p5331_p5, %p5325_p2 }
  0x5c   :  { %5335 = shalt.err (!%p5332_p6)
}
  0x5d   :  { %204 = dma.hbm_to_vmem [thread:$0]  %s6375_s16, 4096, %s199_s25, [#allocation24], %s5582_s30, %s5582_s30, %s5583_s6  }
  0x5e   :  { %s5344_s14 = scalar_lea.vmem %s223_s27, 32  ;;  %p5349_p8 = scmp.lt.s32.totalorder %s223_s27, %s223_s27 }
  0x5f   :  { %p5345_p7 = scmp.ne.s32.totalorder %s223_s27, %s5344_s14  ;;  %p5350_p9 = scmp.lt.s32.totalorder %s5344_s14, %s5344_s14 }
  0x61   :  { %p5351_p10 = por %p5350_p9, %p5349_p8 }
  0x63   :  { %p5352_p11 = pnand %p5351_p10, %p5345_p7 }
  0x65   :  { %5355 = shalt.err (!%p5352_p11)
}
  0x66   :  { %228 = dma.hbm_to_vmem [thread:$0]  %s6377_s18, 32, %s223_s27, [#allocation27], %s5586_s29, %s5586_s29, %s5587_s28  }
  0x67   :  { %s5590_s10 = smov [#allocation2]   ;;  %s5591_s5 = smov [#allocation7]  }
  0x68   :  { %s46_s4 = sshll.u32 %s5590_s10, 4  ;;  %s70_s24 = sshll.u32 %s5591_s5, 4  ;;  %s47_s4 = int_to_ptr.vmem [resolvable:$true] %s46_s4  ;;  %s71_s24 = int_to_ptr.vmem [resolvable:$true] %s70_s24 }
  0x69   :  { %s5364_s16 = scalar_lea.vmem %s47_s4, 1024  ;;  %p5369_p13 = scmp.lt.s32.totalorder %s47_s4, %s47_s4 }
  0x6a   :  { %p5365_p12 = scmp.ne.s32.totalorder %s47_s4, %s5364_s16  ;;  %p5370_p0 = scmp.lt.s32.totalorder %s5364_s16, %s5364_s16 }
  0x6c   :  { %p5371_p1 = por %p5370_p0, %p5369_p13 }
  0x6e   :  { %p5372_p2 = pnand %p5371_p1, %p5365_p12 }
  0x70   :  { %5375 = shalt.err (!%p5372_p2)
}
  0x71   :  { %s6394_s25 = sld [smem:[#allocation42_spill]]  ;;  %s5384_s18 = scalar_lea.vmem %s71_s24, 512 }
  0x72   :  { %p5385_p3 = scmp.ne.s32.totalorder %s71_s24, %s5384_s18  ;;  %p5389_p4 = scmp.lt.s32.totalorder %s71_s24, %s71_s24 }
  0x73   :  { %p5390_p5 = scmp.lt.s32.totalorder %s5384_s18, %s5384_s18 }
  0x75   :  { %p5391_p6 = por %p5390_p5, %p5389_p4 }
  0x77   :  { %52 = dma.hbm_to_vmem [thread:$0]  %s6394_s25, 1024, %s47_s4, [#allocation3], %s5578_s0, %s5578_s0, %s5579_s23  }
  0x78   :  { %p5392_p7 = pnand %p5391_p6, %p5385_p3 }
  0x7a   :  { %5395 = shalt.err (!%p5392_p7)
}
  0x7b   :  { %s6395_s12 = sld [smem:[#allocation44_spill]]  ;;  %s5592_s2 = smov [#allocation10]  }
  0x7c   :  { %s93_s3 = sshll.u32 %s5592_s2, 4  ;;  %s5593_s14 = smov [#allocation13]   ;;  %s94_s3 = int_to_ptr.vmem [resolvable:$true] %s93_s3 }
  0x7d   :  { %s112_s7 = sshll.u32 %s5593_s14, 4  ;;  %s5404_s1 = scalar_lea.vmem %s94_s3, 16  ;;  %s113_s7 = int_to_ptr.vmem [resolvable:$true] %s112_s7 }
  0x7e   :  { %p5405_p8 = scmp.ne.s32.totalorder %s94_s3, %s5404_s1  ;;  %s5408_s10 = scalar_lea.vmem %s94_s3, 32 }
  0x7f   :  { %p5409_p9 = scmp.lt.s32.totalorder %s94_s3, %s94_s3  ;;  %p5410_p10 = scmp.lt.s32.totalorder %s5408_s10, %s5404_s1 }
  0x81   :  { %76 = dma.hbm_to_vmem [thread:$0]  %s6395_s12, 512, %s71_s24, [#allocation6], %s5578_s0, %s5578_s0, %s5579_s23  }
  0x82   :  { %p5411_p11 = por %p5410_p10, %p5409_p9 }
  0x84   :  { %p5412_p12 = pnand %p5411_p11, %p5405_p8 }
  0x86   :  { %5415 = shalt.err (!%p5412_p12)
}
  0x87   :  { %s6396_s16 = sld [smem:[#allocation46_spill]]  ;;  %s5424_s6 = scalar_lea.vmem %s113_s7, 6144 }
  0x88   :  { %p5425_p13 = scmp.ne.s32.totalorder %s113_s7, %s5424_s6  ;;  %p5429_p0 = scmp.lt.s32.totalorder %s113_s7, %s113_s7 }
  0x89   :  { %p5430_p1 = scmp.lt.s32.totalorder %s5424_s6, %s5424_s6 }
  0x8b   :  { %p5431_p2 = por %p5430_p1, %p5429_p0 }
  0x8d   :  { %96 = dma.hbm_to_vmem [thread:$0]  %s6396_s16, 16, %s94_s3, [#allocation9]  }
  0x8e   :  { %p5432_p3 = pnand %p5431_p2, %p5425_p13 }
  0x90   :  { %5435 = shalt.err (!%p5432_p3)
}
  0x91   :  { %s5594_s0 = smov 192   ;;  %s5595_s23 = smov 12  }
  0x92   :  { %118 = dma.hbm_to_vmem [thread:$0]  %s6367_s8, 6144, %s113_s7, [#allocation12], %s5594_s0, %s5594_s0, %s5595_s23  }
  0x93   :  { %s5596_s25 = smov [#allocation16]   ;;  %s5597_s26 = smov [#allocation19]  }
  0x94   :  { %s138_s18 = sshll.u32 %s5596_s25, 4  ;;  %s162_s27 = sshll.u32 %s5597_s26, 4  ;;  %s139_s18 = int_to_ptr.vmem [resolvable:$true] %s138_s18  ;;  %s163_s27 = int_to_ptr.vmem [resolvable:$true] %s162_s27 }
  0x95   :  { %s5444_s12 = scalar_lea.vmem %s139_s18, 32  ;;  %p5449_p5 = scmp.lt.s32.totalorder %s139_s18, %s139_s18 }
  0x96   :  { %p5445_p4 = scmp.ne.s32.totalorder %s139_s18, %s5444_s12  ;;  %p5450_p6 = scmp.lt.s32.totalorder %s5444_s12, %s5444_s12 }
  0x98   :  { %p5451_p7 = por %p5450_p6, %p5449_p5 }
  0x9a   :  { %p5452_p8 = pnand %p5451_p7, %p5445_p4 }
  0x9c   :  { %5455 = shalt.err (!%p5452_p8)
}
  0x9d   :  { %144 = dma.hbm_to_vmem [thread:$0]  %s6370_s11, 32, %s139_s18, [#allocation15], %s5586_s29, %s5586_s29, %s5587_s28  }
  0x9e   :  { %s5464_s8 = scalar_lea.vmem %s163_s27, 32  ;;  %p5469_p10 = scmp.lt.s32.totalorder %s163_s27, %s163_s27 }
  0x9f   :  { %p5465_p9 = scmp.ne.s32.totalorder %s163_s27, %s5464_s8  ;;  %p5470_p11 = scmp.lt.s32.totalorder %s5464_s8, %s5464_s8 }
  0xa1   :  { %p5471_p12 = por %p5470_p11, %p5469_p10 }
  0xa3   :  { %p5472_p13 = pnand %p5471_p12, %p5465_p9 }
  0xa5   :  { %5475 = shalt.err (!%p5472_p13)
}
  0xa6   :  { %168 = dma.hbm_to_vmem [thread:$0]  %s6372_s13, 32, %s163_s27, [#allocation18], %s5586_s29, %s5586_s29, %s5587_s28  }
  0xa7   :  { %s5598_s1 = smov [#allocation22]  }
  0xa8   :  { %s186_s10 = sshll.u32 %s5598_s1, 4  ;;  %s187_s10 = int_to_ptr.vmem [resolvable:$true] %s186_s10 }
  0xa9   :  { %s5484_s4 = scalar_lea.vmem %s187_s10, 64  ;;  %p5489_p1 = scmp.lt.s32.totalorder %s187_s10, %s187_s10 }
  0xaa   :  { %p5485_p0 = scmp.ne.s32.totalorder %s187_s10, %s5484_s4  ;;  %p5490_p2 = scmp.lt.s32.totalorder %s5484_s4, %s5484_s4 }
  0xac   :  { %p5491_p3 = por %p5490_p2, %p5489_p1 }
  0xae   :  { %p5492_p4 = pnand %p5491_p3, %p5485_p0 }
  0xb0   :  { %5495 = shalt.err (!%p5492_p4)
}
  0xb1   :  { %s5599_s11 = smov 32   ;;  %s5600_s5 = smov 2  }
  0xb2   :  { %192 = dma.hbm_to_vmem [thread:$0]  %s6374_s15, 64, %s187_s10, [#allocation21], %s5599_s11, %s5599_s11, %s5600_s5  }
  0xb3   :  { %s5601_s0 = smov [#allocation25]   ;;  %s5602_s23 = smov [#allocation28]  }
  0xb4   :  { %s210_s13 = sshll.u32 %s5601_s0, 4  ;;  %s234_s24 = sshll.u32 %s5602_s23, 4  ;;  %s211_s13 = int_to_ptr.vmem [resolvable:$true] %s210_s13  ;;  %s235_s24 = int_to_ptr.vmem [resolvable:$true] %s234_s24 }
  0xb5   :  { %s5504_s22 = scalar_lea.vmem %s211_s13, 32  ;;  %p5509_p6 = scmp.lt.s32.totalorder %s211_s13, %s211_s13 }
  0xb6   :  { %p5505_p5 = scmp.ne.s32.totalorder %s211_s13, %s5504_s22  ;;  %p5510_p7 = scmp.lt.s32.totalorder %s5504_s22, %s5504_s22 }
  0xb8   :  { %p5511_p8 = por %p5510_p7, %p5509_p6 }
  0xba   :  { %p5512_p9 = pnand %p5511_p8, %p5505_p5 }
  0xbc   :  { %5515 = shalt.err (!%p5512_p9)
}
  0xbd   :  { %216 = dma.hbm_to_vmem [thread:$0]  %s6376_s17, 32, %s211_s13, [#allocation24], %s5586_s29, %s5586_s29, %s5587_s28  }
  0xbe   :  { %s5524_s15 = scalar_lea.vmem %s235_s24, 32  ;;  %p5529_p11 = scmp.lt.s32.totalorder %s235_s24, %s235_s24 }
  0xbf   :  { %p5525_p10 = scmp.ne.s32.totalorder %s235_s24, %s5524_s15  ;;  %p5530_p12 = scmp.lt.s32.totalorder %s5524_s15, %s5524_s15 }
  0xc1   :  { %p5531_p13 = por %p5530_p12, %p5529_p11 }
  0xc3   :  { %p5532_p0 = pnand %p5531_p13, %p5525_p10 }
  0xc5   :  { %5535 = shalt.err (!%p5532_p0)
}
  0xc6   :  { %240 = dma.hbm_to_vmem [thread:$0]  %s6378_s19, 32, %s235_s24, [#allocation27], %s5586_s29, %s5586_s29, %s5587_s28  }
  0xc7   :  { %5556 = dma.done.wait [#allocation3], 1024  }
  0xc8   :  { %5557 = vsyncadd [#allocation3], 4294966272 }
  0xc9   :  { %5558 = dma.done.wait [#allocation6], 2176  }
  0xca   :  { %5559 = vsyncadd [#allocation6], 4294965120 }
  0xcb   :  { %5560 = dma.done.wait [#allocation9], 48  }
  0xcc   :  { %5561 = vsyncadd [#allocation9], 4294967248 }
  0xcd   :  { %5562 = dma.done.wait [#allocation12], 6160  }
  0xce   :  { %5563 = vsyncadd [#allocation12], 4294961136 }
  0xcf   :  { %5564 = dma.done.wait [#allocation15], 2080  }
  0xd0   :  { %5565 = vsyncadd [#allocation15], 4294965216 }
  0xd1   :  { %5566 = dma.done.wait [#allocation18], 64  }
  0xd2   :  { %5567 = vsyncadd [#allocation18], 4294967232 }
  0xd3   :  { %5568 = dma.done.wait [#allocation21], 4160  }
  0xd4   :  { %5569 = vsyncadd [#allocation21], 4294963136 }
  0xd5   :  { %5570 = dma.done.wait [#allocation24], 4128  }
  0xd6   :  { %5571 = vsyncadd [#allocation24], 4294963168 }
  0xd7   :  { %5572 = dma.done.wait [#allocation27], 64  }
  0xd8   :  { %5573 = vsyncadd [#allocation27], 4294967232  ;;  %v5603_v0 = vmov 0   ;;  %vm365_vm0 = vcmask 1043456   ;;  %s6397_s29 = sld [smem:[#allocation40_spill]]  ;;  %v324_v3 = vld [vmem:[#allocation5 + $0x58] sm:$0xff]  ;;  %v299_v21 = vlaneseq }
  0xd9   :  { %4888 = vset.pattern.permute.xlu0 %v5603_v0  ;;  %4889 = vset.pattern.permute.xlu1 %v5603_v0  ;;  %v325_v2 = vld [vmem:[#allocation5 + $0x60] sm:$0xf]  ;;  %v323_v5 = vld [vmem:[#allocation5 + $0x50] sm:$0xff]  ;;  %v322_v6 = vld [vmem:[#allocation5 + $0x48] sm:$0xff]  ;;  %s6398_s8 = sld [smem:[#allocation41_spill]]  ;;  %v5604_v20 = vmov 0.0  }
  0xda   :  { %711 = vmatprep.mubr.bf16.mxu1 %v5603_v0  ;;  %4535 = vmatprep.subr.msk.mxu0 %vm365_vm0, %v325_v2  ;;  %v321_v7 = vld [vmem:[#allocation5 + $0x40] sm:$0xff]  ;;  %v320_v10 = vld [vmem:[#allocation5 + $0x38] sm:$0xff]  ;;  %v319_v12 = vld [vmem:[#allocation5 + $0x30] sm:$0xff]  ;;  %v300_v22 = vand.u32 127, %v299_v21  ;;  %vm358_vm1 = vcmask 818176   ;;  %v5832_v28 = vshrl.u32 %v299_v21, 7 }
  0xdb   :  { %4536 = vmatpush3.msk.msra.mxu0 %vm365_vm0, %v325_v2  ;;  %v318_v14 = vld [vmem:[#allocation5 + $0x28] sm:$0xff]  ;;  %v317_v15 = vld [vmem:[#allocation5 + $0x20] sm:$0xff]  ;;  %v316_v16 = vld [vmem:[#allocation5 + $0x18] sm:$0xff]  ;;  %vm5605_vm4 = vmmov 0   ;;  %vm808_vm5 = vcmask 261120   ;;  %s5606_s4 = smov 96  }
  0xdc   :  { %4537 = vmatprep.subr.mxu0 %v324_v3  ;;  %v315_v17 = vld [vmem:[#allocation5 + $0x10] sm:$0xff]  ;;  %v314_v18 = vld [vmem:[#allocation5 + $0x8] sm:$0xff]  ;;  %v313_v19 = vld [vmem:[#allocation5] sm:$0xff]  ;;  %v5835_v31 = vsub.s32 1, %v5832_v28  ;;  %v5838_v33 = vsub.s32 0, %v5832_v28  ;;  %vm1193_vm6 = vcmask 64512  }
  0xdd   :  { %4538 = vmatpush3.msra.mxu0 %v324_v3  ;;  %v327_v27 = vld [vmem:[#allocation8] sm:$0x3]  ;;  %v4922_v51 = vld [vmem:[#allocation13 + $0xa8] ss:$12 sps:$4 sm:$0xff]   ;;  %v4923_v52 = vld [vmem:[#allocation13 + $0xb0] ss:$12 sps:$4 sm:$0xff]  }
  0xde   :  { %v297_v1 = vld [vmem:[%s6397_s29] sm:$0xff]  ;;  %v298_v4 = vld [vmem:[%s6397_s29 + $0x8] sm:$0xff]  ;;  %4539 = vmatprep.subr.mxu0 %v323_v5  ;;  %v333_v29 = vrot.slane %v327_v27, 7  ;;  %v355_v36 = vrot.slane %v327_v27, %v5838_v33  ;;  %vm1671_vm7 = vcmask 523264   ;;  %vm1673_vm8 = vcmask 785408   ;;  %s5607_s28 = smov [#allocation29]  }
  0xdf   :  { %302 = vperm.xlu0 %4888, %v297_v1   ;;  %v328_v8 = vld [vmem:[%s6398_s8] sm:$0xff]  ;;  %v329_v9 = vld [vmem:[%s6398_s8 + $0x8] sm:$0xff]  ;;  %4540 = vmatpush3.msra.mxu0 %v323_v5  ;;  %vm4040_vm9 = vcmask 1040384   ;;  %s4161_s12 = sshll.u32 %s5607_s28, 4  ;;  %s4162_s12 = int_to_ptr.vmem [resolvable:$true] %s4161_s12 }
  0xe0   :  { %v330_v11 = vcvt.s32.f32 %v328_v8  ;;  %4541 = vmatprep.subr.mxu0 %v322_v6  ;;  %v331_v13 = vcvt.s32.f32 %v329_v9  ;;  %v335_v32 = vsub.f32 %v327_v27, %v333_v29  ;;  %v326_v39 = vld [vmem:[#allocation7] sm:$0xff]  ;;  %v4932_v59 = vld [vmem:[#allocation13 + $0x64] ss:$12 sps:$4 sm:$0xff]   ;;  %v4935_v61 = vld [vmem:[#allocation13 + $0x68] ss:$12 sps:$4 sm:$0xff]   ;;  %s5536_s2 = scalar_lea.vmem %s4162_s12, 32  ;;  %p5541_p2 = scmp.lt.s32.totalorder %s4162_s12, %s4162_s12 }
  0xe1   :  { %4542 = vmatpush3.msra.mxu0 %v322_v6  ;;  %v4920_v50 = vld [vmem:[#allocation13 + $0xac] ss:$12 sps:$4 sm:$0xff]   ;;  %v4924_v53 = vld [vmem:[#allocation13 + $0x94] ss:$12 sps:$4 sm:$0xff]   ;;  %v4926_v54 = vld [vmem:[#allocation13 + $0x90] ss:$12 sps:$4 sm:$0xff]   ;;  %p5537_p1 = scmp.ne.s32.totalorder %s4162_s12, %s5536_s2  ;;  %p5542_p3 = scmp.lt.s32.totalorder %s5536_s2, %s5536_s2 }
  0xe2   :  { %338 = vperm.xlu1 %4889, %v330_v11   ;;  %4543 = vmatprep.subr.mxu0 %v321_v7  ;;  %v349_v34 = vrot.slane %v335_v32, %v5835_v31  ;;  %v4927_v55 = vld [vmem:[#allocation13 + $0x98] ss:$12 sps:$4 sm:$0xff]   ;;  %v4928_v56 = vld [vmem:[#allocation13 + $0x7c] ss:$12 sps:$4 sm:$0xff]   ;;  %v4931_v58 = vld [vmem:[#allocation13 + $0x80] ss:$12 sps:$4 sm:$0xff]  }
  0xe3   :  { %305 = vperm.xlu0 %4888, %v298_v4   ;;  %4544 = vmatpush3.msra.mxu0 %v321_v7  ;;  %v4930_v57 = vld [vmem:[#allocation13 + $0x78] ss:$12 sps:$4 sm:$0xff]   ;;  %v4934_v60 = vld [vmem:[#allocation13 + $0x60] ss:$12 sps:$4 sm:$0xff]   ;;  %v4938_v63 = vld [vmem:[#allocation13 + $0x48] ss:$12 sps:$4 sm:$0xff]   ;;  %p5543_p4 = por %p5542_p3, %p5541_p2 }
  0xe4   :  { %4545 = vmatprep.subr.mxu0 %v320_v10  ;;  %679 = vmatprep.subr.bf16.mxu1 %v4920_v50  ;;  %v4936_v62 = vld [vmem:[#allocation13 + $0x4c] ss:$12 sps:$4 sm:$0xff]   ;;  %v4939_v1 = vld [vmem:[#allocation13 + $0x50] ss:$12 sps:$4 sm:$0xff]   ;;  %v4940_v2 = vld [vmem:[#allocation13 + $0x34] ss:$12 sps:$4 sm:$0xff]  }
  0xe5   :  { %4546 = vmatpush3.msra.mxu0 %v320_v10  ;;  %680 = vmatpush1.bf16.msra.mxu1 %v4922_v51  ;;  %v4942_v3 = vld [vmem:[#allocation13 + $0x30] ss:$12 sps:$4 sm:$0xff]   ;;  %v4943_v4 = vld [vmem:[#allocation13 + $0x38] ss:$12 sps:$4 sm:$0xff]   ;;  %v4947_v7 = vld [vmem:[#allocation13 + $0x20] ss:$12 sps:$4 sm:$0xff]   ;;  %p5544_p5 = pnand %p5543_p4, %p5537_p1 }
  0xe6   :  { %343 = vperm.xlu1 %4889, %v331_v13   ;;  %4547 = vmatprep.subr.mxu0 %v319_v12  ;;  %v4944_v5 = vld [vmem:[#allocation13 + $0x1c] ss:$12 sps:$4 sm:$0xff]   ;;  %v4946_v6 = vld [vmem:[#allocation13 + $0x18] ss:$12 sps:$4 sm:$0xff]   ;;  %v4950_v9 = vld [vmem:[#allocation13] ss:$12 sps:$4 sm:$0xff]  }
  0xe7   :  { %4548 = vmatpush3.msra.mxu0 %v319_v12  ;;  %681 = vmatprep.subr.bf16.mxu1 %v4924_v53  ;;  %v4948_v8 = vld [vmem:[#allocation13 + $0x4] ss:$12 sps:$4 sm:$0xff]   ;;  %v4951_v10 = vld [vmem:[#allocation13 + $0x8] ss:$12 sps:$4 sm:$0xff]  }
  0xe8   :  { %4549 = vmatprep.subr.mxu0 %v318_v14 }
  0xe9   :  { %4550 = vmatpush3.msra.mxu0 %v318_v14  ;;  %682 = vmatpush1.bf16.msra.mxu1 %v4926_v54 }
  0xea   :  { %4551 = vmatprep.subr.mxu0 %v317_v15  ;;  %683 = vmatprep.subr.bf16.mxu1 %v4928_v56 }
  0xeb   :  { %4552 = vmatpush3.msra.mxu0 %v317_v15 }
  0xec   :  { %4553 = vmatprep.subr.mxu0 %v316_v16 }
  0xed   :  { %4554 = vmatpush3.msra.mxu0 %v316_v16  ;;  %684 = vmatpush1.bf16.msra.mxu1 %v4930_v57 }
  0xee   :  { %4555 = vmatprep.subr.mxu0 %v315_v17  ;;  %685 = vmatprep.subr.bf16.mxu1 %v4932_v59 }
  0xef   :  { %4556 = vmatpush3.msra.mxu0 %v315_v17 }
  0xf0   :  { %4557 = vmatprep.subr.mxu0 %v314_v18 }
  0xf1   :  { %4558 = vmatpush3.msra.mxu0 %v314_v18  ;;  %686 = vmatpush1.bf16.msra.mxu1 %v4934_v60 }
  0xf2   :  { %4559 = vmatprep.subr.mxu0 %v313_v19  ;;  %687 = vmatprep.subr.bf16.mxu1 %v4936_v62 }
  0xf3   :  { %4560 = vmatpush3.msra.mxu0 %v313_v19 }
  0xf4   :  { %4564 = vmatprep.subr.bf16.mxu0 %v5604_v20 }
  0xf5   :  { %688 = vmatpush1.bf16.msra.mxu1 %v4938_v63 }
  0xf6   :  { %689 = vmatprep.subr.bf16.mxu1 %v4940_v2 }
  0xf9   :  { %690 = vmatpush1.bf16.msra.mxu1 %v4942_v3 }
  0xfa   :  { %691 = vmatprep.subr.bf16.mxu1 %v4944_v5 }
  0xfd   :  { %692 = vmatpush1.bf16.msra.mxu1 %v4946_v6 }
  0xfe   :  { %693 = vmatprep.subr.bf16.mxu1 %v4948_v8 }
 0x101   :  { %694 = vmatpush1.bf16.msra.mxu1 %v4950_v9 }
 0x102   :  { %4584 = vmatprep.subr.bf16.mxu1 %v5604_v20 }
 0x15a   :  { %v303_v23 = vpop.permute.xlu0 %302 }
 0x15b   :  { %vm307_vm2 = vcmp.eq.s32.totalorder %v303_v23, %v300_v22 }
 0x15c   :  { %v4178_v24 = vsel %vm307_vm2, 1.0, %v5604_v20 }
 0x15d   :  { %4561 = vmatprep.mubr.msk.f32.mxu0 %vm358_vm1, %v4178_v24  ;;  %v339_v30 = vpop.permute.xlu1 %338 }
 0x15e   :  { %v306_v25 = vpop.permute.xlu0 %305  ;;  %v350_v38 = vmul.f32 %v349_v34, %v339_v30 }
 0x15f   :  { %vm308_vm3 = vcmp.eq.s32.totalorder %v306_v25, %v300_v22 }
 0x160   :  { %v4179_v26 = vsel %vm308_vm3, 1.0, %v5604_v20  ;;  %v356_v42 = vadd.f32 %v355_v36, %v350_v38 }
 0x161   :  { %4562 = vmatmul.mubr.msk.f32.vlgmr.msra.gmra.mxu0 %vm358_vm1, %v4179_v26  ;;  %v344_v35 = vpop.permute.xlu1 %343 }
 0x162   :  { %v351_v37 = vmul.f32 %v349_v34, %v344_v35  ;;  %4565 = vmatpush3.bf16.msra.mxu0 %v4923_v52  ;;  %4580 = vmatprep.mubr.msk.bf16.mxu0 %vm5605_vm4, %v5604_v20  ;;  %v4183_v34 = vld [vmem:[#allocation10] ss:$0 sm:$0xff] }
 0x163   :  { %4566 = vmatprep.subr.bf16.mxu0 %v5604_v20 }
 0x164   :  { %v357_v40 = vadd.f32 %v355_v36, %v351_v37 }
 0x166   :  { %4567 = vmatpush3.bf16.msra.mxu0 %v4927_v55 }
 0x167   :  { %4568 = vmatprep.subr.bf16.mxu0 %v5604_v20 }
 0x16a   :  { %4569 = vmatpush3.bf16.msra.mxu0 %v4931_v58 }
 0x16b   :  { %4570 = vmatprep.subr.bf16.mxu0 %v5604_v20 }
 0x16e   :  { %4571 = vmatpush3.bf16.msra.mxu0 %v4935_v61 }
 0x16f   :  { %4572 = vmatprep.subr.bf16.mxu0 %v5604_v20 }
 0x172   :  { %4573 = vmatpush3.bf16.msra.mxu0 %v4939_v1 }
 0x173   :  { %4574 = vmatprep.subr.bf16.mxu0 %v5604_v20 }
 0x176   :  { %4575 = vmatpush3.bf16.msra.mxu0 %v4943_v4 }
 0x177   :  { %4576 = vmatprep.subr.bf16.mxu0 %v5604_v20 }
 0x17a   :  { %4577 = vmatpush3.bf16.msra.mxu0 %v4947_v7 }
 0x17b   :  { %4578 = vmatprep.subr.bf16.mxu0 %v5604_v20 }
 0x17e   :  { %4579 = vmatpush3.bf16.msra.mxu0 %v4951_v10 }
 0x17f   :  { %4608 = vmatprep.subr.bf16.mxu0 %v5604_v20 }
 0x221   :  { %v4563_v41 = vpop.f32.mrf.mxu0 }
 0x222   :  { %v441_v43 = vadd.f32 %v4563_v41, %v326_v39 }
 0x223   :  { %v435_v44 = vpop.f32.mrf.mxu0 }
 0x224   :  { %v5842_v45 = vadd.f32 %v441_v43, %v357_v40  ;;  %v436_v46 = vadd.f32 %v435_v44, %v326_v39  ;;  %v4184_v39 = vld [vmem:[#allocation11] ss:$0 sm:$0xff]  ;;  %v546_v44 = vsub.s32 2, %v5832_v28 }
 0x226   :  { %v5844_v47 = vadd.f32 %v436_v46, %v356_v42  ;;  %450 = vadd.xlane.f32.xlu1 %v5842_v45  ;;  %v456_v49 = vmul.f32 %v5842_v45, %v5842_v45 }
 0x228   :  { %448 = vadd.xlane.f32.xlu0 %v5844_v47  ;;  %v455_v48 = vmul.f32 %v5844_v47, %v5844_v47 }
 0x22c   :  { %457 = vadd.xlane.f32.xlu0 %v455_v48 }
 0x230   :  { %459 = vadd.xlane.f32.xlu0 %v456_v49 }
 0x2af   :  { %v451_v13 = vpop.xlane.xlu1 %450 }
 0x2b0   :  { %v454_v15 = vmul.f32 0.0078125, %v451_v13 }
 0x2b1   :  { %v449_v11 = vpop.xlane.xlu0 %448 }
 0x2b2   :  { %v453_v12 = vmul.f32 0.0078125, %v449_v11  ;;  %v464_v21 = vmul.f32 %v454_v15, %v454_v15  ;;  %v470_v35 = vsub.f32 %v5842_v45, %v454_v15  ;;  %v534_v45 = vld [vmem:[%s6368_s9] sm:$0x7] }
 0x2b3   :  { %v539_v48 = vrot.slane %v534_v45, %v5838_v33  ;;  %v547_v49 = vrot.slane %v534_v45, %v546_v44  ;;  %v543_v52 = vrot.slane %v534_v45, %v5835_v31 }
 0x2b4   :  { %v463_v16 = vmul.f32 %v453_v12, %v453_v12  ;;  %v469_v29 = vsub.f32 %v5844_v47, %v453_v12 }
 0x2b5   :  { %v458_v14 = vpop.xlane.xlu0 %457 }
 0x2b6   :  { %v461_v17 = vmul.f32 0.0078125, %v458_v14 }
 0x2b8   :  { %v465_v18 = vsub.f32 %v461_v17, %v463_v16 }
 0x2b9   :  { %v460_v19 = vpop.xlane.xlu0 %459 }
 0x2ba   :  { %v467_v22 = vmax.f32 %v465_v18, 0.0  ;;  %v462_v23 = vmul.f32 0.0078125, %v460_v19 }
 0x2bc   :  { %v471_v24 = vadd.f32 1e-12, %v467_v22  ;;  %v466_v25 = vsub.f32 %v462_v23, %v464_v21 }
 0x2be   :  { %5088 = vrsqrt.f32 %v471_v24  ;;  %v468_v26 = vmax.f32 %v466_v25, 0.0 }
 0x2c0   :  { %v472_v27 = vadd.f32 1e-12, %v468_v26 }
 0x2c2   :  { %5090 = vrsqrt.f32 %v472_v27 }
 0x2cb   :  { %v5089_v30 = vpop.eup %5088 }
 0x2cc   :  { %v475_v32 = vmul.f32 %v5089_v30, %v469_v29  ;;  %v493_v29 = vld [vmem:[#allocation2] sm:$0xff] }
 0x2ce   :  { %v483_v38 = vmul.f32 %v4183_v34, %v475_v32 }
 0x2cf   :  { %v5091_v36 = vpop.eup %5090 }
 0x2d0   :  { %v476_v37 = vmul.f32 %v5091_v36, %v470_v35  ;;  %v5865_v41 = vadd.f32 %v4184_v39, %v483_v38 }
 0x2d2   :  { %v484_v40 = vmul.f32 %v4183_v34, %v476_v37 }
 0x2d4   :  { %v5867_v42 = vadd.f32 %v4184_v39, %v484_v40 }
 0x2d6   :  { %v501_v43 = vpack.c.bf16 %v5867_v42, %v5865_v41 }
 0x2d8   :  { %712 = vmatmul.mubr.bf16.vlgmr.msra.gmra.mxu1 %v501_v43  ;;  %4581 = vmatmul.mubr.bf16.vlgmr.msra.gmra.mxu0 %v501_v43 }
 0x2d9   :  { %4586 = vmatprep.mubr.msk.bf16.mxu1 %vm5605_vm4, %v5604_v20  ;;  %4610 = vmatprep.mubr.msk.bf16.mxu0 %vm5605_vm4, %v5604_v20 }
 0x398   :  { %v713_v46 = vpop.f32.mrf.mxu1  ;;  %v756_v47 = vpop.f32.mrf.mxu0 }
 0x399   :  { %v714_v55 = vadd.f32 %v713_v46, %v539_v48  ;;  %v757_v56 = vadd.f32 %v756_v47, %v547_v49  ;;  %v494_v46 = vld [vmem:[#allocation2 + $0x8] sm:$0xff] }
 0x39a   :  { %v715_v50 = vpop.f32.mrf.mxu1  ;;  %v4582_v51 = vpop.f32.mrf.mxu0 }
 0x39b   :  { %v716_v61 = vadd.f32 %v715_v50, %v543_v52  ;;  %v497_v50 = vld [vmem:[#allocation2 + $0x20] sm:$0xff] }
 0x39c   :  { %v717_v53 = vpop.f32.mrf.mxu1  ;;  %v759_v54 = vpop.f32.mrf.mxu0 }
 0x39d   :  { %v718_v57 = vadd.f32 %v717_v53, %v539_v48  ;;  %v760_v58 = vadd.f32 %v759_v54, %v547_v49 }
 0x39e   :  { %v719_v59 = vpop.f32.mrf.mxu1  ;;  %v4583_v60 = vpop.f32.mrf.mxu0 }
 0x39f   :  { %v763_v62 = vpack.c.bf16 %v718_v57, %v714_v55  ;;  %v5883_v63 = vpack.c.bf16 %v760_v58, %v757_v56  ;;  %v720_v1 = vadd.f32 %v719_v59, %v543_v52  ;;  %v495_v57 = vld [vmem:[#allocation2 + $0x10] sm:$0xff] }
 0x3a1   :  { %v764_v2 = vpack.c.bf16 %v720_v1, %v716_v61  ;;  %767 = vrot.lane.b32.xlu0 %v763_v62, %s5606_s4  ;;  %v773_v6 = vrot.slane %v763_v62, 4  ;;  %v1294_v23 = vsel %vm365_vm0, %v5883_v63, 0 }
 0x3a3   :  { %781 = vrot.lane.b32.xlu1 %v764_v2, %s5606_s4  ;;  %v813_v3 = vsel %vm808_vm5, %v764_v2, 0  ;;  %v787_v4 = vrot.slane %v764_v2, 4 }
 0x3a4   :  { %4585 = vmatpush3.bf16.xpose.msra.mxu1 %v813_v3 }
 0x3a5   :  { %785 = vrot.lane.b32.xlu0 %v764_v2, %s5599_s11  ;;  %v997_v5 = vsel %vm808_vm5, %v787_v4, 0  ;;  %4590 = vmatprep.subr.bf16.mxu1 %v5604_v20 }
 0x3a6   :  { %4609 = vmatpush3.bf16.xpose.msra.mxu0 %v997_v5  ;;  %v496_v5 = vld [vmem:[#allocation2 + $0x18] sm:$0xff] }
 0x3a7   :  { %783 = vrot.lane.b32.xlu1 %v764_v2, %s5582_s30  ;;  %4620 = vmatprep.subr.bf16.mxu0 %v5604_v20 }
 0x3a9   :  { %788 = vrot.lane.b32.xlu0 %v787_v4, %s5606_s4 }
 0x3ab   :  { %769 = vrot.lane.b32.xlu1 %v763_v62, %s5582_s30  ;;  %4587 = vmatmul.mubr.msk.bf16.vlgmr.msra.gmra.mxu1 %vm808_vm5, %v763_v62 }
 0x3ac   :  { %4592 = vmatprep.mubr.msk.bf16.mxu1 %vm5605_vm4, %v5604_v20 }
 0x3ad   :  { %774 = vrot.lane.b32.xlu0 %v773_v6, %s5606_s4  ;;  %4611 = vmatmul.mubr.msk.bf16.vlgmr.msra.gmra.mxu0 %vm808_vm5, %v773_v6 }
 0x3ae   :  { %4622 = vmatprep.mubr.msk.bf16.mxu0 %vm5605_vm4, %v5604_v20 }
 0x3af   :  { %771 = vrot.lane.b32.xlu1 %v763_v62, %s5599_s11 }
 0x3b1   :  { %776 = vrot.lane.b32.xlu0 %v773_v6, %s5582_s30 }
 0x3b3   :  { %790 = vrot.lane.b32.xlu1 %v787_v4, %s5582_s30 }
 0x3b7   :  { %792 = vrot.lane.b32.xlu1 %v787_v4, %s5599_s11 }
 0x3bb   :  { %778 = vrot.lane.b32.xlu1 %v773_v6, %s5599_s11  ;;  %v499_v6 = vld [vmem:[#allocation2 + $0x30] sm:$0xff] }
 0x413   :  { %v768_v7 = vpop.permute.xlu0 %767 }
 0x415   :  { %v782_v8 = vpop.permute.xlu1 %781 }
 0x416   :  { %v859_v9 = vsel %vm808_vm5, %v782_v8, 0 }
 0x417   :  { %4591 = vmatpush3.bf16.xpose.msra.mxu1 %v859_v9  ;;  %v786_v11 = vpop.permute.xlu0 %785 }
 0x418   :  { %4596 = vmatprep.subr.bf16.mxu1 %v5604_v20  ;;  %v951_v17 = vsel %vm808_vm5, %v786_v11, 0 }
 0x419   :  { %v784_v10 = vpop.permute.xlu1 %783 }
 0x41a   :  { %v905_v13 = vsel %vm808_vm5, %v784_v10, 0 }
 0x41b   :  { %v789_v14 = vpop.permute.xlu0 %788 }
 0x41c   :  { %v1043_v22 = vsel %vm808_vm5, %v789_v14, 0 }
 0x41d   :  { %v770_v12 = vpop.permute.xlu1 %769 }
 0x41e   :  { %4593 = vmatmul.mubr.msk.bf16.vlgmr.msra.gmra.mxu1 %vm808_vm5, %v768_v7 }
 0x41f   :  { %4597 = vmatpush3.bf16.xpose.msra.mxu1 %v905_v13  ;;  %4598 = vmatprep.mubr.msk.bf16.mxu1 %vm5605_vm4, %v5604_v20  ;;  %v775_v19 = vpop.permute.xlu0 %774 }
 0x420   :  { %4602 = vmatprep.subr.bf16.mxu1 %v5604_v20 }
 0x421   :  { %v772_v15 = vpop.permute.xlu1 %771 }
 0x423   :  { %v777_v21 = vpop.permute.xlu0 %776 }
 0x425   :  { %v791_v16 = vpop.permute.xlu1 %790 }
 0x426   :  { %v1089_v18 = vsel %vm808_vm5, %v791_v16, 0  ;;  %4599 = vmatmul.mubr.msk.bf16.vlgmr.msra.gmra.mxu1 %vm808_vm5, %v770_v12 }
 0x427   :  { %4603 = vmatpush3.bf16.xpose.msra.mxu1 %v951_v17  ;;  %4621 = vmatpush3.bf16.xpose.msra.mxu0 %v1089_v18 }
 0x428   :  { %4604 = vmatprep.mubr.msk.bf16.mxu1 %vm5605_vm4, %v5604_v20  ;;  %4614 = vmatprep.subr.bf16.mxu1 %v5604_v20 }
 0x429   :  { %4632 = vmatprep.subr.bf16.mxu0 %v5604_v20  ;;  %v793_v24 = vpop.permute.xlu1 %792 }
 0x42a   :  { %v1135_v25 = vsel %vm808_vm5, %v793_v24, 0 }
 0x42d   :  { %v779_v26 = vpop.permute.xlu1 %778 }
 0x42e   :  { %4605 = vmatmul.mubr.msk.bf16.vlgmr.msra.gmra.mxu1 %vm808_vm5, %v772_v15  ;;  %4623 = vmatmul.mubr.msk.bf16.vlgmr.msra.gmra.mxu0 %vm808_vm5, %v777_v21  ;;  %v498_v21 = vld [vmem:[#allocation2 + $0x28] sm:$0xff] }
 0x42f   :  { %4615 = vmatpush3.bf16.xpose.msra.mxu1 %v1043_v22  ;;  %4633 = vmatpush3.bf16.msra.mxu0 %v1294_v23 }
 0x430   :  { %4616 = vmatprep.mubr.msk.bf16.mxu1 %vm5605_vm4, %v5604_v20  ;;  %4626 = vmatprep.subr.bf16.mxu1 %v5604_v20 }
 0x431   :  { %4634 = vmatprep.mubr.msk.bf16.mxu0 %vm5605_vm4, %v5604_v20  ;;  %4644 = vmatprep.subr.bf16.mxu0 %v5604_v20 }
 0x436   :  { %4617 = vmatmul.mubr.msk.bf16.vlgmr.msra.gmra.mxu1 %vm808_vm5, %v775_v19 }
 0x437   :  { %4627 = vmatpush3.bf16.xpose.msra.mxu1 %v1135_v25  ;;  %4628 = vmatprep.mubr.msk.bf16.mxu1 %vm5605_vm4, %v5604_v20 }
 0x438   :  { %4638 = vmatprep.subr.bf16.mxu1 %v5604_v20 }
 0x43e   :  { %4629 = vmatmul.mubr.msk.bf16.vlgmr.msra.gmra.mxu1 %vm808_vm5, %v779_v26 }
 0x43f   :  { %4640 = vmatprep.mubr.msk.bf16.mxu1 %vm5605_vm4, %v5604_v20 }
 0x46b   :  { %v849_v27 = vpop.f32.mrf.mxu1 }
 0x46c   :  { %v1177_v30 = vmul.f32 0.17677669, %v849_v27 }
 0x46d   :  { %v4588_v32 = vpop.f32.mrf.mxu1  ;;  %v1033_v34 = vpop.f32.mrf.mxu0 }
 0x46e   :  { %v5940_v35 = vadd.f32 %v1177_v30, %v493_v29  ;;  %v1181_v47 = vmul.f32 0.17677669, %v1033_v34  ;;  %v500_v30 = vld [vmem:[#allocation2 + $0x38] sm:$0xff] }
 0x46f   :  { %v852_v36 = vpop.f32.mrf.mxu1  ;;  %v4612_v37 = vpop.f32.mrf.mxu0 }
 0x470   :  { %v1194_v38 = vsel %vm1193_vm6, %v5940_v35, -inf  ;;  %v5948_v54 = vadd.f32 %v1181_v47, %v497_v50 }
 0x471   :  { %v4589_v39 = vpop.f32.mrf.mxu1  ;;  %1195 = vmax.xlane.f32.xlu0 %v1194_v38  ;;  %v1036_v40 = vpop.f32.mrf.mxu0 }
 0x472   :  { %v1206_v59 = vsel %vm1193_vm6, %v5948_v54, -inf }
 0x473   :  { %v4613_v43 = vpop.f32.mrf.mxu0 }
 0x4de   :  { %v895_v45 = vpop.f32.mrf.mxu1 }
 0x4df   :  { %v1178_v48 = vmul.f32 0.17677669, %v895_v45 }
 0x4e0   :  { %v4594_v49 = vpop.f32.mrf.mxu1 }
 0x4e1   :  { %v5944_v51 = vadd.f32 %v1178_v48, %v494_v46 }
 0x4e2   :  { %v898_v52 = vpop.f32.mrf.mxu1 }
 0x4e3   :  { %v1197_v53 = vsel %vm1193_vm6, %v5944_v51, -inf }
 0x4e4   :  { %v4595_v55 = vpop.f32.mrf.mxu1  ;;  %1198 = vmax.xlane.f32.xlu1 %v1197_v53 }
 0x4e6   :  { %v941_v56 = vpop.f32.mrf.mxu1 }
 0x4e7   :  { %v1179_v58 = vmul.f32 0.17677669, %v941_v56 }
 0x4e8   :  { %v4600_v60 = vpop.f32.mrf.mxu1  ;;  %1207 = vmax.xlane.f32.xlu1 %v1206_v59 }
 0x4e9   :  { %v5952_v61 = vadd.f32 %v1179_v58, %v495_v57 }
 0x4ea   :  { %v944_v62 = vpop.f32.mrf.mxu1 }
 0x4eb   :  { %v1200_v1 = vsel %vm1193_vm6, %v5952_v61, -inf }
 0x4ec   :  { %v4601_v2 = vpop.f32.mrf.mxu1  ;;  %1201 = vmax.xlane.f32.xlu0 %v1200_v1 }
 0x4ee   :  { %v987_v3 = vpop.f32.mrf.mxu1  ;;  %v1125_v4 = vpop.f32.mrf.mxu0 }
 0x4ef   :  { %v1180_v7 = vmul.f32 0.17677669, %v987_v3  ;;  %v1183_v8 = vmul.f32 0.17677669, %v1125_v4 }
 0x4f0   :  { %v4606_v9 = vpop.f32.mrf.mxu1  ;;  %v4624_v10 = vpop.f32.mrf.mxu0 }
 0x4f1   :  { %v1188_v11 = vadd.f32 %v1180_v7, %v496_v5  ;;  %v1191_v12 = vadd.f32 %v1183_v8, %v499_v6 }
 0x4f2   :  { %v990_v13 = vpop.f32.mrf.mxu1  ;;  %v1128_v14 = vpop.f32.mrf.mxu0 }
 0x4f3   :  { %v1203_v15 = vsel %vm1193_vm6, %v1188_v11, -inf  ;;  %v1212_v16 = vsel %vm1193_vm6, %v1191_v12, -inf }
 0x4f4   :  { %v4607_v17 = vpop.f32.mrf.mxu1  ;;  %1204 = vmax.xlane.f32.xlu0 %v1203_v15  ;;  %1213 = vmax.xlane.f32.xlu1 %v1212_v16  ;;  %v4625_v18 = vpop.f32.mrf.mxu0 }
 0x4f6   :  { %v1079_v19 = vpop.f32.mrf.mxu1 }
 0x4f7   :  { %v1182_v22 = vmul.f32 0.17677669, %v1079_v19 }
 0x4f8   :  { %v4618_v23 = vpop.f32.mrf.mxu1 }
 0x4f9   :  { %v5958_v24 = vadd.f32 %v1182_v22, %v498_v21 }
 0x4fa   :  { %v1082_v25 = vpop.f32.mrf.mxu1  ;;  %v1196_v40 = vpop.xlane.xlu0 %1195 }
 0x4fb   :  { %v1209_v26 = vsel %vm1193_vm6, %v5958_v24, -inf  ;;  %v1218_v43 = vsub.f32 %v5940_v35, %v1196_v40 }
 0x4fc   :  { %1210 = vmax.xlane.f32.xlu0 %v1209_v26  ;;  %v4619_v27 = vpop.f32.mrf.mxu1 }
 0x4fd   :  { %v1226_v45 = vmul.f32 1.442695, %v1218_v43 }
 0x4fe   :  { %v1171_v29 = vpop.f32.mrf.mxu1 }
 0x4ff   :  { %v1184_v32 = vmul.f32 0.17677669, %v1171_v29  ;;  %5092 = vpow2.f32 %v1226_v45 }
 0x500   :  { %v4630_v34 = vpop.f32.mrf.mxu1 }
 0x501   :  { %v5962_v36 = vadd.f32 %v1184_v32, %v500_v30 }
 0x502   :  { %v1174_v37 = vpop.f32.mrf.mxu1 }
 0x503   :  { %v1215_v38 = vsel %vm1193_vm6, %v5962_v36, -inf }
 0x504   :  { %1216 = vmax.xlane.f32.xlu0 %v1215_v38  ;;  %v4631_v39 = vpop.f32.mrf.mxu1 }
 0x505   :  { %795 = vrot.lane.b32.xlu1 %v5883_v63, %s5606_s4 }
 0x50c   :  { %v5093_v46 = vpop.eup %5092 }
 0x50d   :  { %v1242_v47 = vsel %vm1193_vm6, %v5093_v46, 0.0 }
 0x529   :  { %1243 = vadd.xlane.f32.xlu1 %v1242_v47 }
 0x56d   :  { %v1199_v48 = vpop.xlane.xlu1 %1198 }
 0x56e   :  { %v1219_v49 = vsub.f32 %v5944_v51, %v1199_v48 }
 0x570   :  { %v1228_v50 = vmul.f32 1.442695, %v1219_v49 }
 0x571   :  { %v1208_v52 = vpop.xlane.xlu1 %1207 }
 0x572   :  { %5094 = vpow2.f32 %v1228_v50  ;;  %v1222_v53 = vsub.f32 %v5948_v54, %v1208_v52 }
 0x574   :  { %v1234_v55 = vmul.f32 1.442695, %v1222_v53 }
 0x575   :  { %v1202_v56 = vpop.xlane.xlu0 %1201 }
 0x576   :  { %5096 = vpow2.f32 %v1234_v55  ;;  %v1220_v57 = vsub.f32 %v5952_v61, %v1202_v56 }
 0x578   :  { %v1230_v51 = vmul.f32 1.442695, %v1220_v57 }
 0x57d   :  { %v1205_v35 = vpop.xlane.xlu0 %1204  ;;  %v1214_v58 = vpop.xlane.xlu1 %1213 }
 0x57e   :  { %v1221_v59 = vsub.f32 %v1188_v11, %v1205_v35  ;;  %v1224_v60 = vsub.f32 %v1191_v12, %v1214_v58  ;;  %v801_v12 = vrot.slane %v5883_v63, 4 }
 0x57f   :  { %v5095_v62 = vpop.eup %5094 }
 0x580   :  { %v1232_v1 = vmul.f32 1.442695, %v1221_v59  ;;  %v1238_v2 = vmul.f32 1.442695, %v1224_v60  ;;  %v1245_v3 = vsel %vm1193_vm6, %v5095_v62, 0.0  ;;  %v1478_v57 = vsel %vm365_vm0, %v801_v12, 0 }
 0x581   :  { %1246 = vadd.xlane.f32.xlu0 %v1245_v3  ;;  %v796_v4 = vpop.permute.xlu1 %795 }
 0x582   :  { %5098 = vpow2.f32 %v1232_v1  ;;  %v1340_v54 = vsel %vm365_vm0, %v796_v4, 0 }
 0x583   :  { %v5975_v5 = vpop.eup %5096  ;;  %5100 = vpow2.f32 %v1238_v2  ;;  %4639 = vmatpush3.bf16.msra.mxu1 %v1340_v54 }
 0x584   :  { %v1254_v61 = vsel %vm1193_vm6, %v5975_v5, 0.0  ;;  %4650 = vmatprep.subr.bf16.mxu1 %v5604_v20  ;;  %5102 = vpow2.f32 %v1230_v51 }
 0x585   :  { %1255 = vadd.xlane.f32.xlu1 %v1254_v61  ;;  %v1211_v13 = vpop.xlane.xlu0 %1210 }
 0x586   :  { %v1223_v14 = vsub.f32 %v5958_v24, %v1211_v13 }
 0x588   :  { %v1236_v16 = vmul.f32 1.442695, %v1223_v14  ;;  %v4952_v14 = vld [vmem:[#allocation14 + $0x38] sm:$0xff]  }
 0x58d   :  { %v1217_v15 = vpop.xlane.xlu0 %1216 }
 0x58e   :  { %v1225_v17 = vsub.f32 %v5962_v36, %v1217_v15  ;;  %v4953_v15 = vld [vmem:[#allocation14 + $0x30] sm:$0xff]  }
 0x58f   :  { %v5099_v6 = vpop.eup %5098 }
 0x590   :  { %v5980_v7 = vpop.eup %5100  ;;  %v1251_v8 = vsel %vm1193_vm6, %v5099_v6, 0.0  ;;  %v1240_v19 = vmul.f32 1.442695, %v1225_v17 }
 0x591   :  { %1252 = vadd.xlane.f32.xlu0 %v1251_v8  ;;  %v1260_v9 = vsel %vm1193_vm6, %v5980_v7, 0.0  ;;  %v5103_v10 = vpop.eup %5102 }
 0x592   :  { %1261 = vadd.xlane.f32.xlu1 %v1260_v9  ;;  %v1248_v11 = vsel %vm1193_vm6, %v5103_v10, 0.0 }
 0x596   :  { %1249 = vadd.xlane.f32.xlu1 %v1248_v11 }
 0x5a7   :  { %799 = vrot.lane.b32.xlu1 %v5883_v63, %s5599_s11  ;;  %797 = vrot.lane.b32.xlu0 %v5883_v63, %s5582_s30 }
 0x5ab   :  { %802 = vrot.lane.b32.xlu1 %v801_v12, %s5606_s4 }
 0x5af   :  { %806 = vrot.lane.b32.xlu1 %v801_v12, %s5599_s11 }
 0x5b2   :  { %v1244_v18 = vpop.xlane.xlu1 %1243 }
 0x5b3   :  { %5104 = vrcp.f32 %v1244_v18 }
 0x5b4   :  { %5106 = vpow2.f32 %v1236_v16  ;;  %v4954_v16 = vld [vmem:[#allocation14 + $0x28] sm:$0xff]  }
 0x5b5   :  { %5108 = vpow2.f32 %v1240_v19 }
 0x5c0   :  { %v5105_v21 = vpop.eup %5104 }
 0x5c1   :  { %v1274_v22 = vmul.f32 %v5105_v21, %v5093_v46  ;;  %v5995_v23 = vpop.eup %5106 }
 0x5c2   :  { %v1257_v24 = vsel %vm1193_vm6, %v5995_v23, 0.0  ;;  %v6000_v25 = vpop.eup %5108 }
 0x5c3   :  { %v1282_v63 = vpack.c.bf16 %v1274_v22, %v1274_v22  ;;  %v1263_v26 = vsel %vm1193_vm6, %v6000_v25, 0.0 }
 0x5c5   :  { %4635 = vmatmul.mubr.msk.bf16.vlgmr.msra.gmra.mxu0 %vm1193_vm6, %v1282_v63 }
 0x5c6   :  { %1258 = vadd.xlane.f32.xlu0 %v1257_v24  ;;  %4646 = vmatprep.mubr.msk.bf16.mxu0 %vm5605_vm4, %v5604_v20 }
 0x5ca   :  { %1264 = vadd.xlane.f32.xlu0 %v1263_v26 }
 0x5e0   :  { %804 = vrot.lane.b32.xlu0 %v801_v12, %s5582_s30 }
 0x60a   :  { %v1247_v27 = vpop.xlane.xlu0 %1246 }
 0x60b   :  { %5110 = vrcp.f32 %v1247_v27 }
 0x60e   :  { %v1256_v29 = vpop.xlane.xlu1 %1255 }
 0x618   :  { %v5111_v30 = vpop.eup %5110 }
 0x619   :  { %v1275_v32 = vmul.f32 %v5111_v30, %v5095_v62 }
 0x61a   :  { %v1253_v34 = vpop.xlane.xlu0 %1252 }
 0x61b   :  { %5112 = vrcp.f32 %v1253_v34  ;;  %v1262_v36 = vpop.xlane.xlu1 %1261  ;;  %v1283_v37 = vpack.c.bf16 %v1275_v32, %v1275_v32 }
 0x61d   :  { %4641 = vmatmul.mubr.msk.bf16.vlgmr.msra.gmra.mxu1 %vm1193_vm6, %v1283_v37  ;;  %v4955_v37 = vld [vmem:[#allocation14 + $0x20] sm:$0xff]  }
 0x61e   :  { %v798_v38 = vpop.permute.xlu0 %797  ;;  %4652 = vmatprep.mubr.msk.bf16.mxu1 %vm5605_vm4, %v5604_v20 }
 0x61f   :  { %v1386_v39 = vsel %vm365_vm0, %v798_v38, 0  ;;  %v1250_v40 = vpop.xlane.xlu1 %1249  ;;  %v4956_v38 = vld [vmem:[#allocation14 + $0x18] sm:$0xff]  }
 0x620   :  { %5114 = vrcp.f32 %v1250_v40  ;;  %4645 = vmatpush3.bf16.msra.mxu0 %v1386_v39  ;;  %v4957_v39 = vld [vmem:[#allocation14 + $0x10] sm:$0xff]  }
 0x621   :  { %4656 = vmatprep.subr.bf16.mxu0 %v5604_v20  ;;  %5116 = vrcp.f32 %v1256_v29 }
 0x622   :  { %5118 = vrcp.f32 %v1262_v36 }
 0x623   :  { %v800_v43 = vpop.permute.xlu1 %799 }
 0x624   :  { %v1432_v45 = vsel %vm365_vm0, %v800_v43, 0  ;;  %v4958_v43 = vld [vmem:[#allocation14 + $0x8] sm:$0xff]  }
 0x625   :  { %4651 = vmatpush3.bf16.msra.mxu1 %v1432_v45 }
 0x626   :  { %4662 = vmatprep.subr.bf16.mxu1 %v5604_v20 }
 0x627   :  { %v803_v48 = vpop.permute.xlu1 %802 }
 0x628   :  { %v5113_v46 = vpop.eup %5112  ;;  %v1524_v52 = vsel %vm365_vm0, %v803_v48, 0 }
 0x629   :  { %v1277_v47 = vmul.f32 %v5113_v46, %v5099_v6 }
 0x62b   :  { %v1285_v49 = vpack.c.bf16 %v1277_v47, %v1277_v47 }
 0x62d   :  { %v5115_v50 = vpop.eup %5114  ;;  %4653 = vmatmul.mubr.msk.bf16.vlgmr.msra.gmra.mxu1 %vm1193_vm6, %v1285_v49 }
 0x62e   :  { %4663 = vmatpush3.bf16.msra.mxu1 %v1524_v52  ;;  %v1276_v53 = vmul.f32 %v5115_v50, %v5103_v10  ;;  %4664 = vmatprep.mubr.msk.bf16.mxu1 %vm5605_vm4, %v5604_v20  ;;  %v5117_v56 = vpop.eup %5116  ;;  %v4959_v50 = vld [vmem:[#allocation14] sm:$0xff]  }
 0x62f   :  { %4674 = vmatprep.subr.bf16.mxu1 %v5604_v20  ;;  %v1278_v35 = vmul.f32 %v5117_v56, %v5975_v5  ;;  %v5119_v60 = vpop.eup %5118  ;;  %v807_v5 = vpop.permute.xlu1 %806 }
 0x630   :  { %v1284_v55 = vpack.c.bf16 %v1276_v53, %v1276_v53  ;;  %v1280_v1 = vmul.f32 %v5119_v60, %v5980_v7  ;;  %v1616_v7 = vsel %vm365_vm0, %v807_v5, 0 }
 0x631   :  { %v1286_v58 = vpack.c.bf16 %v1278_v35, %v1278_v35 }
 0x632   :  { %4647 = vmatmul.mubr.msk.bf16.vlgmr.msra.gmra.mxu0 %vm1193_vm6, %v1284_v55  ;;  %v1288_v51 = vpack.c.bf16 %v1280_v1, %v1280_v1 }
 0x633   :  { %4657 = vmatpush3.bf16.msra.mxu0 %v1478_v57  ;;  %4658 = vmatprep.mubr.msk.bf16.mxu0 %vm5605_vm4, %v5604_v20 }
 0x634   :  { %4668 = vmatprep.subr.bf16.mxu0 %v5604_v20 }
 0x63a   :  { %4659 = vmatmul.mubr.msk.bf16.vlgmr.msra.gmra.mxu0 %vm1193_vm6, %v1286_v58 }
 0x63b   :  { %4670 = vmatprep.mubr.msk.bf16.mxu0 %vm5605_vm4, %v5604_v20 }
 0x64f   :  { %v1259_v59 = vpop.xlane.xlu0 %1258 }
 0x650   :  { %5120 = vrcp.f32 %v1259_v59 }
 0x653   :  { %v1265_v62 = vpop.xlane.xlu0 %1264 }
 0x654   :  { %5122 = vrcp.f32 %v1265_v62 }
 0x657   :  { %v805_v2 = vpop.permute.xlu0 %804 }
 0x658   :  { %v1570_v3 = vsel %vm365_vm0, %v805_v2, 0 }
 0x659   :  { %4669 = vmatpush3.bf16.msra.mxu0 %v1570_v3 }
 0x65a   :  { %4680 = vmatprep.subr.bf16.mxu0 %v5604_v20 }
 0x65c   :  { %4671 = vmatmul.mubr.msk.bf16.vlgmr.msra.gmra.mxu0 %vm1193_vm6, %v1288_v51 }
 0x65d   :  { %v5121_v4 = vpop.eup %5120  ;;  %4696 = vmatprep.mubr.msk.bf16.mxu0 %vm5605_vm4, %v5604_v20  ;;  %4681 = vmatpush3.bf16.msra.mxu0 %v4952_v14 }
 0x65e   :  { %v1279_v54 = vmul.f32 %v5121_v4, %v5995_v23  ;;  %4682 = vmatprep.subr.bf16.mxu0 %v5604_v20 }
 0x660   :  { %v1287_v61 = vpack.c.bf16 %v1279_v54, %v1279_v54 }
 0x661   :  { %v5123_v6 = vpop.eup %5122  ;;  %4683 = vmatpush3.bf16.msra.mxu0 %v4953_v15 }
 0x662   :  { %4665 = vmatmul.mubr.msk.bf16.vlgmr.msra.gmra.mxu1 %vm1193_vm6, %v1287_v61  ;;  %v1281_v8 = vmul.f32 %v5123_v6, %v6000_v25  ;;  %4684 = vmatprep.subr.bf16.mxu0 %v5604_v20 }
 0x663   :  { %4675 = vmatpush3.bf16.msra.mxu1 %v1616_v7  ;;  %4676 = vmatprep.mubr.msk.bf16.mxu1 %vm5605_vm4, %v5604_v20 }
 0x664   :  { %v1289_v9 = vpack.c.bf16 %v1281_v8, %v1281_v8 }
 0x665   :  { %4685 = vmatpush3.bf16.msra.mxu0 %v4954_v16 }
 0x666   :  { %4686 = vmatprep.subr.bf16.mxu0 %v5604_v20 }
 0x669   :  { %4687 = vmatpush3.bf16.msra.mxu0 %v4955_v37  ;;  %v4975_v37 = vld [vmem:[#allocation20 + $0x20] ss:$8 sps:$4 sm:$0xff]  }
 0x66a   :  { %4677 = vmatmul.mubr.msk.bf16.vlgmr.msra.gmra.mxu1 %vm1193_vm6, %v1289_v9  ;;  %4688 = vmatprep.subr.bf16.mxu0 %v5604_v20 }
 0x66b   :  { %1992 = vmatprep.mubr.bf16.mxu1 %v5603_v0 }
 0x66d   :  { %4689 = vmatpush3.bf16.msra.mxu0 %v4956_v38  ;;  %v4980_v38 = vld [vmem:[#allocation20 + $0x14] ss:$8 sps:$4 sm:$0xff]  }
 0x66e   :  { %4690 = vmatprep.subr.bf16.mxu0 %v5604_v20 }
 0x671   :  { %4691 = vmatpush3.bf16.msra.mxu0 %v4957_v39  ;;  %v4978_v39 = vld [vmem:[#allocation20 + $0x10] ss:$8 sps:$4 sm:$0xff]  }
 0x672   :  { %4692 = vmatprep.subr.bf16.mxu0 %v5604_v20 }
 0x675   :  { %4693 = vmatpush3.bf16.msra.mxu0 %v4958_v43  ;;  %v4981_v43 = vld [vmem:[#allocation20] ss:$8 sps:$4 sm:$0xff]  }
 0x676   :  { %4694 = vmatprep.subr.bf16.mxu0 %v5604_v20 }
 0x679   :  { %4695 = vmatpush3.bf16.msra.mxu0 %v4959_v50 }
 0x685   :  { %v6042_v10 = vpop.f32.mrf.mxu0 }
 0x687   :  { %v4636_v11 = vpop.f32.mrf.mxu0 }
 0x689   :  { %v1333_v12 = vpop.f32.mrf.mxu0 }
 0x68b   :  { %v4637_v13 = vpop.f32.mrf.mxu0 }
 0x6dd   :  { %v1376_v17 = vpop.f32.mrf.mxu1 }
 0x6df   :  { %v4642_v18 = vpop.f32.mrf.mxu1 }
 0x6e1   :  { %v1379_v19 = vpop.f32.mrf.mxu1 }
 0x6e3   :  { %v4643_v21 = vpop.f32.mrf.mxu1 }
 0x6ed   :  { %v1468_v22 = vpop.f32.mrf.mxu1 }
 0x6ef   :  { %v4654_v23 = vpop.f32.mrf.mxu1 }
 0x6f1   :  { %v1471_v63 = vpop.f32.mrf.mxu1 }
 0x6f2   :  { %v1422_v24 = vpop.f32.mrf.mxu0 }
 0x6f3   :  { %v4655_v25 = vpop.f32.mrf.mxu1 }
 0x6f4   :  { %v4648_v26 = vpop.f32.mrf.mxu0  ;;  %v4960_v25 = vld [vmem:[#allocation20 + $0x70] ss:$8 sps:$4 sm:$0xff]  }
 0x6f5   :  { %v4963_v26 = vld [vmem:[#allocation20 + $0x60] ss:$8 sps:$4 sm:$0xff]  }
 0x6f6   :  { %v1425_v27 = vpop.f32.mrf.mxu0 }
 0x6f7   :  { %v4968_v27 = vld [vmem:[#allocation20 + $0x54] ss:$8 sps:$4 sm:$0xff]  }
 0x6f8   :  { %v4649_v29 = vpop.f32.mrf.mxu0 }
 0x6f9   :  { %v4966_v29 = vld [vmem:[#allocation20 + $0x50] ss:$8 sps:$4 sm:$0xff]  }
 0x6fa   :  { %v1514_v30 = vpop.f32.mrf.mxu0 }
 0x6fc   :  { %v4660_v32 = vpop.f32.mrf.mxu0 }
 0x6fd   :  { %v4974_v32 = vld [vmem:[#allocation20 + $0x34] ss:$8 sps:$4 sm:$0xff]  }
 0x6fe   :  { %v1517_v34 = vpop.f32.mrf.mxu0 }
 0x6ff   :  { %v4972_v34 = vld [vmem:[#allocation20 + $0x30] ss:$8 sps:$4 sm:$0xff]  }
 0x700   :  { %v4661_v36 = vpop.f32.mrf.mxu0 }
 0x701   :  { %v4977_v36 = vld [vmem:[#allocation20 + $0x24] ss:$8 sps:$4 sm:$0xff]  }
 0x71c   :  { %v1606_v40 = vpop.f32.mrf.mxu0 }
 0x71d   :  { %v4895_v45 = vpack.i.bf16 %v1606_v40, %v1422_v24  ;;  %v4962_v24 = vld [vmem:[#allocation20 + $0x74] ss:$8 sps:$4 sm:$0xff]   ;;  %v4983_v40 = vld [vmem:[#allocation20 + $0x4] ss:$8 sps:$4 sm:$0xff]  }
 0x71e   :  { %v4672_v46 = vpop.f32.mrf.mxu0  ;;  %1960 = vmatprep.subr.bf16.mxu1 %v4962_v24  ;;  %v4997_v24 = vld [vmem:[#allocation23 + $0x8] sm:$0xff]  }
 0x71f   :  { %4896 = vrot.lane.b32.xlu1 %v4895_v45, %s5582_s30  ;;  %1961 = vmatpush1.bf16.msra.mxu1 %v4960_v25  ;;  %v4998_v25 = vld [vmem:[#allocation23 + $0x40] sm:$0xff]  }
 0x720   :  { %v1609_v47 = vpop.f32.mrf.mxu0 }
 0x722   :  { %v1560_v48 = vpop.f32.mrf.mxu1  ;;  %v4673_v49 = vpop.f32.mrf.mxu0 }
 0x723   :  { %v4890_v52 = vpack.i.bf16 %v1560_v48, %v1376_v17 }
 0x724   :  { %v4666_v53 = vpop.f32.mrf.mxu1 }
 0x725   :  { %4891 = vrot.lane.b32.xlu0 %v4890_v52, %s5599_s11 }
 0x726   :  { %v1563_v55 = vpop.f32.mrf.mxu1 }
 0x728   :  { %v4667_v56 = vpop.f32.mrf.mxu1 }
 0x72a   :  { %v1652_v57 = vpop.f32.mrf.mxu1 }
 0x72b   :  { %v4900_v35 = vpack.i.bf16 %v1652_v57, %v1468_v22 }
 0x72c   :  { %v4678_v58 = vpop.f32.mrf.mxu1 }
 0x72d   :  { %4901 = vrot.lane.b32.xlu0 %v4900_v35, %s5606_s4 }
 0x72e   :  { %v1655_v59 = vpop.f32.mrf.mxu1 }
 0x730   :  { %v4679_v60 = vpop.f32.mrf.mxu1 }
 0x791   :  { %v4897_v3 = vpop.permute.xlu1 %4896 }
 0x792   :  { %v4899_v54 = vunpack.i.h.bf16 %v4897_v3  ;;  %v4898_v5 = vunpack.i.l.bf16 %v4897_v3  ;;  %v4234_v3 = vld [vmem:[#allocation17] ss:$0 sm:$0xff] }
 0x797   :  { %v4892_v62 = vpop.permute.xlu0 %4891 }
 0x798   :  { %v4894_v1 = vunpack.i.h.bf16 %v4892_v62  ;;  %v4893_v2 = vunpack.i.l.bf16 %v4892_v62 }
 0x79a   :  { %v1670_v51 = vsel %vm808_vm5, %v6042_v10, %v4893_v2  ;;  %v1687_v4 = vsel %vm808_vm5, %v1514_v30, %v4894_v1  ;;  %v4225_v10 = vld [vmem:[#allocation16] ss:$0 sm:$0xff]  ;;  %v4971_v30 = vld [vmem:[#allocation20 + $0x44] ss:$8 sps:$4 sm:$0xff]  }
 0x79b   :  { %v1672_v8 = vsel %vm1671_vm7, %v1670_v51, %v4898_v5  ;;  %v1688_v9 = vsel %vm1671_vm7, %v1687_v4, %v4899_v54 }
 0x79f   :  { %v4902_v61 = vpop.permute.xlu0 %4901 }
 0x7a0   :  { %v4904_v6 = vunpack.i.h.bf16 %v4902_v61  ;;  %v4903_v7 = vunpack.i.l.bf16 %v4902_v61 }
 0x7a2   :  { %v1674_v11 = vsel %vm1673_vm8, %v1672_v8, %v4903_v7  ;;  %v1689_v12 = vsel %vm1673_vm8, %v1688_v9, %v4904_v6  ;;  %v4235_v6 = vld [vmem:[#allocation19] ss:$0 sm:$0xff] }
 0x7a3   :  { %v1690_v13 = vpack.c.bf16 %v1689_v12, %v1674_v11  ;;  %v4984_v12 = vld [vmem:[#allocation23 + $0x78] sm:$0xff]  }
 0x7a4   :  { %4432 = vmatprep.subr.bf16.mxu0 %v4984_v12 }
 0x7a5   :  { %4697 = vmatmul.mubr.bf16.vlgmr.msra.gmra.mxu0 %v1690_v13  ;;  %v4985_v13 = vld [vmem:[#allocation23 + $0x38] sm:$0xff]  }
 0x7a6   :  { %4433 = vmatpush3.bf16.msra.mxu0 %v4985_v13 }
 0x865   :  { %v1796_v14 = vpop.f32.mrf.mxu0 }
 0x866   :  { %v1797_v15 = vadd.f32 %v4225_v10, %v1796_v14  ;;  %v4987_v14 = vld [vmem:[#allocation23 + $0x30] sm:$0xff]  }
 0x867   :  { %v4698_v16 = vpop.f32.mrf.mxu0 }
 0x868   :  { %v6062_v17 = vadd.f32 %v1797_v15, %v5865_v41  ;;  %v4965_v41 = vld [vmem:[#allocation20 + $0x64] ss:$8 sps:$4 sm:$0xff]  }
 0x869   :  { %v1799_v18 = vpop.f32.mrf.mxu0  ;;  %1962 = vmatprep.subr.bf16.mxu1 %v4965_v41  ;;  %v4988_v15 = vld [vmem:[#allocation23 + $0x68] sm:$0xff]   ;;  %v4999_v41 = vld [vmem:[#allocation23] sm:$0xff]  }
 0x86a   :  { %v1800_v19 = vadd.f32 %v4225_v10, %v1799_v18  ;;  %1807 = vadd.xlane.f32.xlu1 %v6062_v17  ;;  %v1813_v63 = vmul.f32 %v6062_v17, %v6062_v17  ;;  %1963 = vmatpush1.bf16.msra.mxu1 %v4963_v26  ;;  %v4986_v10 = vld [vmem:[#allocation23 + $0x70] sm:$0xff]   ;;  %v4989_v16 = vld [vmem:[#allocation23 + $0x28] sm:$0xff]   ;;  %v4991_v18 = vld [vmem:[#allocation23 + $0x20] sm:$0xff]  }
 0x86b   :  { %v4699_v21 = vpop.f32.mrf.mxu0  ;;  %1964 = vmatprep.subr.bf16.mxu1 %v4968_v27  ;;  %4434 = vmatprep.subr.bf16.mxu0 %v4986_v10  ;;  %v1868_v26 = vld [vmem:[#allocation22] sm:$0x3] }
 0x86c   :  { %v1804_v22 = vadd.f32 %v1800_v19, %v5867_v42  ;;  %v4969_v42 = vld [vmem:[#allocation20 + $0x40] ss:$8 sps:$4 sm:$0xff]   ;;  %4435 = vmatpush3.bf16.msra.mxu0 %v4987_v14  ;;  %v1873_v27 = vrot.slane %v1868_v26, %v5838_v33 }
 0x86d   :  { %4436 = vmatprep.subr.bf16.mxu0 %v4988_v15  ;;  %v4992_v19 = vld [vmem:[#allocation23 + $0x58] sm:$0xff]  }
 0x86e   :  { %1809 = vadd.xlane.f32.xlu0 %v1804_v22  ;;  %v1814_v23 = vmul.f32 %v1804_v22, %v1804_v22  ;;  %1965 = vmatpush1.bf16.msra.mxu1 %v4966_v29  ;;  %v4993_v21 = vld [vmem:[#allocation23 + $0x18] sm:$0xff]   ;;  %v1877_v29 = vrot.slane %v1868_v26, %v5835_v31 }
 0x86f   :  { %1966 = vmatprep.subr.bf16.mxu1 %v4971_v30 }
 0x870   :  { %1817 = vadd.xlane.f32.xlu1 %v1814_v23  ;;  %4437 = vmatpush3.bf16.msra.mxu0 %v4989_v16  ;;  %v4995_v23 = vld [vmem:[#allocation23 + $0x10] sm:$0xff]  }
 0x872   :  { %1815 = vadd.xlane.f32.xlu0 %v1813_v63  ;;  %1967 = vmatpush1.bf16.msra.mxu1 %v4969_v42  ;;  %v4996_v63 = vld [vmem:[#allocation23 + $0x48] sm:$0xff]  }
 0x873   :  { %1968 = vmatprep.subr.bf16.mxu1 %v4974_v32 }
 0x876   :  { %1969 = vmatpush1.bf16.msra.mxu1 %v4972_v34 }
 0x877   :  { %1970 = vmatprep.subr.bf16.mxu1 %v4977_v36 }
 0x87a   :  { %1971 = vmatpush1.bf16.msra.mxu1 %v4975_v37 }
 0x87b   :  { %1972 = vmatprep.subr.bf16.mxu1 %v4980_v38 }
 0x87e   :  { %1973 = vmatpush1.bf16.msra.mxu1 %v4978_v39 }
 0x87f   :  { %1974 = vmatprep.subr.bf16.mxu1 %v4983_v40 }
 0x882   :  { %1975 = vmatpush1.bf16.msra.mxu1 %v4981_v43 }
 0x8f3   :  { %v1808_v45 = vpop.xlane.xlu1 %1807 }
 0x8f4   :  { %v1811_v47 = vmul.f32 0.0078125, %v1808_v45 }
 0x8f6   :  { %v1821_v55 = vmul.f32 %v1811_v47, %v1811_v47  ;;  %v1827_v51 = vsub.f32 %v6062_v17, %v1811_v47  ;;  %v4990_v17 = vld [vmem:[#allocation23 + $0x60] sm:$0xff]  }
 0x8f7   :  { %v1810_v46 = vpop.xlane.xlu0 %1809  ;;  %4438 = vmatprep.subr.bf16.mxu0 %v4990_v17 }
 0x8f8   :  { %v1812_v48 = vmul.f32 0.0078125, %v1810_v46  ;;  %4439 = vmatpush3.bf16.msra.mxu0 %v4991_v18 }
 0x8f9   :  { %v1818_v49 = vpop.xlane.xlu1 %1817  ;;  %4440 = vmatprep.subr.bf16.mxu0 %v4992_v19 }
 0x8fa   :  { %v1822_v50 = vmul.f32 %v1812_v48, %v1812_v48  ;;  %v1820_v52 = vmul.f32 0.0078125, %v1818_v49  ;;  %v1828_v1 = vsub.f32 %v1804_v22, %v1812_v48  ;;  %v4994_v22 = vld [vmem:[#allocation23 + $0x50] sm:$0xff]  }
 0x8fb   :  { %v1816_v53 = vpop.xlane.xlu0 %1815 }
 0x8fc   :  { %v1824_v56 = vsub.f32 %v1820_v52, %v1822_v50  ;;  %v1819_v57 = vmul.f32 0.0078125, %v1816_v53  ;;  %4441 = vmatpush3.bf16.msra.mxu0 %v4993_v21 }
 0x8fd   :  { %4442 = vmatprep.subr.bf16.mxu0 %v4994_v22  ;;  %v4252_v22 = vld [vmem:[#allocation25] ss:$0 sm:$0xff] }
 0x8fe   :  { %v1826_v35 = vmax.f32 %v1824_v56, 0.0  ;;  %v1823_v58 = vsub.f32 %v1819_v57, %v1821_v55 }
 0x900   :  { %v1830_v59 = vadd.f32 1e-12, %v1826_v35  ;;  %v1825_v60 = vmax.f32 %v1823_v58, 0.0  ;;  %4443 = vmatpush3.bf16.msra.mxu0 %v4995_v23 }
 0x901   :  { %4444 = vmatprep.subr.bf16.mxu0 %v4996_v63 }
 0x902   :  { %5124 = vrsqrt.f32 %v1830_v59  ;;  %v1829_v62 = vadd.f32 1e-12, %v1825_v60 }
 0x904   :  { %5126 = vrsqrt.f32 %v1829_v62  ;;  %4445 = vmatpush3.bf16.msra.mxu0 %v4997_v24 }
 0x905   :  { %4446 = vmatprep.subr.bf16.mxu0 %v4998_v25 }
 0x908   :  { %4447 = vmatpush3.bf16.msra.mxu0 %v4999_v41 }
 0x909   :  { %4700 = vmatprep.subr.bf16.mxu0 %v5604_v20 }
 0x90f   :  { %v5125_v2 = vpop.eup %5124 }
 0x910   :  { %v1834_v4 = vmul.f32 %v5125_v2, %v1828_v1 }
 0x911   :  { %v5127_v54 = vpop.eup %5126 }
 0x912   :  { %v1833_v5 = vmul.f32 %v5127_v54, %v1827_v51  ;;  %v1842_v61 = vmul.f32 %v4234_v3, %v1834_v4 }
 0x914   :  { %v1841_v7 = vmul.f32 %v4234_v3, %v1833_v5  ;;  %v6071_v9 = vadd.f32 %v4235_v6, %v1842_v61 }
 0x916   :  { %v6069_v8 = vadd.f32 %v4235_v6, %v1841_v7 }
 0x918   :  { %v1851_v11 = vpack.c.bf16 %v6071_v9, %v6069_v8 }
 0x91a   :  { %1993 = vmatmul.mubr.bf16.vlgmr.msra.gmra.mxu1 %v1851_v11 }
 0x91b   :  { %2477 = vmatprep.mubr.bf16.mxu1 %v5603_v0 }
 0x9da   :  { %v1994_v30 = vpop.f32.mrf.mxu1 }
 0x9db   :  { %v1995_v42 = vadd.f32 %v1994_v30, %v1873_v27 }
 0x9dc   :  { %v1996_v32 = vpop.f32.mrf.mxu1 }
 0x9dd   :  { %v2007_v34 = vmul.f32 0.044715, %v1995_v42  ;;  %v1997_v36 = vadd.f32 %v1996_v32, %v1877_v29  ;;  %v2003_v10 = vmul.f32 0.5, %v1995_v42 }
 0x9de   :  { %v1998_v37 = vpop.f32.mrf.mxu1 }
 0x9df   :  { %v2011_v38 = vmul.f32 %v2007_v34, %v1995_v42  ;;  %v2008_v39 = vmul.f32 0.044715, %v1997_v36  ;;  %v1999_v40 = vadd.f32 %v1998_v37, %v1873_v27  ;;  %v2004_v11 = vmul.f32 0.5, %v1997_v36  ;;  %v5002_v34 = vld [vmem:[#allocation13 + $0x16c] ss:$12 sps:$4 sm:$0xff]  }
 0x9e0   :  { %v2000_v43 = vpop.f32.mrf.mxu1  ;;  %2445 = vmatprep.subr.bf16.mxu1 %v5002_v34  ;;  %v5006_v37 = vld [vmem:[#allocation13 + $0x154] ss:$12 sps:$4 sm:$0xff]  }
 0x9e1   :  { %v2015_v45 = vmul.f32 %v2011_v38, %v1995_v42  ;;  %v2012_v46 = vmul.f32 %v2008_v39, %v1997_v36  ;;  %v2009_v47 = vmul.f32 0.044715, %v1999_v40  ;;  %v2001_v48 = vadd.f32 %v2000_v43, %v1877_v29  ;;  %v5007_v38 = vld [vmem:[#allocation13 + $0x158] ss:$12 sps:$4 sm:$0xff]   ;;  %v5010_v39 = vld [vmem:[#allocation13 + $0x13c] ss:$12 sps:$4 sm:$0xff]  }
 0x9e2   :  { %v2005_v6 = vmul.f32 0.5, %v1999_v40  ;;  %v5011_v43 = vld [vmem:[#allocation13 + $0x140] ss:$12 sps:$4 sm:$0xff]  }
 0x9e3   :  { %v2019_v49 = vadd.f32 %v2015_v45, %v1995_v42  ;;  %v2016_v50 = vmul.f32 %v2012_v46, %v1997_v36  ;;  %v2013_v52 = vmul.f32 %v2009_v47, %v1999_v40  ;;  %v2010_v53 = vmul.f32 0.044715, %v2001_v48  ;;  %v5014_v45 = vld [vmem:[#allocation13 + $0x124] ss:$12 sps:$4 sm:$0xff]   ;;  %v5012_v46 = vld [vmem:[#allocation13 + $0x120] ss:$12 sps:$4 sm:$0xff]  }
 0x9e4   :  { %v2006_v12 = vmul.f32 0.5, %v2001_v48  ;;  %v5015_v47 = vld [vmem:[#allocation13 + $0x128] ss:$12 sps:$4 sm:$0xff]  }
 0x9e5   :  { %v2017_v55 = vmul.f32 %v2013_v52, %v1999_v40  ;;  %v2014_v56 = vmul.f32 %v2010_v53, %v2001_v48  ;;  %v2020_v57 = vadd.f32 %v2016_v50, %v1997_v36  ;;  %v2023_v35 = vmul.f32 0.7978846, %v2019_v49  ;;  %v5000_v36 = vld [vmem:[#allocation13 + $0x168] ss:$12 sps:$4 sm:$0xff]   ;;  %v5019_v50 = vld [vmem:[#allocation13 + $0x110] ss:$12 sps:$4 sm:$0xff]  }
 0x9e6   :  { %2446 = vmatpush1.bf16.msra.mxu1 %v5000_v36  ;;  %v5016_v49 = vld [vmem:[#allocation13 + $0x108] ss:$12 sps:$4 sm:$0xff]   ;;  %v5020_v53 = vld [vmem:[#allocation13 + $0xf0] ss:$12 sps:$4 sm:$0xff]  }
 0x9e7   :  { %v2021_v58 = vadd.f32 %v2017_v55, %v1999_v40  ;;  %v2018_v59 = vmul.f32 %v2014_v56, %v2001_v48  ;;  %v2024_v60 = vmul.f32 0.7978846, %v2020_v57  ;;  %2447 = vmatprep.subr.bf16.mxu1 %v5006_v37  ;;  %v5008_v40 = vld [vmem:[#allocation13 + $0x138] ss:$12 sps:$4 sm:$0xff]   ;;  %v5022_v52 = vld [vmem:[#allocation13 + $0xf4] ss:$12 sps:$4 sm:$0xff]  }
 0x9e8   :  { %v5023_v55 = vld [vmem:[#allocation13 + $0xf8] ss:$12 sps:$4 sm:$0xff]   ;;  %v5026_v56 = vld [vmem:[#allocation13 + $0xdc] ss:$12 sps:$4 sm:$0xff]  }
 0x9e9   :  { %v2025_v62 = vmul.f32 0.7978846, %v2021_v58  ;;  %v2022_v1 = vadd.f32 %v2018_v59, %v2001_v48  ;;  %5128 = vtanh.f32 %v2024_v60  ;;  %v5018_v48 = vld [vmem:[#allocation13 + $0x10c] ss:$12 sps:$4 sm:$0xff]   ;;  %v5030_v58 = vld [vmem:[#allocation13 + $0xc4] ss:$12 sps:$4 sm:$0xff]  }
 0x9ea   :  { %5130 = vtanh.f32 %v2023_v35  ;;  %v5024_v57 = vld [vmem:[#allocation13 + $0xd8] ss:$12 sps:$4 sm:$0xff]   ;;  %v5027_v35 = vld [vmem:[#allocation13 + $0xe0] ss:$12 sps:$4 sm:$0xff]   ;;  %v5031_v60 = vld [vmem:[#allocation13 + $0xc8] ss:$12 sps:$4 sm:$0xff]  }
 0x9eb   :  { %5132 = vtanh.f32 %v2025_v62  ;;  %v2026_v2 = vmul.f32 0.7978846, %v2022_v1  ;;  %v5028_v59 = vld [vmem:[#allocation13 + $0xc0] ss:$12 sps:$4 sm:$0xff]  }
 0x9ed   :  { %5134 = vtanh.f32 %v2026_v2 }
 0x9f6   :  { %v5129_v3 = vpop.eup %5128 }
 0x9f7   :  { %v5131_v51 = vpop.eup %5130  ;;  %v2032_v54 = vadd.f32 1.0, %v5129_v3 }
 0x9f8   :  { %v5133_v4 = vpop.eup %5132  ;;  %v2031_v7 = vadd.f32 1.0, %v5131_v51 }
 0x9f9   :  { %v2033_v5 = vadd.f32 1.0, %v5133_v4  ;;  %v2036_v15 = vmul.f32 %v2032_v54, %v2004_v11 }
 0x9fa   :  { %v5135_v61 = vpop.eup %5134  ;;  %v2035_v17 = vmul.f32 %v2031_v7, %v2003_v10 }
 0x9fb   :  { %v2034_v13 = vadd.f32 1.0, %v5135_v61  ;;  %v2037_v14 = vmul.f32 %v2033_v5, %v2005_v6 }
 0x9fd   :  { %v2038_v16 = vmul.f32 %v2034_v13, %v2006_v12  ;;  %v2039_v19 = vpack.c.bf16 %v2037_v14, %v2035_v17 }
 0x9ff   :  { %v2040_v18 = vpack.c.bf16 %v2038_v16, %v2036_v15 }
 0xa01   :  { %2208 = vmatprep.mubr.bf16.mxu0 %v2040_v18  ;;  %v4269_v18 = vld [vmem:[#allocation26] ss:$0 sm:$0xff] }
 0xa02   :  { %2209 = vmatmul.mubr.bf16.vlgmr.msra.gmra.mxu0 %v2039_v19 }
 0xa03   :  { %4716 = vmatprep.mubr.msk.bf16.mxu0 %vm5605_vm4, %v5604_v20 }
 0xac2   :  { %v4448_v21 = vpop.f32.mrf.mxu0 }
 0xac4   :  { %v4449_v23 = vpop.f32.mrf.mxu0 }
 0xac5   :  { %v4450_v63 = vadd.f32 %v4449_v23, %v4448_v21 }
 0xac6   :  { %v4451_v24 = vpop.f32.mrf.mxu0 }
 0xac7   :  { %v2211_v25 = vadd.f32 %v4450_v63, %v4252_v22  ;;  %v4270_v63 = vld [vmem:[#allocation28] ss:$0 sm:$0xff] }
 0xac8   :  { %v4452_v41 = vpop.f32.mrf.mxu0 }
 0xac9   :  { %v4453_v26 = vadd.f32 %v4452_v41, %v4451_v24  ;;  %v6082_v27 = vadd.f32 %v2211_v25, %v6069_v8  ;;  %v5003_v8 = vld [vmem:[#allocation13 + $0x170] ss:$12 sps:$4 sm:$0xff]  }
 0xaca   :  { %4701 = vmatpush3.bf16.msra.mxu0 %v5003_v8 }
 0xacb   :  { %v2214_v29 = vadd.f32 %v4453_v26, %v4252_v22  ;;  %2221 = vadd.xlane.f32.xlu0 %v6082_v27  ;;  %v2227_v42 = vmul.f32 %v6082_v27, %v6082_v27  ;;  %4702 = vmatprep.subr.bf16.mxu0 %v5604_v20 }
 0xacd   :  { %v6086_v30 = vadd.f32 %v2214_v29, %v6071_v9  ;;  %v5004_v9 = vld [vmem:[#allocation13 + $0x150] ss:$12 sps:$4 sm:$0xff]  }
 0xace   :  { %2448 = vmatpush1.bf16.msra.mxu1 %v5004_v9  ;;  %4703 = vmatpush3.bf16.msra.mxu0 %v5007_v38 }
 0xacf   :  { %2223 = vadd.xlane.f32.xlu1 %v6086_v30  ;;  %2229 = vadd.xlane.f32.xlu0 %v2227_v42  ;;  %v2228_v32 = vmul.f32 %v6086_v30, %v6086_v30 }
 0xad0   :  { %4704 = vmatprep.subr.bf16.mxu0 %v5604_v20  ;;  %2449 = vmatprep.subr.bf16.mxu1 %v5010_v39 }
 0xad2   :  { %2450 = vmatpush1.bf16.msra.mxu1 %v5008_v40  ;;  %4705 = vmatpush3.bf16.msra.mxu0 %v5011_v43 }
 0xad3   :  { %2231 = vadd.xlane.f32.xlu1 %v2228_v32  ;;  %2451 = vmatprep.subr.bf16.mxu1 %v5014_v45 }
 0xad4   :  { %4706 = vmatprep.subr.bf16.mxu0 %v5604_v20 }
 0xad6   :  { %2452 = vmatpush1.bf16.msra.mxu1 %v5012_v46  ;;  %4707 = vmatpush3.bf16.msra.mxu0 %v5015_v47 }
 0xad7   :  { %2453 = vmatprep.subr.bf16.mxu1 %v5018_v48  ;;  %4708 = vmatprep.subr.bf16.mxu0 %v5604_v20 }
 0xada   :  { %2454 = vmatpush1.bf16.msra.mxu1 %v5016_v49  ;;  %4709 = vmatpush3.bf16.msra.mxu0 %v5019_v50 }
 0xadb   :  { %2455 = vmatprep.subr.bf16.mxu1 %v5022_v52  ;;  %4710 = vmatprep.subr.bf16.mxu0 %v5604_v20 }
 0xade   :  { %2456 = vmatpush1.bf16.msra.mxu1 %v5020_v53  ;;  %4711 = vmatpush3.bf16.msra.mxu0 %v5023_v55 }
 0xadf   :  { %2457 = vmatprep.subr.bf16.mxu1 %v5026_v56  ;;  %4712 = vmatprep.subr.bf16.mxu0 %v5604_v20 }
 0xae2   :  { %2458 = vmatpush1.bf16.msra.mxu1 %v5024_v57  ;;  %4713 = vmatpush3.bf16.msra.mxu0 %v5027_v35 }
 0xae3   :  { %2459 = vmatprep.subr.bf16.mxu1 %v5030_v58  ;;  %4714 = vmatprep.subr.bf16.mxu0 %v5604_v20 }
 0xae6   :  { %2460 = vmatpush1.bf16.msra.mxu1 %v5028_v59  ;;  %4715 = vmatpush3.bf16.msra.mxu0 %v5031_v60 }
 0xae7   :  { %4720 = vmatprep.subr.bf16.mxu1 %v5604_v20  ;;  %4744 = vmatprep.subr.bf16.mxu0 %v5604_v20 }
 0xb54   :  { %v2222_v62 = vpop.xlane.xlu0 %2221 }
 0xb55   :  { %v2225_v1 = vmul.f32 0.0078125, %v2222_v62 }
 0xb57   :  { %v2235_v51 = vmul.f32 %v2225_v1, %v2225_v1  ;;  %v2241_v15 = vsub.f32 %v6082_v27, %v2225_v1  ;;  %v4271_v27 = vld [vmem:[%s6368_s9 + $0x3] sm:$0x7] }
 0xb58   :  { %v2224_v2 = vpop.xlane.xlu1 %2223  ;;  %v2230_v3 = vpop.xlane.xlu0 %2229  ;;  %v2305_v42 = vrot.slane %v4271_v27, %v5838_v33  ;;  %v2313_v32 = vrot.slane %v4271_v27, %v546_v44  ;;  %v2309_v8 = vrot.slane %v4271_v27, %v5835_v31 }
 0xb59   :  { %v2226_v4 = vmul.f32 0.0078125, %v2224_v2  ;;  %v2233_v54 = vmul.f32 0.0078125, %v2230_v3 }
 0xb5b   :  { %v2237_v5 = vsub.f32 %v2233_v54, %v2235_v51  ;;  %v2236_v6 = vmul.f32 %v2226_v4, %v2226_v4  ;;  %v2242_v19 = vsub.f32 %v6086_v30, %v2226_v4 }
 0xb5c   :  { %v2232_v61 = vpop.xlane.xlu1 %2231 }
 0xb5d   :  { %v2239_v7 = vmax.f32 %v2237_v5, 0.0  ;;  %v2234_v11 = vmul.f32 0.0078125, %v2232_v61 }
 0xb5f   :  { %v2243_v12 = vadd.f32 1e-12, %v2239_v7  ;;  %v2238_v13 = vsub.f32 %v2234_v11, %v2236_v6 }
 0xb61   :  { %5136 = vrsqrt.f32 %v2243_v12  ;;  %v2240_v10 = vmax.f32 %v2238_v13, 0.0 }
 0xb63   :  { %v2244_v14 = vadd.f32 1e-12, %v2240_v10 }
 0xb65   :  { %5138 = vrsqrt.f32 %v2244_v14 }
 0xb6e   :  { %v5137_v16 = vpop.eup %5136 }
 0xb6f   :  { %v2247_v17 = vmul.f32 %v5137_v16, %v2241_v15  ;;  %v5188_v16 = vld [vmem:[#allocation2] sm:$0xff] }
 0xb71   :  { %v2255_v23 = vmul.f32 %v4269_v18, %v2247_v17 }
 0xb72   :  { %v5139_v21 = vpop.eup %5138 }
 0xb73   :  { %v2248_v22 = vmul.f32 %v5139_v21, %v2242_v19  ;;  %v6104_v25 = vadd.f32 %v4270_v63, %v2255_v23 }
 0xb75   :  { %v2256_v24 = vmul.f32 %v4269_v18, %v2248_v22 }
 0xb77   :  { %v6106_v41 = vadd.f32 %v4270_v63, %v2256_v24 }
 0xb79   :  { %v2265_v26 = vpack.c.bf16 %v6106_v41, %v6104_v25 }
 0xb7b   :  { %2478 = vmatmul.mubr.bf16.vlgmr.msra.gmra.mxu1 %v2265_v26  ;;  %4717 = vmatmul.mubr.bf16.vlgmr.msra.gmra.mxu0 %v2265_v26 }
 0xb7c   :  { %4722 = vmatprep.mubr.msk.bf16.mxu1 %vm5605_vm4, %v5604_v20  ;;  %4746 = vmatprep.mubr.msk.bf16.mxu0 %vm5605_vm4, %v5604_v20 }
 0xc3b   :  { %v2479_v29 = vpop.f32.mrf.mxu1  ;;  %v2522_v30 = vpop.f32.mrf.mxu0 }
 0xc3c   :  { %v2480_v38 = vadd.f32 %v2479_v29, %v2305_v42  ;;  %v2523_v39 = vadd.f32 %v2522_v30, %v2313_v32  ;;  %v5189_v29 = vld [vmem:[#allocation2 + $0x8] sm:$0xff] }
 0xc3d   :  { %v2481_v34 = vpop.f32.mrf.mxu1  ;;  %v4718_v36 = vpop.f32.mrf.mxu0 }
 0xc3e   :  { %v2482_v47 = vadd.f32 %v2481_v34, %v2309_v8 }
 0xc3f   :  { %v2483_v37 = vpop.f32.mrf.mxu1  ;;  %v2525_v9 = vpop.f32.mrf.mxu0 }
 0xc40   :  { %v2484_v40 = vadd.f32 %v2483_v37, %v2305_v42  ;;  %v2526_v43 = vadd.f32 %v2525_v9, %v2313_v32 }
 0xc41   :  { %v2485_v45 = vpop.f32.mrf.mxu1  ;;  %v4719_v46 = vpop.f32.mrf.mxu0 }
 0xc42   :  { %v2529_v48 = vpack.c.bf16 %v2484_v40, %v2480_v38  ;;  %v6121_v49 = vpack.c.bf16 %v2526_v43, %v2523_v39  ;;  %v2486_v50 = vadd.f32 %v2485_v45, %v2309_v8  ;;  %v5190_v38 = vld [vmem:[#allocation2 + $0x10] sm:$0xff] }
 0xc44   :  { %v2530_v52 = vpack.c.bf16 %v2486_v50, %v2482_v47  ;;  %2533 = vrot.lane.b32.xlu1 %v2529_v48, %s5606_s4  ;;  %v2539_v55 = vrot.slane %v2529_v48, 4  ;;  %v3058_v61 = vsel %vm365_vm0, %v6121_v49, 0  ;;  %v5191_v47 = vld [vmem:[#allocation2 + $0x20] sm:$0xff] }
 0xc46   :  { %2547 = vrot.lane.b32.xlu0 %v2530_v52, %s5606_s4  ;;  %v2578_v28 = vsel %vm808_vm5, %v2530_v52, 0  ;;  %v2553_v44 = vrot.slane %v2530_v52, 4 }
 0xc47   :  { %4721 = vmatpush3.bf16.xpose.msra.mxu1 %v2578_v28 }
 0xc48   :  { %2549 = vrot.lane.b32.xlu1 %v2530_v52, %s5582_s30  ;;  %v2762_v53 = vsel %vm808_vm5, %v2553_v44, 0  ;;  %4726 = vmatprep.subr.bf16.mxu1 %v5604_v20 }
 0xc49   :  { %4745 = vmatpush3.bf16.xpose.msra.mxu0 %v2762_v53 }
 0xc4a   :  { %2535 = vrot.lane.b32.xlu0 %v2529_v48, %s5582_s30  ;;  %4756 = vmatprep.subr.bf16.mxu0 %v5604_v20 }
 0xc4c   :  { %2551 = vrot.lane.b32.xlu1 %v2530_v52, %s5599_s11 }
 0xc4e   :  { %2537 = vrot.lane.b32.xlu0 %v2529_v48, %s5599_s11  ;;  %4723 = vmatmul.mubr.msk.bf16.vlgmr.msra.gmra.mxu1 %vm808_vm5, %v2529_v48 }
 0xc4f   :  { %4728 = vmatprep.mubr.msk.bf16.mxu1 %vm5605_vm4, %v5604_v20 }
 0xc50   :  { %2554 = vrot.lane.b32.xlu1 %v2553_v44, %s5606_s4  ;;  %4747 = vmatmul.mubr.msk.bf16.vlgmr.msra.gmra.mxu0 %vm808_vm5, %v2539_v55 }
 0xc51   :  { %4758 = vmatprep.mubr.msk.bf16.mxu0 %vm5605_vm4, %v5604_v20 }
 0xc52   :  { %2556 = vrot.lane.b32.xlu0 %v2553_v44, %s5582_s30 }
 0xc54   :  { %2540 = vrot.lane.b32.xlu1 %v2539_v55, %s5606_s4 }
 0xc56   :  { %2558 = vrot.lane.b32.xlu0 %v2553_v44, %s5599_s11 }
 0xc58   :  { %2542 = vrot.lane.b32.xlu1 %v2539_v55, %s5582_s30 }
 0xc5a   :  { %2544 = vrot.lane.b32.xlu0 %v2539_v55, %s5599_s11 }
 0xcb6   :  { %v2534_v56 = vpop.permute.xlu1 %2533 }
 0xcb8   :  { %v2548_v57 = vpop.permute.xlu0 %2547 }
 0xcb9   :  { %v2624_v35 = vsel %vm808_vm5, %v2548_v57, 0 }
 0xcba   :  { %v2550_v58 = vpop.permute.xlu1 %2549  ;;  %4727 = vmatpush3.bf16.xpose.msra.mxu1 %v2624_v35 }
 0xcbb   :  { %4732 = vmatprep.subr.bf16.mxu1 %v5604_v20  ;;  %v2670_v1 = vsel %vm808_vm5, %v2550_v58, 0 }
 0xcbc   :  { %v2536_v59 = vpop.permute.xlu0 %2535 }
 0xcbe   :  { %v2552_v60 = vpop.permute.xlu1 %2551 }
 0xcbf   :  { %v2716_v54 = vsel %vm808_vm5, %v2552_v60, 0 }
 0xcc0   :  { %v2538_v62 = vpop.permute.xlu0 %2537 }
 0xcc1   :  { %4729 = vmatmul.mubr.msk.bf16.vlgmr.msra.gmra.mxu1 %vm808_vm5, %v2534_v56  ;;  %v5192_v56 = vld [vmem:[#allocation2 + $0x30] sm:$0xff] }
 0xcc2   :  { %v2555_v2 = vpop.permute.xlu1 %2554  ;;  %4733 = vmatpush3.bf16.xpose.msra.mxu1 %v2670_v1  ;;  %4734 = vmatprep.mubr.msk.bf16.mxu1 %vm5605_vm4, %v5604_v20 }
 0xcc3   :  { %4738 = vmatprep.subr.bf16.mxu1 %v5604_v20  ;;  %v2808_v6 = vsel %vm808_vm5, %v2555_v2, 0 }
 0xcc4   :  { %v2557_v3 = vpop.permute.xlu0 %2556 }
 0xcc5   :  { %v2854_v51 = vsel %vm808_vm5, %v2557_v3, 0 }
 0xcc6   :  { %v2541_v4 = vpop.permute.xlu1 %2540  ;;  %4757 = vmatpush3.bf16.xpose.msra.mxu0 %v2854_v51 }
 0xcc7   :  { %4768 = vmatprep.subr.bf16.mxu0 %v5604_v20 }
 0xcc8   :  { %v2559_v7 = vpop.permute.xlu0 %2558 }
 0xcc9   :  { %4735 = vmatmul.mubr.msk.bf16.vlgmr.msra.gmra.mxu1 %vm808_vm5, %v2536_v59  ;;  %v2900_v11 = vsel %vm808_vm5, %v2559_v7, 0  ;;  %v5193_v59 = vld [vmem:[#allocation2 + $0x18] sm:$0xff] }
 0xcca   :  { %4739 = vmatpush3.bf16.xpose.msra.mxu1 %v2716_v54  ;;  %4740 = vmatprep.mubr.msk.bf16.mxu1 %vm5605_vm4, %v5604_v20  ;;  %v2543_v5 = vpop.permute.xlu1 %2542 }
 0xccb   :  { %4750 = vmatprep.subr.bf16.mxu1 %v5604_v20 }
 0xccc   :  { %v2545_v12 = vpop.permute.xlu0 %2544 }
 0xccd   :  { %4759 = vmatmul.mubr.msk.bf16.vlgmr.msra.gmra.mxu0 %vm808_vm5, %v2543_v5  ;;  %v5194_v5 = vld [vmem:[#allocation2 + $0x28] sm:$0xff] }
 0xcce   :  { %4769 = vmatpush3.bf16.msra.mxu0 %v3058_v61  ;;  %4770 = vmatprep.mubr.msk.bf16.mxu0 %vm5605_vm4, %v5604_v20 }
 0xccf   :  { %4780 = vmatprep.subr.bf16.mxu0 %v5604_v20 }
 0xcd1   :  { %4741 = vmatmul.mubr.msk.bf16.vlgmr.msra.gmra.mxu1 %vm808_vm5, %v2538_v62 }
 0xcd2   :  { %4751 = vmatpush3.bf16.xpose.msra.mxu1 %v2808_v6  ;;  %4752 = vmatprep.mubr.msk.bf16.mxu1 %vm5605_vm4, %v5604_v20 }
 0xcd3   :  { %4762 = vmatprep.subr.bf16.mxu1 %v5604_v20 }
 0xcd9   :  { %4753 = vmatmul.mubr.msk.bf16.vlgmr.msra.gmra.mxu1 %vm808_vm5, %v2541_v4 }
 0xcda   :  { %4763 = vmatpush3.bf16.xpose.msra.mxu1 %v2900_v11  ;;  %4764 = vmatprep.mubr.msk.bf16.mxu1 %vm5605_vm4, %v5604_v20 }
 0xcdb   :  { %4774 = vmatprep.subr.bf16.mxu1 %v5604_v20 }
 0xce1   :  { %4765 = vmatmul.mubr.msk.bf16.vlgmr.msra.gmra.mxu1 %vm808_vm5, %v2545_v12 }
 0xce2   :  { %4776 = vmatprep.mubr.msk.bf16.mxu1 %vm5605_vm4, %v5604_v20 }
 0xd0e   :  { %v2614_v13 = vpop.f32.mrf.mxu1 }
 0xd0f   :  { %v2942_v10 = vmul.f32 0.17677669, %v2614_v13 }
 0xd10   :  { %v4724_v14 = vpop.f32.mrf.mxu1  ;;  %v2798_v15 = vpop.f32.mrf.mxu0 }
 0xd11   :  { %v2950_v17 = vadd.f32 %v5188_v16, %v2942_v10  ;;  %v2946_v8 = vmul.f32 0.17677669, %v2798_v15 }
 0xd12   :  { %v2617_v18 = vpop.f32.mrf.mxu1  ;;  %v4748_v19 = vpop.f32.mrf.mxu0 }
 0xd13   :  { %v2958_v21 = vsel %vm1193_vm6, %v2950_v17, -inf  ;;  %v2954_v48 = vadd.f32 %v5191_v47, %v2946_v8  ;;  %v5195_v18 = vld [vmem:[#allocation2 + $0x38] sm:$0xff] }
 0xd14   :  { %v4725_v22 = vpop.f32.mrf.mxu1  ;;  %2959 = vmax.xlane.f32.xlu1 %v2958_v21  ;;  %v2801_v23 = vpop.f32.mrf.mxu0 }
 0xd15   :  { %v2970_v55 = vsel %vm1193_vm6, %v2954_v48, -inf }
 0xd16   :  { %v4749_v63 = vpop.f32.mrf.mxu0 }
 0xd81   :  { %v2660_v24 = vpop.f32.mrf.mxu1 }
 0xd82   :  { %v2943_v26 = vmul.f32 0.17677669, %v2660_v24 }
 0xd83   :  { %v4730_v27 = vpop.f32.mrf.mxu1 }
 0xd84   :  { %v6179_v30 = vadd.f32 %v5189_v29, %v2943_v26 }
 0xd85   :  { %v2663_v42 = vpop.f32.mrf.mxu1 }
 0xd86   :  { %v2961_v32 = vsel %vm1193_vm6, %v6179_v30, -inf }
 0xd87   :  { %v4731_v34 = vpop.f32.mrf.mxu1  ;;  %2962 = vmax.xlane.f32.xlu0 %v2961_v32 }
 0xd89   :  { %v2706_v36 = vpop.f32.mrf.mxu1 }
 0xd8a   :  { %v2944_v37 = vmul.f32 0.17677669, %v2706_v36 }
 0xd8b   :  { %v4736_v9 = vpop.f32.mrf.mxu1 }
 0xd8c   :  { %v6183_v39 = vadd.f32 %v5190_v38, %v2944_v37 }
 0xd8d   :  { %v2709_v40 = vpop.f32.mrf.mxu1  ;;  %v2890_v43 = vpop.f32.mrf.mxu0 }
 0xd8e   :  { %v2948_v45 = vmul.f32 0.17677669, %v2890_v43  ;;  %v2964_v46 = vsel %vm1193_vm6, %v6183_v39, -inf }
 0xd8f   :  { %v4737_v50 = vpop.f32.mrf.mxu1  ;;  %2965 = vmax.xlane.f32.xlu0 %v2964_v46  ;;  %v4760_v52 = vpop.f32.mrf.mxu0 }
 0xd90   :  { %v2956_v57 = vadd.f32 %v5192_v56, %v2948_v45 }
 0xd91   :  { %v2752_v28 = vpop.f32.mrf.mxu1  ;;  %v2893_v44 = vpop.f32.mrf.mxu0 }
 0xd92   :  { %v2945_v53 = vmul.f32 0.17677669, %v2752_v28  ;;  %v2976_v2 = vsel %vm1193_vm6, %v2956_v57, -inf }
 0xd93   :  { %v4742_v35 = vpop.f32.mrf.mxu1  ;;  %2971 = vmax.xlane.f32.xlu0 %v2970_v55  ;;  %v4761_v58 = vpop.f32.mrf.mxu0 }
 0xd94   :  { %v6188_v60 = vadd.f32 %v5193_v59, %v2945_v53 }
 0xd95   :  { %v2755_v62 = vpop.f32.mrf.mxu1 }
 0xd96   :  { %v2967_v1 = vsel %vm1193_vm6, %v6188_v60, -inf }
 0xd97   :  { %v4743_v3 = vpop.f32.mrf.mxu1  ;;  %2968 = vmax.xlane.f32.xlu1 %v2967_v1  ;;  %2977 = vmax.xlane.f32.xlu0 %v2976_v2  ;;  %v2567_v1 = vrot.slane %v6121_v49, 4 }
 0xd99   :  { %v2844_v51 = vpop.f32.mrf.mxu1 }
 0xd9a   :  { %v2947_v4 = vmul.f32 0.17677669, %v2844_v51 }
 0xd9b   :  { %v4754_v54 = vpop.f32.mrf.mxu1 }
 0xd9c   :  { %v6193_v61 = vadd.f32 %v5194_v5, %v2947_v4 }
 0xd9d   :  { %v2847_v6 = vpop.f32.mrf.mxu1  ;;  %v2960_v7 = vpop.xlane.xlu1 %2959 }
 0xd9e   :  { %v2982_v11 = vsub.f32 %v2950_v17, %v2960_v7  ;;  %v2973_v12 = vsel %vm1193_vm6, %v6193_v61, -inf }
 0xd9f   :  { %2974 = vmax.xlane.f32.xlu1 %v2973_v12  ;;  %v4755_v13 = vpop.f32.mrf.mxu1 }
 0xda0   :  { %v2990_v10 = vmul.f32 1.442695, %v2982_v11 }
 0xda1   :  { %v2936_v14 = vpop.f32.mrf.mxu1 }
 0xda2   :  { %5140 = vpow2.f32 %v2990_v10  ;;  %v2949_v15 = vmul.f32 0.17677669, %v2936_v14 }
 0xda3   :  { %v4766_v16 = vpop.f32.mrf.mxu1 }
 0xda4   :  { %v2957_v19 = vadd.f32 %v5195_v18, %v2949_v15 }
 0xda5   :  { %v2939_v21 = vpop.f32.mrf.mxu1 }
 0xda6   :  { %v2979_v22 = vsel %vm1193_vm6, %v2957_v19, -inf }
 0xda7   :  { %2980 = vmax.xlane.f32.xlu1 %v2979_v22  ;;  %v4767_v23 = vpop.f32.mrf.mxu1 }
 0xdaf   :  { %v5141_v63 = vpop.eup %5140 }
 0xdb0   :  { %v3006_v17 = vsel %vm1193_vm6, %v5141_v63, 0.0 }
 0xdb1   :  { %3007 = vadd.xlane.f32.xlu0 %v3006_v17  ;;  %v3242_v17 = vsel %vm365_vm0, %v2567_v1, 0 }
 0xe10   :  { %v2963_v24 = vpop.xlane.xlu0 %2962 }
 0xe11   :  { %v2983_v26 = vsub.f32 %v6179_v30, %v2963_v24 }
 0xe13   :  { %v2992_v27 = vmul.f32 1.442695, %v2983_v26 }
 0xe15   :  { %5142 = vpow2.f32 %v2992_v27 }
 0xe18   :  { %v2966_v29 = vpop.xlane.xlu0 %2965 }
 0xe19   :  { %v2984_v36 = vsub.f32 %v6183_v39, %v2966_v29 }
 0xe1b   :  { %v2994_v43 = vmul.f32 1.442695, %v2984_v36 }
 0xe1c   :  { %v2972_v42 = vpop.xlane.xlu0 %2971 }
 0xe1d   :  { %v2986_v32 = vsub.f32 %v2954_v48, %v2972_v42 }
 0xe1f   :  { %v2998_v34 = vmul.f32 1.442695, %v2986_v32 }
 0xe20   :  { %v2978_v8 = vpop.xlane.xlu0 %2977  ;;  %v2969_v52 = vpop.xlane.xlu1 %2968 }
 0xe21   :  { %5144 = vpow2.f32 %v2998_v34  ;;  %v2988_v37 = vsub.f32 %v2956_v57, %v2978_v8  ;;  %v2985_v28 = vsub.f32 %v6188_v60, %v2969_v52 }
 0xe22   :  { %v5143_v9 = vpop.eup %5142 }
 0xe23   :  { %v3002_v38 = vmul.f32 1.442695, %v2988_v37  ;;  %v3009_v40 = vsel %vm1193_vm6, %v5143_v9, 0.0  ;;  %v2996_v55 = vmul.f32 1.442695, %v2985_v28 }
 0xe24   :  { %3010 = vadd.xlane.f32.xlu1 %v3009_v40 }
 0xe25   :  { %5146 = vpow2.f32 %v3002_v38 }
 0xe26   :  { %5148 = vpow2.f32 %v2994_v43 }
 0xe28   :  { %v2975_v44 = vpop.xlane.xlu1 %2974 }
 0xe29   :  { %v2987_v56 = vsub.f32 %v6193_v61, %v2975_v44 }
 0xe2b   :  { %v3000_v59 = vmul.f32 1.442695, %v2987_v56 }
 0xe2e   :  { %v6202_v30 = vpop.eup %5144 }
 0xe2f   :  { %v3018_v45 = vsel %vm1193_vm6, %v6202_v30, 0.0 }
 0xe30   :  { %3019 = vadd.xlane.f32.xlu0 %v3018_v45  ;;  %v2981_v57 = vpop.xlane.xlu1 %2980 }
 0xe31   :  { %v2989_v62 = vsub.f32 %v2957_v19, %v2981_v57  ;;  %v5032_v57 = vld [vmem:[#allocation14 + $0x78] sm:$0xff]  }
 0xe32   :  { %v6206_v46 = vpop.eup %5146 }
 0xe33   :  { %v3024_v39 = vsel %vm1193_vm6, %v6206_v46, 0.0  ;;  %v6210_v47 = vpop.eup %5148  ;;  %v3004_v60 = vmul.f32 1.442695, %v2989_v62 }
 0xe34   :  { %3025 = vadd.xlane.f32.xlu0 %v3024_v39  ;;  %v3012_v48 = vsel %vm1193_vm6, %v6210_v47, 0.0 }
 0xe35   :  { %2563 = vrot.lane.b32.xlu1 %v6121_v49, %s5582_s30 }
 0xe38   :  { %3013 = vadd.xlane.f32.xlu0 %v3012_v48 }
 0xe39   :  { %2565 = vrot.lane.b32.xlu1 %v6121_v49, %s5599_s11 }
 0xe3a   :  { %v3008_v50 = vpop.xlane.xlu0 %3007 }
 0xe3b   :  { %5150 = vrcp.f32 %v3008_v50 }
 0xe3c   :  { %5152 = vpow2.f32 %v2996_v55 }
 0xe3d   :  { %5154 = vpow2.f32 %v3000_v59 }
 0xe3e   :  { %5156 = vpow2.f32 %v3004_v60 }
 0xe48   :  { %v5151_v53 = vpop.eup %5150 }
 0xe49   :  { %v3038_v35 = vmul.f32 %v5151_v53, %v5141_v63  ;;  %v5153_v2 = vpop.eup %5152 }
 0xe4a   :  { %v3015_v3 = vsel %vm1193_vm6, %v5153_v2, 0.0  ;;  %v6229_v51 = vpop.eup %5154 }
 0xe4b   :  { %v3046_v58 = vpack.c.bf16 %v3038_v35, %v3038_v35  ;;  %v3021_v4 = vsel %vm1193_vm6, %v6229_v51, 0.0  ;;  %v6233_v54 = vpop.eup %5156  ;;  %v5033_v35 = vld [vmem:[#allocation14 + $0x70] sm:$0xff]  }
 0xe4d   :  { %4771 = vmatmul.mubr.msk.bf16.vlgmr.msra.gmra.mxu0 %vm1193_vm6, %v3046_v58 }
 0xe4e   :  { %4782 = vmatprep.mubr.msk.bf16.mxu0 %vm5605_vm4, %v5604_v20  ;;  %2561 = vrot.lane.b32.xlu0 %v6121_v49, %s5606_s4  ;;  %v3027_v49 = vsel %vm1193_vm6, %v6233_v54, 0.0 }
 0xe52   :  { %2568 = vrot.lane.b32.xlu0 %v2567_v1, %s5606_s4 }
 0xe56   :  { %2572 = vrot.lane.b32.xlu0 %v2567_v1, %s5599_s11 }
 0xe5d   :  { %3016 = vadd.xlane.f32.xlu1 %v3015_v3 }
 0xe61   :  { %3022 = vadd.xlane.f32.xlu1 %v3021_v4 }
 0xe65   :  { %3028 = vadd.xlane.f32.xlu1 %v3027_v49 }
 0xe76   :  { %2570 = vrot.lane.b32.xlu1 %v2567_v1, %s5582_s30 }
 0xead   :  { %v3011_v5 = vpop.xlane.xlu1 %3010 }
 0xeae   :  { %5158 = vrcp.f32 %v3011_v5  ;;  %v5034_v5 = vld [vmem:[#allocation14 + $0x68] sm:$0xff]  }
 0xeb1   :  { %v2564_v61 = vpop.permute.xlu1 %2563 }
 0xeb2   :  { %v3150_v6 = vsel %vm365_vm0, %v2564_v61, 0  ;;  %v5035_v61 = vld [vmem:[#allocation14 + $0x60] sm:$0xff]  }
 0xeb3   :  { %4781 = vmatpush3.bf16.msra.mxu0 %v3150_v6  ;;  %v5036_v6 = vld [vmem:[#allocation14 + $0x58] sm:$0xff]  }
 0xeb4   :  { %4792 = vmatprep.subr.bf16.mxu0 %v5604_v20 }
 0xeb5   :  { %v2566_v16 = vpop.permute.xlu1 %2565 }
 0xeb6   :  { %v3196_v19 = vsel %vm365_vm0, %v2566_v16, 0  ;;  %v5038_v16 = vld [vmem:[#allocation14 + $0x48] sm:$0xff]  }
 0xeb9   :  { %v3020_v7 = vpop.xlane.xlu0 %3019 }
 0xebb   :  { %v5159_v12 = vpop.eup %5158 }
 0xebc   :  { %v3039_v10 = vmul.f32 %v5159_v12, %v5143_v9 }
 0xebd   :  { %v3026_v11 = vpop.xlane.xlu0 %3025 }
 0xebe   :  { %v3047_v18 = vpack.c.bf16 %v3039_v10, %v3039_v10  ;;  %v5037_v10 = vld [vmem:[#allocation14 + $0x50] sm:$0xff]  }
 0xec1   :  { %v3014_v13 = vpop.xlane.xlu0 %3013 }
 0xec2   :  { %5160 = vrcp.f32 %v3014_v13 }
 0xec3   :  { %5162 = vrcp.f32 %v3020_v7 }
 0xec4   :  { %5164 = vrcp.f32 %v3026_v11 }
 0xec5   :  { %v2562_v14 = vpop.permute.xlu0 %2561 }
 0xec6   :  { %v3104_v15 = vsel %vm365_vm0, %v2562_v14, 0 }
 0xec7   :  { %4775 = vmatpush3.bf16.msra.mxu1 %v3104_v15 }
 0xec8   :  { %4786 = vmatprep.subr.bf16.mxu1 %v5604_v20 }
 0xec9   :  { %v2569_v40 = vpop.permute.xlu0 %2568 }
 0xeca   :  { %4777 = vmatmul.mubr.msk.bf16.vlgmr.msra.gmra.mxu1 %vm1193_vm6, %v3047_v18  ;;  %v3288_v45 = vsel %vm365_vm0, %v2569_v40, 0 }
 0xecb   :  { %4787 = vmatpush3.bf16.msra.mxu1 %v3196_v19  ;;  %4788 = vmatprep.mubr.msk.bf16.mxu1 %vm5605_vm4, %v5604_v20 }
 0xecc   :  { %4798 = vmatprep.subr.bf16.mxu1 %v5604_v20 }
 0xecd   :  { %v2573_v39 = vpop.permute.xlu0 %2572 }
 0xece   :  { %v3380_v50 = vsel %vm365_vm0, %v2573_v39, 0 }
 0xecf   :  { %v5161_v21 = vpop.eup %5160 }
 0xed0   :  { %v3040_v22 = vmul.f32 %v5161_v21, %v6210_v47  ;;  %v5163_v63 = vpop.eup %5162 }
 0xed1   :  { %v3042_v24 = vmul.f32 %v5163_v63, %v6202_v30  ;;  %v5165_v42 = vpop.eup %5164 }
 0xed2   :  { %v3048_v23 = vpack.c.bf16 %v3040_v22, %v3040_v22  ;;  %v3044_v34 = vmul.f32 %v5165_v42, %v6206_v46 }
 0xed3   :  { %v3050_v26 = vpack.c.bf16 %v3042_v24, %v3042_v24 }
 0xed4   :  { %4783 = vmatmul.mubr.msk.bf16.vlgmr.msra.gmra.mxu0 %vm1193_vm6, %v3048_v23  ;;  %v3052_v9 = vpack.c.bf16 %v3044_v34, %v3044_v34  ;;  %v5039_v23 = vld [vmem:[#allocation14 + $0x40] sm:$0xff]  }
 0xed5   :  { %4793 = vmatpush3.bf16.msra.mxu0 %v3242_v17  ;;  %4794 = vmatprep.mubr.msk.bf16.mxu0 %vm5605_vm4, %v5604_v20 }
 0xed6   :  { %4804 = vmatprep.subr.bf16.mxu0 %v5604_v20 }
 0xedc   :  { %4795 = vmatmul.mubr.msk.bf16.vlgmr.msra.gmra.mxu0 %vm1193_vm6, %v3050_v26 }
 0xedd   :  { %4806 = vmatprep.mubr.msk.bf16.mxu0 %vm5605_vm4, %v5604_v20 }
 0xee6   :  { %v3017_v27 = vpop.xlane.xlu1 %3016 }
 0xee7   :  { %5166 = vrcp.f32 %v3017_v27 }
 0xeea   :  { %v3023_v29 = vpop.xlane.xlu1 %3022 }
 0xeeb   :  { %5168 = vrcp.f32 %v3023_v29 }
 0xeee   :  { %v3029_v32 = vpop.xlane.xlu1 %3028 }
 0xeef   :  { %5170 = vrcp.f32 %v3029_v32 }
 0xef2   :  { %v2571_v36 = vpop.permute.xlu1 %2570 }
 0xef3   :  { %v3334_v8 = vsel %vm365_vm0, %v2571_v36, 0 }
 0xef4   :  { %v5167_v37 = vpop.eup %5166  ;;  %4805 = vmatpush3.bf16.msra.mxu0 %v3334_v8 }
 0xef5   :  { %v3041_v38 = vmul.f32 %v5167_v37, %v5153_v2  ;;  %4816 = vmatprep.subr.bf16.mxu0 %v5604_v20 }
 0xef7   :  { %4807 = vmatmul.mubr.msk.bf16.vlgmr.msra.gmra.mxu0 %vm1193_vm6, %v3052_v9  ;;  %v3049_v43 = vpack.c.bf16 %v3041_v38, %v3041_v38 }
 0xef8   :  { %v5169_v30 = vpop.eup %5168  ;;  %4832 = vmatprep.mubr.msk.bf16.mxu0 %vm5605_vm4, %v5604_v20  ;;  %4817 = vmatpush3.bf16.msra.mxu0 %v5032_v57 }
 0xef9   :  { %4789 = vmatmul.mubr.msk.bf16.vlgmr.msra.gmra.mxu1 %vm1193_vm6, %v3049_v43  ;;  %v3043_v46 = vmul.f32 %v5169_v30, %v6229_v51  ;;  %4818 = vmatprep.subr.bf16.mxu0 %v5604_v20 }
 0xefa   :  { %4799 = vmatpush3.bf16.msra.mxu1 %v3288_v45  ;;  %4800 = vmatprep.mubr.msk.bf16.mxu1 %vm5605_vm4, %v5604_v20 }
 0xefb   :  { %4810 = vmatprep.subr.bf16.mxu1 %v5604_v20  ;;  %v3051_v47 = vpack.c.bf16 %v3043_v46, %v3043_v46 }
 0xefc   :  { %v5171_v48 = vpop.eup %5170  ;;  %4819 = vmatpush3.bf16.msra.mxu0 %v5033_v35 }
 0xefd   :  { %v3045_v52 = vmul.f32 %v5171_v48, %v6233_v54  ;;  %4820 = vmatprep.subr.bf16.mxu0 %v5604_v20 }
 0xeff   :  { %v3053_v28 = vpack.c.bf16 %v3045_v52, %v3045_v52 }
 0xf00   :  { %4821 = vmatpush3.bf16.msra.mxu0 %v5034_v5  ;;  %v5052_v5 = vld [vmem:[#allocation20 + $0xb0] ss:$8 sps:$4 sm:$0xff]  }
 0xf01   :  { %4801 = vmatmul.mubr.msk.bf16.vlgmr.msra.gmra.mxu1 %vm1193_vm6, %v3051_v47  ;;  %4822 = vmatprep.subr.bf16.mxu0 %v5604_v20 }
 0xf02   :  { %4811 = vmatpush3.bf16.msra.mxu1 %v3380_v50  ;;  %4812 = vmatprep.mubr.msk.bf16.mxu1 %vm5605_vm4, %v5604_v20 }
 0xf04   :  { %4823 = vmatpush3.bf16.msra.mxu0 %v5035_v61  ;;  %v5057_v61 = vld [vmem:[#allocation20 + $0xa4] ss:$8 sps:$4 sm:$0xff]  }
 0xf05   :  { %4824 = vmatprep.subr.bf16.mxu0 %v5604_v20 }
 0xf08   :  { %4825 = vmatpush3.bf16.msra.mxu0 %v5036_v6  ;;  %v5055_v6 = vld [vmem:[#allocation20 + $0xa0] ss:$8 sps:$4 sm:$0xff]  }
 0xf09   :  { %4813 = vmatmul.mubr.msk.bf16.vlgmr.msra.gmra.mxu1 %vm1193_vm6, %v3053_v28  ;;  %4826 = vmatprep.subr.bf16.mxu0 %v5604_v20 }
 0xf0a   :  { %3760 = vmatprep.mubr.bf16.mxu1 %v5603_v0 }
 0xf0c   :  { %4827 = vmatpush3.bf16.msra.mxu0 %v5037_v10 }
 0xf0d   :  { %v6276_v44 = vpop.f32.mrf.mxu0  ;;  %4828 = vmatprep.subr.bf16.mxu0 %v5604_v20 }
 0xf0f   :  { %v4772_v53 = vpop.f32.mrf.mxu0 }
 0xf10   :  { %4829 = vmatpush3.bf16.msra.mxu0 %v5038_v16  ;;  %v4312_v53 = vld [vmem:[#allocation16 + $0x1] ss:$0 sm:$0xff] }
 0xf11   :  { %v3097_v55 = vpop.f32.mrf.mxu0  ;;  %4830 = vmatprep.subr.bf16.mxu0 %v5604_v20 }
 0xf13   :  { %v4773_v56 = vpop.f32.mrf.mxu0 }
 0xf14   :  { %4831 = vmatpush3.bf16.msra.mxu0 %v5039_v23 }
 0xf8a   :  { %v3140_v58 = vpop.f32.mrf.mxu1 }
 0xf8c   :  { %v4778_v59 = vpop.f32.mrf.mxu1 }
 0xf8e   :  { %v3143_v62 = vpop.f32.mrf.mxu1 }
 0xf90   :  { %v4779_v60 = vpop.f32.mrf.mxu1 }
 0xf94   :  { %v3186_v1 = vpop.f32.mrf.mxu0 }
 0xf96   :  { %v4784_v2 = vpop.f32.mrf.mxu0 }
 0xf97   :  { %v5040_v2 = vld [vmem:[#allocation20 + $0xf0] ss:$8 sps:$4 sm:$0xff]  }
 0xf98   :  { %v3189_v0 = vpop.f32.mrf.mxu0 }
 0xf99   :  { %v5045_v0 = vld [vmem:[#allocation20 + $0xe4] ss:$8 sps:$4 sm:$0xff]  }
 0xf9a   :  { %v4785_v3 = vpop.f32.mrf.mxu0 }
 0xf9b   :  { %v5043_v3 = vld [vmem:[#allocation20 + $0xe0] ss:$8 sps:$4 sm:$0xff]  }
 0xf9c   :  { %v3278_v51 = vpop.f32.mrf.mxu0 }
 0xf9e   :  { %v4796_v4 = vpop.f32.mrf.mxu0 }
 0xf9f   :  { %v5051_v4 = vld [vmem:[#allocation20 + $0xc4] ss:$8 sps:$4 sm:$0xff]  }
 0xfa0   :  { %v3281_v54 = vpop.f32.mrf.mxu0 }
 0xfa1   :  { %v5049_v54 = vld [vmem:[#allocation20 + $0xc0] ss:$8 sps:$4 sm:$0xff]  }
 0xfa2   :  { %v4797_v49 = vpop.f32.mrf.mxu0 }
 0xfa3   :  { %v5054_v49 = vld [vmem:[#allocation20 + $0xb4] ss:$8 sps:$4 sm:$0xff]  }
 0xfb7   :  { %v3370_v7 = vpop.f32.mrf.mxu0 }
 0xfb8   :  { %v4910_v11 = vpack.i.bf16 %v3370_v7, %v3186_v1  ;;  %v5060_v7 = vld [vmem:[#allocation20 + $0x94] ss:$8 sps:$4 sm:$0xff]  }
 0xfb9   :  { %v3232_v12 = vpop.f32.mrf.mxu1  ;;  %v4808_v13 = vpop.f32.mrf.mxu0 }
 0xfba   :  { %4911 = vrot.lane.b32.xlu0 %v4910_v11, %s5582_s30  ;;  %v5058_v11 = vld [vmem:[#allocation20 + $0x90] ss:$8 sps:$4 sm:$0xff]   ;;  %v5061_v13 = vld [vmem:[#allocation20 + $0x80] ss:$8 sps:$4 sm:$0xff]  }
 0xfbb   :  { %v4790_v14 = vpop.f32.mrf.mxu1  ;;  %v3373_v15 = vpop.f32.mrf.mxu0 }
 0xfbd   :  { %v3235_v18 = vpop.f32.mrf.mxu1  ;;  %v4809_v19 = vpop.f32.mrf.mxu0 }
 0xfbf   :  { %v4791_v21 = vpop.f32.mrf.mxu1 }
 0xfc1   :  { %v3324_v22 = vpop.f32.mrf.mxu1 }
 0xfc2   :  { %v4905_v63 = vpack.i.bf16 %v3324_v22, %v3140_v58 }
 0xfc3   :  { %v4802_v17 = vpop.f32.mrf.mxu1 }
 0xfc4   :  { %4906 = vrot.lane.b32.xlu1 %v4905_v63, %s5599_s11 }
 0xfc5   :  { %v3327_v24 = vpop.f32.mrf.mxu1 }
 0xfc7   :  { %v4803_v26 = vpop.f32.mrf.mxu1 }
 0xfc9   :  { %v3416_v27 = vpop.f32.mrf.mxu1 }
 0xfca   :  { %v4915_v29 = vpack.i.bf16 %v3416_v27, %v3232_v12  ;;  %v5063_v12 = vld [vmem:[#allocation20 + $0x84] ss:$8 sps:$4 sm:$0xff]  }
 0xfcb   :  { %v4814_v42 = vpop.f32.mrf.mxu1 }
 0xfcc   :  { %4916 = vrot.lane.b32.xlu1 %v4915_v29, %s5606_s4 }
 0xfcd   :  { %v3419_v32 = vpop.f32.mrf.mxu1 }
 0xfcf   :  { %v4815_v34 = vpop.f32.mrf.mxu1 }
0x102c   :  { %v4912_v9 = vpop.permute.xlu0 %4911 }
0x102d   :  { %v4914_v43 = vunpack.i.h.bf16 %v4912_v9  ;;  %v4913_v30 = vunpack.i.l.bf16 %v4912_v9 }
0x1036   :  { %v4907_v36 = vpop.permute.xlu1 %4906 }
0x1037   :  { %v4909_v8 = vunpack.i.h.bf16 %v4907_v36  ;;  %v4908_v37 = vunpack.i.l.bf16 %v4907_v36 }
0x1039   :  { %v3434_v38 = vsel %vm808_vm5, %v6276_v44, %v4908_v37  ;;  %v3449_v40 = vsel %vm808_vm5, %v3278_v51, %v4909_v8  ;;  %v5046_v51 = vld [vmem:[#allocation20 + $0xd0] ss:$8 sps:$4 sm:$0xff]   ;;  %v4321_v8 = vld [vmem:[#allocation17 + $0x1] ss:$0 sm:$0xff] }
0x103a   :  { %v3435_v47 = vsel %vm1671_vm7, %v3434_v38, %v4913_v30  ;;  %v3450_v48 = vsel %vm1671_vm7, %v3449_v40, %v4914_v43  ;;  %v4322_v43 = vld [vmem:[#allocation19 + $0x1] ss:$0 sm:$0xff] }
0x103e   :  { %v4917_v45 = vpop.permute.xlu1 %4916 }
0x103f   :  { %v4919_v46 = vunpack.i.h.bf16 %v4917_v45  ;;  %v4918_v39 = vunpack.i.l.bf16 %v4917_v45 }
0x1041   :  { %v3436_v50 = vsel %vm1673_vm8, %v3435_v47, %v4918_v39  ;;  %v3451_v52 = vsel %vm1673_vm8, %v3450_v48, %v4919_v46  ;;  %v5064_v47 = vld [vmem:[#allocation23 + $0xf8] sm:$0xff]  }
0x1042   :  { %v3452_v28 = vpack.c.bf16 %v3451_v52, %v3436_v50  ;;  %v5065_v48 = vld [vmem:[#allocation23 + $0xb8] sm:$0xff]   ;;  %4504 = vmatprep.subr.bf16.mxu0 %v5064_v47  ;;  %v5066_v50 = vld [vmem:[#allocation23 + $0xf0] sm:$0xff]  }
0x1043   :  { %v5067_v52 = vld [vmem:[#allocation23 + $0xb0] sm:$0xff]  }
0x1044   :  { %4833 = vmatmul.mubr.bf16.vlgmr.msra.gmra.mxu0 %v3452_v28  ;;  %v5068_v28 = vld [vmem:[#allocation23 + $0xe8] sm:$0xff]  }
0x1045   :  { %4505 = vmatpush3.bf16.msra.mxu0 %v5065_v48 }
0x1046   :  { %4506 = vmatprep.subr.bf16.mxu0 %v5066_v50 }
0x1049   :  { %4507 = vmatpush3.bf16.msra.mxu0 %v5067_v52 }
0x104a   :  { %4508 = vmatprep.subr.bf16.mxu0 %v5068_v28 }
0x1104   :  { %v3560_v55 = vpop.f32.mrf.mxu0 }
0x1105   :  { %v3561_v44 = vadd.f32 %v4312_v53, %v3560_v55  ;;  %v5070_v55 = vld [vmem:[#allocation23 + $0xe0] sm:$0xff]  }
0x1106   :  { %v4834_v56 = vpop.f32.mrf.mxu0 }
0x1107   :  { %v6296_v57 = vadd.f32 %v3561_v44, %v6104_v25  ;;  %v5042_v25 = vld [vmem:[#allocation20 + $0xf4] ss:$8 sps:$4 sm:$0xff]   ;;  %v5071_v44 = vld [vmem:[#allocation23 + $0xa0] sm:$0xff]  }
0x1108   :  { %v3563_v35 = vpop.f32.mrf.mxu0  ;;  %3728 = vmatprep.subr.bf16.mxu1 %v5042_v25  ;;  %v5072_v56 = vld [vmem:[#allocation23 + $0xd8] sm:$0xff]  }
0x1109   :  { %v3564_v58 = vadd.f32 %v4312_v53, %v3563_v35  ;;  %3573 = vadd.xlane.f32.xlu0 %v6296_v57  ;;  %v3579_v60 = vmul.f32 %v6296_v57, %v6296_v57  ;;  %3729 = vmatpush1.bf16.msra.mxu1 %v5040_v2  ;;  %v5069_v53 = vld [vmem:[#allocation23 + $0xa8] sm:$0xff]   ;;  %v5074_v35 = vld [vmem:[#allocation23 + $0xd0] sm:$0xff]   ;;  %v3636_v25 = vld [vmem:[#allocation22 + $0x2] sm:$0x3] }
0x110a   :  { %v4835_v59 = vpop.f32.mrf.mxu0  ;;  %3730 = vmatprep.subr.bf16.mxu1 %v5045_v0  ;;  %4509 = vmatpush3.bf16.msra.mxu0 %v5069_v53  ;;  %v3641_v2 = vrot.slane %v3636_v25, %v5838_v33  ;;  %v3645_v0 = vrot.slane %v3636_v25, %v5835_v31  ;;  %v4339_v53 = vld [vmem:[#allocation25 + $0x1] ss:$0 sm:$0xff] }
0x110b   :  { %v6300_v62 = vadd.f32 %v3564_v58, %v6106_v41  ;;  %v5048_v41 = vld [vmem:[#allocation20 + $0xd4] ss:$8 sps:$4 sm:$0xff]   ;;  %4510 = vmatprep.subr.bf16.mxu0 %v5070_v55  ;;  %v5076_v59 = vld [vmem:[#allocation23 + $0xc8] sm:$0xff]  }
0x110c   :  { %v5075_v58 = vld [vmem:[#allocation23 + $0x90] sm:$0xff]  }
0x110d   :  { %3581 = vadd.xlane.f32.xlu0 %v3579_v60  ;;  %3575 = vadd.xlane.f32.xlu1 %v6300_v62  ;;  %v3580_v1 = vmul.f32 %v6300_v62, %v6300_v62  ;;  %v5078_v60 = vld [vmem:[#allocation23 + $0xc0] sm:$0xff]  }
0x110e   :  { %3731 = vmatpush1.bf16.msra.mxu1 %v5043_v3  ;;  %4511 = vmatpush3.bf16.msra.mxu0 %v5071_v44 }
0x110f   :  { %3732 = vmatprep.subr.bf16.mxu1 %v5048_v41  ;;  %4512 = vmatprep.subr.bf16.mxu0 %v5072_v56 }
0x1111   :  { %3583 = vadd.xlane.f32.xlu0 %v3580_v1  ;;  %v5079_v1 = vld [vmem:[#allocation23 + $0x80] sm:$0xff]  }
0x1112   :  { %3733 = vmatpush1.bf16.msra.mxu1 %v5046_v51 }
0x1113   :  { %3734 = vmatprep.subr.bf16.mxu1 %v5051_v4 }
0x1116   :  { %3735 = vmatpush1.bf16.msra.mxu1 %v5049_v54 }
0x1117   :  { %3736 = vmatprep.subr.bf16.mxu1 %v5054_v49 }
0x111a   :  { %3737 = vmatpush1.bf16.msra.mxu1 %v5052_v5 }
0x111b   :  { %3738 = vmatprep.subr.bf16.mxu1 %v5057_v61 }
0x111e   :  { %3739 = vmatpush1.bf16.msra.mxu1 %v5055_v6 }
0x111f   :  { %3740 = vmatprep.subr.bf16.mxu1 %v5060_v7 }
0x1122   :  { %3741 = vmatpush1.bf16.msra.mxu1 %v5058_v11 }
0x1123   :  { %3742 = vmatprep.subr.bf16.mxu1 %v5063_v12 }
0x1126   :  { %3743 = vmatpush1.bf16.msra.mxu1 %v5061_v13 }
0x1127   :  { %4836 = vmatprep.subr.bf16.mxu1 %v5604_v20 }
0x1192   :  { %v3574_v10 = vpop.xlane.xlu0 %3573 }
0x1193   :  { %v3577_v14 = vmul.f32 0.0078125, %v3574_v10 }
0x1195   :  { %v3587_v18 = vmul.f32 %v3577_v14, %v3577_v14  ;;  %v3593_v32 = vsub.f32 %v6296_v57, %v3577_v14  ;;  %v5073_v57 = vld [vmem:[#allocation23 + $0x98] sm:$0xff]  }
0x1196   :  { %v3582_v15 = vpop.xlane.xlu0 %3581  ;;  %v3576_v16 = vpop.xlane.xlu1 %3575  ;;  %4513 = vmatpush3.bf16.msra.mxu0 %v5073_v57 }
0x1197   :  { %v3585_v19 = vmul.f32 0.0078125, %v3582_v15  ;;  %v3578_v21 = vmul.f32 0.0078125, %v3576_v16  ;;  %4514 = vmatprep.subr.bf16.mxu0 %v5074_v35 }
0x1199   :  { %v3589_v22 = vsub.f32 %v3585_v19, %v3587_v18  ;;  %v3588_v17 = vmul.f32 %v3578_v21, %v3578_v21  ;;  %v3594_v37 = vsub.f32 %v6300_v62, %v3578_v21  ;;  %v5077_v62 = vld [vmem:[#allocation23 + $0x88] sm:$0xff]  }
0x119a   :  { %v3584_v23 = vpop.xlane.xlu0 %3583  ;;  %4515 = vmatpush3.bf16.msra.mxu0 %v5075_v58 }
0x119b   :  { %v3591_v63 = vmax.f32 %v3589_v22, 0.0  ;;  %v3586_v24 = vmul.f32 0.0078125, %v3584_v23  ;;  %4516 = vmatprep.subr.bf16.mxu0 %v5076_v59 }
0x119d   :  { %v3595_v26 = vadd.f32 1e-12, %v3591_v63  ;;  %v3590_v27 = vsub.f32 %v3586_v24, %v3588_v17 }
0x119e   :  { %4517 = vmatpush3.bf16.msra.mxu0 %v5077_v62 }
0x119f   :  { %5172 = vrsqrt.f32 %v3595_v26  ;;  %v3592_v29 = vmax.f32 %v3590_v27, 0.0  ;;  %4518 = vmatprep.subr.bf16.mxu0 %v5078_v60 }
0x11a1   :  { %v3596_v42 = vadd.f32 1e-12, %v3592_v29 }
0x11a2   :  { %4519 = vmatpush3.bf16.msra.mxu0 %v5079_v1 }
0x11a3   :  { %5174 = vrsqrt.f32 %v3596_v42 }
0x11ac   :  { %v5173_v34 = vpop.eup %5172 }
0x11ad   :  { %v3599_v36 = vmul.f32 %v5173_v34, %v3593_v32 }
0x11af   :  { %v3607_v40 = vmul.f32 %v4321_v8, %v3599_v36 }
0x11b0   :  { %v5175_v9 = vpop.eup %5174 }
0x11b1   :  { %v3600_v38 = vmul.f32 %v5175_v9, %v3594_v37  ;;  %v6310_v45 = vadd.f32 %v4322_v43, %v3607_v40 }
0x11b3   :  { %v3608_v30 = vmul.f32 %v4321_v8, %v3600_v38 }
0x11b5   :  { %v6312_v46 = vadd.f32 %v4322_v43, %v3608_v30 }
0x11b7   :  { %v3617_v39 = vpack.c.bf16 %v6312_v46, %v6310_v45 }
0x11b9   :  { %3761 = vmatmul.mubr.bf16.vlgmr.msra.gmra.mxu1 %v3617_v39 }
0x11ba   :  { %4852 = vmatprep.mubr.msk.bf16.mxu1 %vm5605_vm4, %v5604_v20 }
0x1279   :  { %v3762_v3 = vpop.f32.mrf.mxu1 }
0x127a   :  { %v3763_v41 = vadd.f32 %v3762_v3, %v3641_v2  ;;  %v5084_v3 = vld [vmem:[%s6379_s20 + $0x18] sm:$0xff]  }
0x127b   :  { %v3764_v51 = vpop.f32.mrf.mxu1 }
0x127c   :  { %v3775_v4 = vmul.f32 0.044715, %v3763_v41  ;;  %v3765_v54 = vadd.f32 %v3764_v51, %v3645_v0  ;;  %v3771_v43 = vmul.f32 0.5, %v3763_v41  ;;  %v5086_v51 = vld [vmem:[%s6379_s20 + $0x8] sm:$0xff]  }
0x127d   :  { %v3766_v49 = vpop.f32.mrf.mxu1 }
0x127e   :  { %v3779_v5 = vmul.f32 %v3775_v4, %v3763_v41  ;;  %v3776_v61 = vmul.f32 0.044715, %v3765_v54  ;;  %v3767_v6 = vadd.f32 %v3766_v49, %v3641_v2  ;;  %v3772_v9 = vmul.f32 0.5, %v3765_v54  ;;  %v5080_v2 = vld [vmem:[%s6379_s20 + $0x38] sm:$0xff]   ;;  %v5087_v4 = vld [vmem:[%s6379_s20] sm:$0xff]  }
0x127f   :  { %v3768_v7 = vpop.f32.mrf.mxu1  ;;  %4837 = vmatpush3.bf16.msra.mxu1 %v5080_v2 }
0x1280   :  { %v3783_v11 = vmul.f32 %v3779_v5, %v3763_v41  ;;  %v3780_v12 = vmul.f32 %v3776_v61, %v3765_v54  ;;  %v3777_v13 = vmul.f32 0.044715, %v3767_v6  ;;  %v3769_v10 = vadd.f32 %v3768_v7, %v3645_v0  ;;  %4838 = vmatprep.subr.bf16.mxu1 %v5604_v20  ;;  %v5083_v0 = vld [vmem:[%s6379_s20 + $0x20] sm:$0xff]  }
0x1281   :  { %v3773_v8 = vmul.f32 0.5, %v3767_v6 }
0x1282   :  { %v3787_v14 = vadd.f32 %v3783_v11, %v3763_v41  ;;  %v3784_v15 = vmul.f32 %v3780_v12, %v3765_v54  ;;  %v3781_v16 = vmul.f32 %v3777_v13, %v3767_v6  ;;  %v3778_v33 = vmul.f32 0.044715, %v3769_v10  ;;  %v5085_v41 = vld [vmem:[%s6379_s20 + $0x10] sm:$0xff]  }
0x1283   :  { %v3774_v38 = vmul.f32 0.5, %v3769_v10 }
0x1284   :  { %v3785_v18 = vmul.f32 %v3781_v16, %v3767_v6  ;;  %v3782_v31 = vmul.f32 %v3778_v33, %v3769_v10  ;;  %v3788_v19 = vadd.f32 %v3784_v15, %v3765_v54  ;;  %v3791_v21 = vmul.f32 0.7978846, %v3787_v14 }
0x1286   :  { %v3789_v22 = vadd.f32 %v3785_v18, %v3767_v6  ;;  %v3786_v23 = vmul.f32 %v3782_v31, %v3769_v10  ;;  %v3792_v63 = vmul.f32 0.7978846, %v3788_v19 }
0x1288   :  { %v3793_v17 = vmul.f32 0.7978846, %v3789_v22  ;;  %v3790_v24 = vadd.f32 %v3786_v23, %v3769_v10  ;;  %5176 = vtanh.f32 %v3792_v63  ;;  %v4356_v63 = vld [vmem:[#allocation26 + $0x1] ss:$0 sm:$0xff] }
0x1289   :  { %5178 = vtanh.f32 %v3791_v21 }
0x128a   :  { %5180 = vtanh.f32 %v3793_v17  ;;  %v3794_v26 = vmul.f32 0.7978846, %v3790_v24 }
0x128c   :  { %5182 = vtanh.f32 %v3794_v26 }
0x1295   :  { %v5177_v27 = vpop.eup %5176 }
0x1296   :  { %v5179_v29 = vpop.eup %5178  ;;  %v3800_v32 = vadd.f32 1.0, %v5177_v27  ;;  %v4357_v27 = vld [vmem:[#allocation28 + $0x1] ss:$0 sm:$0xff] }
0x1297   :  { %v5181_v42 = vpop.eup %5180  ;;  %v3799_v37 = vadd.f32 1.0, %v5179_v29 }
0x1298   :  { %v3801_v34 = vadd.f32 1.0, %v5181_v42  ;;  %v3804_v39 = vmul.f32 %v3800_v32, %v3772_v9 }
0x1299   :  { %v5183_v36 = vpop.eup %5182  ;;  %v3803_v48 = vmul.f32 %v3799_v37, %v3771_v43 }
0x129a   :  { %v3802_v40 = vadd.f32 1.0, %v5183_v36  ;;  %v3805_v30 = vmul.f32 %v3801_v34, %v3773_v8  ;;  %v4358_v8 = vld [vmem:[%s6380_s21] ss:$0 sm:$0xff] }
0x129c   :  { %v3806_v47 = vmul.f32 %v3802_v40, %v3774_v38  ;;  %v3807_v52 = vpack.c.bf16 %v3805_v30, %v3803_v48 }
0x129e   :  { %v3808_v50 = vpack.c.bf16 %v3806_v47, %v3804_v39 }
0x12a0   :  { %3978 = vmatprep.mubr.bf16.mxu0 %v3808_v50 }
0x12a1   :  { %3979 = vmatmul.mubr.bf16.vlgmr.msra.gmra.mxu0 %v3807_v52 }
0x1361   :  { %v4520_v28 = vpop.f32.mrf.mxu0 }
0x1363   :  { %v4521_v55 = vpop.f32.mrf.mxu0 }
0x1364   :  { %v4522_v44 = vadd.f32 %v4521_v55, %v4520_v28 }
0x1365   :  { %v4523_v56 = vpop.f32.mrf.mxu0 }
0x1366   :  { %v3981_v57 = vadd.f32 %v4522_v44, %v4339_v53 }
0x1367   :  { %v4524_v35 = vpop.f32.mrf.mxu0 }
0x1368   :  { %v4525_v58 = vadd.f32 %v4524_v35, %v4523_v56  ;;  %v3987_v59 = vadd.f32 %v3981_v57, %v6310_v45  ;;  %v5081_v45 = vld [vmem:[%s6379_s20 + $0x30] sm:$0xff]  }
0x1369   :  { %4839 = vmatpush3.bf16.msra.mxu1 %v5081_v45 }
0x136a   :  { %v3984_v62 = vadd.f32 %v4525_v58, %v4339_v53  ;;  %3993 = vadd.xlane.f32.xlu0 %v3987_v59  ;;  %v3999_v1 = vmul.f32 %v3987_v59, %v3987_v59  ;;  %4840 = vmatprep.subr.bf16.mxu1 %v5604_v20 }
0x136c   :  { %v3988_v60 = vadd.f32 %v3984_v62, %v6312_v46  ;;  %v5082_v46 = vld [vmem:[%s6379_s20 + $0x28] sm:$0xff]  }
0x136d   :  { %4841 = vmatpush3.bf16.msra.mxu1 %v5082_v46 }
0x136e   :  { %3995 = vadd.xlane.f32.xlu1 %v3988_v60  ;;  %4001 = vadd.xlane.f32.xlu0 %v3999_v1  ;;  %v4000_v25 = vmul.f32 %v3988_v60, %v3988_v60 }
0x136f   :  { %4842 = vmatprep.subr.bf16.mxu1 %v5604_v20 }
0x1371   :  { %4843 = vmatpush3.bf16.msra.mxu1 %v5083_v0 }
0x1372   :  { %4003 = vadd.xlane.f32.xlu1 %v4000_v25  ;;  %4844 = vmatprep.subr.bf16.mxu1 %v5604_v20 }
0x1375   :  { %4845 = vmatpush3.bf16.msra.mxu1 %v5084_v3 }
0x1376   :  { %4846 = vmatprep.subr.bf16.mxu1 %v5604_v20 }
0x1379   :  { %4847 = vmatpush3.bf16.msra.mxu1 %v5085_v41 }
0x137a   :  { %4848 = vmatprep.subr.bf16.mxu1 %v5604_v20 }
0x137d   :  { %4849 = vmatpush3.bf16.msra.mxu1 %v5086_v51 }
0x137e   :  { %4850 = vmatprep.subr.bf16.mxu1 %v5604_v20 }
0x1381   :  { %4851 = vmatpush3.bf16.msra.mxu1 %v5087_v4 }
0x13f3   :  { %v3994_v54 = vpop.xlane.xlu0 %3993 }
0x13f4   :  { %v3997_v49 = vmul.f32 0.0078125, %v3994_v54 }
0x13f6   :  { %v4007_v6 = vmul.f32 %v3997_v49, %v3997_v49  ;;  %v4013_v19 = vsub.f32 %v3987_v59, %v3997_v49 }
0x13f7   :  { %v3996_v5 = vpop.xlane.xlu1 %3995  ;;  %v4002_v61 = vpop.xlane.xlu0 %4001 }
0x13f8   :  { %v3998_v7 = vmul.f32 0.0078125, %v3996_v5  ;;  %v4005_v11 = vmul.f32 0.0078125, %v4002_v61 }
0x13fa   :  { %v4009_v12 = vsub.f32 %v4005_v11, %v4007_v6  ;;  %v4008_v10 = vmul.f32 %v3998_v7, %v3998_v7  ;;  %v4014_v21 = vsub.f32 %v3988_v60, %v3998_v7 }
0x13fb   :  { %v4004_v13 = vpop.xlane.xlu1 %4003 }
0x13fc   :  { %v4011_v14 = vmax.f32 %v4009_v12, 0.0  ;;  %v4006_v15 = vmul.f32 0.0078125, %v4004_v13 }
0x13fe   :  { %v4015_v16 = vadd.f32 1e-12, %v4011_v14  ;;  %v4010_v33 = vsub.f32 %v4006_v15, %v4008_v10 }
0x1400   :  { %5184 = vrsqrt.f32 %v4015_v16  ;;  %v4012_v18 = vmax.f32 %v4010_v33, 0.0 }
0x1402   :  { %v4016_v31 = vadd.f32 1e-12, %v4012_v18 }
0x1404   :  { %5186 = vrsqrt.f32 %v4016_v31 }
0x140d   :  { %v5185_v20 = vpop.eup %5184 }
0x140e   :  { %v4019_v22 = vmul.f32 %v5185_v20, %v4013_v19 }
0x1410   :  { %v4027_v24 = vmul.f32 %v4356_v63, %v4019_v22 }
0x1411   :  { %v5187_v23 = vpop.eup %5186 }
0x1412   :  { %v4020_v17 = vmul.f32 %v5187_v23, %v4014_v21  ;;  %v4035_v42 = vadd.f32 %v4357_v27, %v4027_v24 }
0x1414   :  { %v4028_v26 = vmul.f32 %v4356_v63, %v4020_v17 }
0x1416   :  { %v4036_v29 = vadd.f32 %v4357_v27, %v4028_v26 }
0x1418   :  { %v4038_v32 = vrot.slane %v4036_v29, 7 }
0x141a   :  { %v4041_v34 = vsel %vm4040_vm9, %v4035_v42, %v4038_v32 }
0x141b   :  { %v4042_v36 = vpack.c.bf16 %v4041_v34, %v4041_v34 }
0x141d   :  { %4853 = vmatmul.mubr.bf16.vlgmr.msra.gmra.mxu1 %v4042_v36 }
0x14dd   :  { %v4148_v37 = vpop.f32.mrf.mxu1 }
0x14de   :  { %v4149_v9 = vadd.f32 %v4358_v8, %v4148_v37 }
0x14df   :  { %v4854_v38 = vpop.f32.mrf.mxu1 }
0x14e0   :  { %4154 = vst [vmem:[#allocation29] sm:$0x3] %v4149_v9 }
0x14e1   :  { %v4151_v40 = vpop.f32.mrf.mxu1 }
0x14e2   :  { %5547 = shalt.err (!%p5544_p5)
}
0x14e3   :  { %s6399_s14 = sld [smem:[#allocation47_spill]]  ;;  %v4855_v43 = vpop.f32.mrf.mxu1 }
0x14e9   :  { %4164 = dma.vmem_to_hbm [thread:$0]  %s4162_s12, 32, %s6399_s14, [#allocation4]  }
0x14ea   :  { %5574 = dma.done.wait [#allocation4], 32  }
0x14eb   :  { %5575 = vsyncadd [#allocation4], 4294967264 }
0x14ec   :  { %4168 = vsyncpa [#allocation3], 1 }
0x14ed   :  { %4169 = vsyncpa [#allocation6], 1 }
0x14ee   :  { %4170 = vsyncpa [#allocation9], 1 }
0x14ef   :  { %4171 = vsyncpa [#allocation12], 1 }
0x14f0   :  { %4172 = vsyncpa [#allocation15], 1 }
0x14f1   :  { %4173 = vsyncpa [#allocation18], 1 }
0x14f2   :  { %4174 = vsyncpa [#allocation21], 1 }
0x14f3   :  { %4175 = vsyncpa [#allocation24], 1 }
0x14f4   :  { %4176 = vsyncpa [#allocation27], 1 }
0x14f5   :  { %4177 = vsyncpa [#allocation4], 1 }

</bundles_post_ra>
